<compile_context>
chip_gen: v6e
topology: v6e:2x2x1
jax: 0.10.0
libtpu: 0.0.40
codegen_flags: <defaults>
</compile_context>

<pallas_src>
import functools
import math

import numpy as np
import jax
import jax.numpy as jnp
from jax.experimental import pallas as pl
from jax.experimental.pallas import tpu as pltpu

# ----------------------------- configuration --------------------------------
IN_CHANNELS = 32
SCALE_BRANCHES = 2
FREQ_BRANCHES = 4          # 'top4'
MIN_CHANNEL = 8
MIN_RESOLUTION = 4
GROUPS = 4
REDUCTION = 16
C2WH = {32: 112, 64: 56, 128: 28, 256: 14, 512: 7}
DCT_SIZE = C2WH[IN_CHANNELS]
BN_EPS = 1e-5

_TOP_X = [0, 0, 6, 0, 0, 1, 1, 4, 5, 1, 3, 0, 0, 0, 3, 2,
          4, 6, 3, 5, 5, 2, 6, 5, 5, 3, 3, 4, 2, 2, 6, 1]
_TOP_Y = [0, 1, 0, 5, 2, 0, 2, 0, 0, 6, 0, 4, 6, 3, 5, 2,
          6, 3, 3, 3, 5, 1, 1, 2, 4, 2, 1, 1, 3, 0, 5, 3]


# ------------------------------ Pallas kernels -------------------------------
def _im2col_3x3(x, pad_ref, im_ref, *, H, W, d):
    """Build the stacked (9*Cin, H*W) im2col operand for a 3x3 conv with
    padding == dilation == d, from x (Cin, H*W) bf16, entirely in VMEM."""
    cin = x.shape[0]
    hw = H * W
    off = d * W + d                             # top row pad + flat end pad
    zpad = jnp.zeros((cin, off), pad_ref.dtype)
    pad_ref[:, :off] = zpad                     # top pad region
    pad_ref[:, off + hw:] = zpad                # bottom pad region (same size)
    pad_ref[:, off:off + hw] = x                # interior
    col = jax.lax.broadcasted_iota(jnp.int32, (1, hw), 1) % W
    left = col >= d                             # valid when shifting left by d
    right = col < (W - d)                       # valid when shifting right by d
    for kh in range(3):
        for kw in range(3):
            t = kh * 3 + kw
            start = d * (kh * W + kw)           # static shifted flat view
            xt = pad_ref[:, start:start + hw]
            if kw == 0:
                xt = jnp.where(left, xt, jnp.zeros_like(xt))
            elif kw == 2:
                xt = jnp.where(right, xt, jnp.zeros_like(xt))
            im_ref[t * cin:(t + 1) * cin, :] = xt


def _msb_fused_kernel(x_ref, w3_ref, s1_ref, b1_ref, w1x1_ref, s2_ref, b2_ref,
                      o_ref, pad_ref, im_ref, *, H, W, d):
    """Grouped dilated 3x3 + BN + ReLU fused with 1x1 + BN + ReLU, one batch
    element per grid step, single K=9*Cin MXU contraction."""
    _im2col_3x3(x_ref[0], pad_ref, im_ref, H=H, W=W, d=d)
    y = jnp.dot(w3_ref[...], im_ref[...], preferred_element_type=jnp.float32)
    y = jnp.maximum(y * s1_ref[...] + b1_ref[...], 0.0)        # (Cout1, HW) f32
    z = jnp.dot(w1x1_ref[...], y.astype(jnp.bfloat16),
                preferred_element_type=jnp.float32)             # (Cout2, HW)
    z = jnp.maximum(z * s2_ref[...] + b2_ref[...], 0.0)
    o_ref[0] = z.astype(o_ref.dtype)


def _conv3x3_bn_relu_kernel(x_ref, w3_ref, s1_ref, b1_ref, o_ref,
                            pad_ref, im_ref, *, H, W, d):
    """Plain 3x3 + BN + ReLU (multi_frequency_branches_conv2)."""
    _im2col_3x3(x_ref[0], pad_ref, im_ref, H=H, W=W, d=d)
    y = jnp.dot(w3_ref[...], im_ref[...], preferred_element_type=jnp.float32)
    y = jnp.maximum(y * s1_ref[...] + b1_ref[...], 0.0)
    o_ref[0] = y.astype(o_ref.dtype)


def _mfca_spatial_kernel(x_ref, wavg_ref, whi_ref, wlo_ref, w1_ref, w2_ref,
                         wc1_ref, ab_ref, o_ref, *, num_freq):
    """Fused MultiFrequencyChannelAttention (DCT avg/max/min pooling with the
    adaptive-pool replication folded into the weights) + SE FC + sigmoid,
    channel-attention apply, 1x1->1 spatial attention and alpha/beta mixing."""
    x = x_ref[0].astype(jnp.float32)                               # (C, S)

    # avg branch: area, frequency sum and 1/num_freq folded into wavg (1,S).
    avg = jnp.sum(x * wavg_ref[...], axis=1, keepdims=True)        # (C, 1)

    # max / min branches: per-frequency block max/min DCT weights precomputed;
    # extremum over a replicated block of x*w is max/min(x*wmax, x*wmin).
    mx = jnp.zeros_like(avg)
    mn = jnp.zeros_like(avg)
    for f in range(num_freq):
        a = x * whi_ref[f:f + 1, :]
        b = x * wlo_ref[f:f + 1, :]
        mx = mx + jnp.max(jnp.maximum(a, b), axis=1, keepdims=True)
        mn = mn + jnp.min(jnp.minimum(a, b), axis=1, keepdims=True)

    # squeeze-excite FC applied to the three stats batched along lanes.
    v3 = jnp.concatenate([avg, mx, mn], axis=1)                    # (C, 3)
    hdn = jnp.maximum(jnp.dot(w1_ref[...], v3,
                              preferred_element_type=jnp.float32), 0.0)
    o3 = jnp.dot(w2_ref[...], hdn, preferred_element_type=jnp.float32)
    attn = jax.nn.sigmoid(jnp.sum(o3, axis=1, keepdims=True))      # (C, 1)

    fca = x * attn                                                 # channel attn
    # spatial attention: 1x1 conv to one channel == weighted sublane reduce.
    sam = jax.nn.sigmoid(jnp.sum(wc1_ref[...] * fca, axis=0, keepdims=True))
    alpha = ab_ref[0]
    beta = ab_ref[1]
    o_ref[0] = (fca * ((1.0 - sam) * alpha + sam * beta)).astype(o_ref.dtype)


def _aggregate_kernel(*refs, n_feat, inv):
    acc = refs[0][...].astype(jnp.float32)
    for r in refs[1:n_feat]:
        acc = acc + r[...].astype(jnp.float32)
    x_ref = refs[n_feat]
    o_ref = refs[n_feat + 1]
    o_ref[...] = acc * inv + x_ref[...]


# ------------------------------ kernel wrappers -------------------------------
def _conv3x3_operands(w4d, groups, bn):
    cout = w4d.shape[0]
    wfull = expand_grouped_weight(w4d, groups) if groups > 1 else w4d
    cin = wfull.shape[1]
    # stacked (Cout, 9*Cin): tap t = kh*3+kw occupies columns [t*Cin, (t+1)*Cin)
    w_stk = jnp.transpose(wfull, (0, 2, 3, 1)).reshape(cout, 9 * cin)
    scale, bias = bn_fold(**bn)
    return w_stk.astype(jnp.bfloat16), scale.reshape(cout, 1), bias.reshape(cout, 1)


def msb_branch(x_ncs, h, w, p, groups, dil):
    """multi_scale_branches[s]: 3x3 grouped dilated + BN + ReLU fused with
    1x1 + BN + ReLU in one Pallas kernel."""
    n, cin, hw = x_ncs.shape
    w_stk, s1, b1 = _conv3x3_operands(p["msb_w1"], groups, p["msb_bn1"])
    cout1 = w_stk.shape[0]
    w2 = p["msb_w2"][:, :, 0, 0].astype(jnp.bfloat16)
    cout2 = w2.shape[0]
    s2, b2 = bn_fold(**p["msb_bn2"])
    s2 = s2.reshape(cout2, 1)
    b2 = b2.reshape(cout2, 1)
    lp = (h + 2 * dil) * w + 2 * dil
    kernel = functools.partial(_msb_fused_kernel, H=h, W=w, d=dil)
    return pl.pallas_call(
        kernel,
        out_shape=jax.ShapeDtypeStruct((n, cout2, hw), jnp.bfloat16),
        grid=(n,),
        in_specs=[
            pl.BlockSpec((1, cin, hw), lambda i: (i, 0, 0)),
            pl.BlockSpec((cout1, 9 * cin), lambda i: (0, 0)),
            pl.BlockSpec((cout1, 1), lambda i: (0, 0)),
            pl.BlockSpec((cout1, 1), lambda i: (0, 0)),
            pl.BlockSpec((cout2, cout1), lambda i: (0, 0)),
            pl.BlockSpec((cout2, 1), lambda i: (0, 0)),
            pl.BlockSpec((cout2, 1), lambda i: (0, 0)),
        ],
        out_specs=pl.BlockSpec((1, cout2, hw), lambda i: (i, 0, 0)),
        scratch_shapes=[pltpu.VMEM((cin, lp), jnp.bfloat16),
                        pltpu.VMEM((9 * cin, hw), jnp.bfloat16)],
        compiler_params=pltpu.CompilerParams(dimension_semantics=("parallel",)),
    )(x_ncs.astype(jnp.bfloat16), w_stk, s1, b1, w2, s2, b2)


def conv3x3_bn_relu(x_ncs, h, w, w4d, groups, dil, bn):
    n, cin, hw = x_ncs.shape
    w_stk, s1, b1 = _conv3x3_operands(w4d, groups, bn)
    cout = w_stk.shape[0]
    lp = (h + 2 * dil) * w + 2 * dil
    kernel = functools.partial(_conv3x3_bn_relu_kernel, H=h, W=w, d=dil)
    return pl.pallas_call(
        kernel,
        out_shape=jax.ShapeDtypeStruct((n, cout, hw), jnp.bfloat16),
        grid=(n,),
        in_specs=[
            pl.BlockSpec((1, cin, hw), lambda i: (i, 0, 0)),
            pl.BlockSpec((cout, 9 * cin), lambda i: (0, 0)),
            pl.BlockSpec((cout, 1), lambda i: (0, 0)),
            pl.BlockSpec((cout, 1), lambda i: (0, 0)),
        ],
        out_specs=pl.BlockSpec((1, cout, hw), lambda i: (i, 0, 0)),
        scratch_shapes=[pltpu.VMEM((cin, lp), jnp.bfloat16),
                        pltpu.VMEM((9 * cin, hw), jnp.bfloat16)],
        compiler_params=pltpu.CompilerParams(dimension_semantics=("parallel",)),
    )(x_ncs.astype(jnp.bfloat16), w_stk, s1, b1)


def mfca_spatial_mix(f, wavg, whi, wlo, fc_w1, fc_w2, wc1, alpha_beta):
    n, c, s = f.shape
    hid = fc_w1.shape[0]
    nf = whi.shape[0]
    kernel = functools.partial(_mfca_spatial_kernel, num_freq=nf)
    return pl.pallas_call(
        kernel,
        out_shape=jax.ShapeDtypeStruct((n, c, s), jnp.bfloat16),
        grid=(n,),
        in_specs=[
            pl.BlockSpec((1, c, s), lambda i: (i, 0, 0)),
            pl.BlockSpec((1, s), lambda i: (0, 0)),
            pl.BlockSpec((nf, s), lambda i: (0, 0)),
            pl.BlockSpec((nf, s), lambda i: (0, 0)),
            pl.BlockSpec((hid, c), lambda i: (0, 0)),
            pl.BlockSpec((c, hid), lambda i: (0, 0)),
            pl.BlockSpec((c, 1), lambda i: (0, 0)),
            pl.BlockSpec(memory_space=pltpu.MemorySpace.SMEM),   # alpha/beta
        ],
        out_specs=pl.BlockSpec((1, c, s), lambda i: (i, 0, 0)),
        compiler_params=pltpu.CompilerParams(dimension_semantics=("parallel",)),
    )(f.astype(jnp.bfloat16), wavg, whi, wlo, fc_w1, fc_w2, wc1, alpha_beta)


def _pick_hw_tile(hw):
    if hw % 128 != 0:
        return hw
    for cand in (4096, 2048, 1024, 512, 256, 128):
        if cand <= hw and hw % cand == 0:
            return cand
    return hw


def _pick_row_tile(m, t_hw, n_ops, budget=8 << 20):
    cands = sorted({m} | {c for c in (2048, 1024, 512, 256, 128, 64, 32, 16, 8)
                          if c < m and m % c == 0}, reverse=True)
    for cand in cands:
        if n_ops * cand * t_hw * 4 * 2 <= budget:   # f32, double-buffered
            return cand
    return cands[-1]


def aggregate(feats, x_flat):
    """sum(feats)/n_scales + residual, tiled over rows and the HW (lane) axis."""
    n, c, hw = x_flat.shape
    m = n * c
    f2d = [f.reshape(m, hw) for f in feats]
    x2d = x_flat.reshape(m, hw)
    t_hw = _pick_hw_tile(hw)
    t_r = _pick_row_tile(m, t_hw, len(f2d) + 2)
    kernel = functools.partial(_aggregate_kernel, n_feat=len(f2d),
                               inv=1.0 / len(f2d))
    out = pl.pallas_call(
        kernel,
        out_shape=jax.ShapeDtypeStruct((m, hw), jnp.float32),
        grid=(m // t_r, hw // t_hw),
        in_specs=[pl.BlockSpec((t_r, t_hw), lambda i, j: (i, j))] * (len(f2d) + 1),
        out_specs=pl.BlockSpec((t_r, t_hw), lambda i, j: (i, j)),
        compiler_params=pltpu.CompilerParams(
            dimension_semantics=("parallel", "parallel")),
    )(*f2d, x2d)
    return out.reshape(n, c, hw)


# ------------------------------ JAX glue -------------------------------------
def bn_fold(gamma, beta, mean, var, eps=BN_EPS):
    scale = gamma / jnp.sqrt(var + eps)
    bias = beta - mean * scale
    return scale, bias


def expand_grouped_weight(w, groups):
    # (Cout, Cin/g, kh, kw) -> block-diagonal (Cout, Cin, kh, kw); exact.
    cout, cin_g, kh, kw = w.shape
    cin = cin_g * groups
    cout_g = cout // groups
    full = jnp.zeros((cout, cin, kh, kw), jnp.float32)
    for g in range(groups):
        full = full.at[g * cout_g:(g + 1) * cout_g,
                       g * cin_g:(g + 1) * cin_g].set(w[g * cout_g:(g + 1) * cout_g])
    return full


def bilinear_upsample2x_nchw(x):
    """F.interpolate(scale_factor=2, mode='bilinear', align_corners=False),
    gather-free (shift + FMA, exact fixed 0.25/0.75 weights)."""
    n, c, h, w = x.shape
    up = jnp.concatenate([x[:, :, :1, :], x[:, :, :-1, :]], axis=2)   # row i-1 clamped
    dn = jnp.concatenate([x[:, :, 1:, :], x[:, :, -1:, :]], axis=2)   # row i+1 clamped
    r_even = 0.75 * x + 0.25 * up
    r_odd = 0.75 * x + 0.25 * dn
    rows = jnp.stack([r_even, r_odd], axis=3).reshape(n, c, 2 * h, w)
    lf = jnp.concatenate([rows[..., :1], rows[..., :-1]], axis=3)
    rt = jnp.concatenate([rows[..., 1:], rows[..., -1:]], axis=3)
    c_even = 0.75 * rows + 0.25 * lf
    c_odd = 0.75 * rows + 0.25 * rt
    return jnp.stack([c_even, c_odd], axis=4).reshape(n, c, 2 * h, 2 * w)


def dct_filters(size, num_freq):
    # Same values as MultiFrequencyChannelAttention.get_dct_filter (channel-indep.)
    mx = [v * (size // 7) for v in _TOP_X[:num_freq]]
    my = [v * (size // 7) for v in _TOP_Y[:num_freq]]
    pos = np.arange(size, dtype=np.float64)

    def basis(freq):
        b = np.cos(np.pi * freq * (pos + 0.5) / size) / math.sqrt(size)
        return b * (math.sqrt(2) if freq != 0 else 1.0)

    return np.stack([np.outer(basis(u), basis(v)) for u, v in zip(mx, my)])   # (F,D,D)


def mfca_pool_weights(dct_size, num_freq, hs, ws):
    # adaptive_avg_pool2d to (dct_size, dct_size) is pixel replication when
    # dct_size % hs == 0; fold that replication analytically into the DCT
    # weights (no replicated tensor in HBM).
    assert dct_size % hs == 0 and dct_size % ws == 0
    filt = dct_filters(dct_size, num_freq)                      # (F, D, D) float64
    bh, bw = dct_size // hs, dct_size // ws
    blk = filt.reshape(num_freq, hs, bh, ws, bw)
    wsum = blk.sum(axis=(2, 4))                                 # (F, hs, ws)
    whi = blk.max(axis=(2, 4)) / num_freq
    wlo = blk.min(axis=(2, 4)) / num_freq
    area = float(dct_size * dct_size)
    wavg = wsum.sum(axis=0).reshape(1, hs * ws) / (area * num_freq)
    return (jnp.asarray(wavg, jnp.float32),
            jnp.asarray(whi.reshape(num_freq, hs * ws), jnp.float32),
            jnp.asarray(wlo.reshape(num_freq, hs * ws), jnp.float32))


# ------------------------------ parameters -----------------------------------
def init_params(key):
    keys = jax.random.split(key, 128)
    it = iter(keys)

    def nrm(shape, s=0.1):
        return (jax.random.normal(next(it), shape, jnp.float32) * s).astype(jnp.float32)

    def bn(c):
        return dict(
            gamma=1.0 + 0.1 * jax.random.normal(next(it), (c,), jnp.float32),
            beta=0.1 * jax.random.normal(next(it), (c,), jnp.float32),
            mean=0.1 * jax.random.normal(next(it), (c,), jnp.float32),
            var=1.0 + 0.1 * jax.random.uniform(next(it), (c,), jnp.float32),
        )

    scales = []
    for s in range(SCALE_BRANCHES):
        inter = IN_CHANNELS // (2 ** s)
        if inter < MIN_CHANNEL:
            inter = MIN_CHANNEL
        hid = max(inter // REDUCTION, 1)            # PyTorch: inter // reduction
        scales.append(dict(
            msb_w1=nrm((IN_CHANNELS, IN_CHANNELS // GROUPS, 3, 3)),
            msb_bn1=bn(IN_CHANNELS),
            msb_w2=nrm((inter, IN_CHANNELS, 1, 1)),
            msb_bn2=bn(inter),
            fc1_w=nrm((hid, inter, 1, 1)),
            fc2_w=nrm((inter, hid, 1, 1)),
            conv1_w=nrm((1, inter, 1, 1)),
            conv2_w=nrm((IN_CHANNELS, inter, 3, 3)),
            conv2_bn=bn(IN_CHANNELS),
            alpha=jnp.ones((1,), jnp.float32),      # nn.Parameter(torch.ones(1))
            beta=jnp.ones((1,), jnp.float32),
        ))
    return dict(scales=scales)


# ------------------------------ forward pass ----------------------------------
def mfms_attention_block(x_nchw, params):
    x = x_nchw.astype(jnp.float32)
    n, c, h, w = x.shape
    x_flat = x.reshape(n, c, h * w)

    feats = []
    for s in range(SCALE_BRANCHES):
        k = 2 ** s
        if k > 1 and (h // k) >= MIN_RESOLUTION:
            hs, ws = h // k, w // k
            f = x.reshape(n, c, hs, k, ws, k).mean(axis=(3, 5)).reshape(n, c, hs * ws)
        else:
            hs, ws = h, w
            f = x_flat

        p = params["scales"][s]
        # multi_scale_branches[s]: fused 3x3 grouped dilated conv + BN + ReLU
        # + 1x1 conv + BN + ReLU (one Pallas kernel, one HBM round trip).
        f = msb_branch(f, hs, ws, p, GROUPS, 1 + s)

        # MultiFrequencyChannelAttention + spatial attention + alpha/beta mix.
        wavg, whi, wlo = mfca_pool_weights(DCT_SIZE, FREQ_BRANCHES, hs, ws)
        ab = jnp.concatenate([p["alpha"], p["beta"]]).astype(jnp.float32)
        f = mfca_spatial_mix(f, wavg, whi, wlo,
                             p["fc1_w"][:, :, 0, 0], p["fc2_w"][:, :, 0, 0],
                             p["conv1_w"][0, :, 0, 0].reshape(-1, 1), ab)

        # multi_frequency_branches_conv2[s]: 3x3 conv + BN + ReLU.
        f = conv3x3_bn_relu(f, hs, ws, p["conv2_w"], 1, 1, p["conv2_bn"])

        if hs != h or ws != w:
            assert h == 2 * hs and w == 2 * ws, "only x2 upsample implemented"
            f = bilinear_upsample2x_nchw(
                f.reshape(n, IN_CHANNELS, hs, ws).astype(jnp.float32))
            f = f.reshape(n, IN_CHANNELS, h * w)
        feats.append(f)

    out = aggregate(feats, x_flat)                 # sum / scale_branches + residual
    return out.reshape(n, c, h, w)


# ----------------------------------- main -------------------------------------
if __name__ == "__main__":
    key = jax.random.PRNGKey(0)
    kx, kp = jax.random.split(key)
    x = jax.random.normal(kx, (2, IN_CHANNELS, 16, 16), jnp.float32)   # NCHW input
    params = init_params(kp)

    fwd = jax.jit(mfms_attention_block)
    out = jax.block_until_ready(fwd(x, params))

    assert out.shape == x.shape, out.shape
    assert bool(jnp.all(jnp.isfinite(out)))
    print("KERNEL_OK")
</pallas_src>

<mosaic_0001>
module attributes {stable_mosaic.version = 11 : i64} {
  func.func @_msb_fused_kernel(%arg0: i32, %arg1: memref<1x32x64xbf16, #tpu.memory_space<vmem>>, %arg2: memref<32x288xbf16, #tpu.memory_space<vmem>>, %arg3: memref<32x1xf32, #tpu.memory_space<vmem>>, %arg4: memref<32x1xf32, #tpu.memory_space<vmem>>, %arg5: memref<16x32xbf16, #tpu.memory_space<vmem>>, %arg6: memref<16x1xf32, #tpu.memory_space<vmem>>, %arg7: memref<16x1xf32, #tpu.memory_space<vmem>>, %arg8: memref<1x16x64xbf16, #tpu.memory_space<vmem>>, %arg9: memref<32x100xbf16, #tpu.memory_space<vmem>>, %arg10: memref<288x64xbf16, #tpu.memory_space<vmem>>) attributes {dimension_semantics = [#tpu.dimension_semantics<parallel>], iteration_bounds = array<i64: 2>, scalar_prefetch = 0 : i64, scratch_operands = 2 : i64, tpu.core_type = #tpu.core_type<tc>, window_params = [{transform_indices = @transform_0, window_bounds = array<i64: 1, 32, 64>}, {pipeline_mode = #tpu.pipeline_mode<synchronous>, transform_indices = @transform_1, window_bounds = array<i64: 32, 288>}, {pipeline_mode = #tpu.pipeline_mode<synchronous>, transform_indices = @transform_2, window_bounds = array<i64: 32, 1>}, {pipeline_mode = #tpu.pipeline_mode<synchronous>, transform_indices = @transform_3, window_bounds = array<i64: 32, 1>}, {pipeline_mode = #tpu.pipeline_mode<synchronous>, transform_indices = @transform_4, window_bounds = array<i64: 16, 32>}, {pipeline_mode = #tpu.pipeline_mode<synchronous>, transform_indices = @transform_5, window_bounds = array<i64: 16, 1>}, {pipeline_mode = #tpu.pipeline_mode<synchronous>, transform_indices = @transform_6, window_bounds = array<i64: 16, 1>}, {transform_indices = @transform_7, window_bounds = array<i64: 1, 16, 64>}]} {
    %c0 = arith.constant 0 : index
    %c0_0 = arith.constant 0 : index
    %c0_1 = arith.constant 0 : index
    %0 = vector.load %arg1[%c0, %c0_0, %c0_1] : memref<1x32x64xbf16, #tpu.memory_space<vmem>>, vector<1x32x64xbf16>
    %1 = vector.shape_cast %0 : vector<1x32x64xbf16> to vector<32x64xbf16>
    %cst = arith.constant 0.000000e+00 : bf16
    %2 = vector.broadcast %cst : bf16 to vector<32x18xbf16>
    %c0_2 = arith.constant 0 : index
    %c0_3 = arith.constant 0 : index
    %3 = vector.load %arg9[%c0_2, %c0_3] : memref<32x100xbf16, #tpu.memory_space<vmem>>, vector<32x18xbf16>
    tpu.vector_store %arg9[%c0_2, %c0_3], %2 {strides = array<i32>} : memref<32x100xbf16, #tpu.memory_space<vmem>>, vector<32x18xbf16>,
    %c0_4 = arith.constant 0 : index
    %c82 = arith.constant 82 : index
    %4 = vector.load %arg9[%c0_4, %c82] : memref<32x100xbf16, #tpu.memory_space<vmem>>, vector<32x18xbf16>
    tpu.vector_store %arg9[%c0_4, %c82], %2 {strides = array<i32>} : memref<32x100xbf16, #tpu.memory_space<vmem>>, vector<32x18xbf16>,
    %c0_5 = arith.constant 0 : index
    %c18 = arith.constant 18 : index
    %5 = vector.load %arg9[%c0_5, %c18] : memref<32x100xbf16, #tpu.memory_space<vmem>>, vector<32x64xbf16>
    tpu.vector_store %arg9[%c0_5, %c18], %1 {strides = array<i32>} : memref<32x100xbf16, #tpu.memory_space<vmem>>, vector<32x64xbf16>,
    %6 = tpu.iota {dimensions = array<i32: 1>} : vector<1x64xi32>
    %c8_i32 = arith.constant 8 : i32
    %c0_i32 = arith.constant 0 : i32
    %7 = arith.cmpi eq, %c8_i32, %c0_i32 : i32
    %c1_i32 = arith.constant 1 : i32
    %8 = arith.select %7, %c1_i32, %c8_i32 : i32
    %9 = vector.broadcast %8 : i32 to vector<1x64xi32>
    %10 = arith.remsi %6, %9 : vector<1x64xi32>
    %c0_i32_6 = arith.constant 0 : i32
    %11 = vector.broadcast %c0_i32_6 : i32 to vector<1x64xi32>
    %12 = arith.cmpi ne, %10, %11 : vector<1x64xi32>
    %c0_i32_7 = arith.constant 0 : i32
    %13 = vector.broadcast %c0_i32_7 : i32 to vector<1x64xi32>
    %14 = arith.cmpi slt, %10, %13 : vector<1x64xi32>
    %c0_i32_8 = arith.constant 0 : i32
    %15 = arith.cmpi slt, %8, %c0_i32_8 : i32
    %16 = vector.broadcast %15 : i1 to vector<1x64xi1>
    %17 = vector.broadcast %16 : vector<1x64xi1> to vector<1x64xi1>
    %18 = arith.xori %14, %17 : vector<1x64xi1>
    %19 = arith.andi %18, %12 : vector<1x64xi1>
    %20 = vector.broadcast %8 : i32 to vector<1x64xi32>
    %21 = arith.addi %10, %20 : vector<1x64xi32>
    %22 = arith.select %19, %21, %10 : vector<1x64xi1>, vector<1x64xi32>
    %c2_i32 = arith.constant 2 : i32
    %23 = vector.broadcast %c2_i32 : i32 to vector<1x64xi32>
    %24 = arith.cmpi sge, %22, %23 : vector<1x64xi32>
    %c6_i32 = arith.constant 6 : i32
    %25 = vector.broadcast %c6_i32 : i32 to vector<1x64xi32>
    %26 = arith.cmpi slt, %22, %25 : vector<1x64xi32>
    %c0_9 = arith.constant 0 : index
    %c0_10 = arith.constant 0 : index
    %27 = vector.load %arg9[%c0_9, %c0_10] : memref<32x100xbf16, #tpu.memory_space<vmem>>, vector<32x64xbf16>
    %cst_11 = arith.constant 0.000000e+00 : bf16
    %28 = vector.broadcast %cst_11 : bf16 to vector<32x64xbf16>
    %29 = vector.shape_cast %24 : vector<1x64xi1> to vector<1x64xi1>
    %30 = vector.broadcast %29 : vector<1x64xi1> to vector<32x64xi1>
    %31 = arith.select %30, %27, %28 : vector<32x64xi1>, vector<32x64xbf16>
    %c0_12 = arith.constant 0 : index
    %c0_13 = arith.constant 0 : index
    %32 = vector.load %arg10[%c0_12, %c0_13] : memref<288x64xbf16, #tpu.memory_space<vmem>>, vector<32x64xbf16>
    tpu.vector_store %arg10[%c0_12, %c0_13], %31 {strides = array<i32>} : memref<288x64xbf16, #tpu.memory_space<vmem>>, vector<32x64xbf16>,
    %c0_14 = arith.constant 0 : index
    %c2 = arith.constant 2 : index
    %33 = vector.load %arg9[%c0_14, %c2] : memref<32x100xbf16, #tpu.memory_space<vmem>>, vector<32x64xbf16>
    %c32 = arith.constant 32 : index
    %c0_15 = arith.constant 0 : index
    %34 = vector.load %arg10[%c32, %c0_15] : memref<288x64xbf16, #tpu.memory_space<vmem>>, vector<32x64xbf16>
    tpu.vector_store %arg10[%c32, %c0_15], %33 {strides = array<i32>} : memref<288x64xbf16, #tpu.memory_space<vmem>>, vector<32x64xbf16>,
    %c0_16 = arith.constant 0 : index
    %c4 = arith.constant 4 : index
    %35 = vector.load %arg9[%c0_16, %c4] : memref<32x100xbf16, #tpu.memory_space<vmem>>, vector<32x64xbf16>
    %cst_17 = arith.constant 0.000000e+00 : bf16
    %36 = vector.broadcast %cst_17 : bf16 to vector<32x64xbf16>
    %37 = vector.shape_cast %26 : vector<1x64xi1> to vector<1x64xi1>
    %38 = vector.broadcast %37 : vector<1x64xi1> to vector<32x64xi1>
    %39 = arith.select %38, %35, %36 : vector<32x64xi1>, vector<32x64xbf16>
    %c64 = arith.constant 64 : index
    %c0_18 = arith.constant 0 : index
    %40 = vector.load %arg10[%c64, %c0_18] : memref<288x64xbf16, #tpu.memory_space<vmem>>, vector<32x64xbf16>
    tpu.vector_store %arg10[%c64, %c0_18], %39 {strides = array<i32>} : memref<288x64xbf16, #tpu.memory_space<vmem>>, vector<32x64xbf16>,
    %c0_19 = arith.constant 0 : index
    %c16 = arith.constant 16 : index
    %41 = vector.load %arg9[%c0_19, %c16] : memref<32x100xbf16, #tpu.memory_space<vmem>>, vector<32x64xbf16>
    %cst_20 = arith.constant 0.000000e+00 : bf16
    %42 = vector.broadcast %cst_20 : bf16 to vector<32x64xbf16>
    %43 = vector.shape_cast %24 : vector<1x64xi1> to vector<1x64xi1>
    %44 = vector.broadcast %43 : vector<1x64xi1> to vector<32x64xi1>
    %45 = arith.select %44, %41, %42 : vector<32x64xi1>, vector<32x64xbf16>
    %c96 = arith.constant 96 : index
    %c0_21 = arith.constant 0 : index
    %46 = vector.load %arg10[%c96, %c0_21] : memref<288x64xbf16, #tpu.memory_space<vmem>>, vector<32x64xbf16>
    tpu.vector_store %arg10[%c96, %c0_21], %45 {strides = array<i32>} : memref<288x64xbf16, #tpu.memory_space<vmem>>, vector<32x64xbf16>,
    %c0_22 = arith.constant 0 : index
    %c18_23 = arith.constant 18 : index
    %47 = vector.load %arg9[%c0_22, %c18_23] : memref<32x100xbf16, #tpu.memory_space<vmem>>, vector<32x64xbf16>
    %c128 = arith.constant 128 : index
    %c0_24 = arith.constant 0 : index
    %48 = vector.load %arg10[%c128, %c0_24] : memref<288x64xbf16, #tpu.memory_space<vmem>>, vector<32x64xbf16>
    tpu.vector_store %arg10[%c128, %c0_24], %47 {strides = array<i32>} : memref<288x64xbf16, #tpu.memory_space<vmem>>, vector<32x64xbf16>,
    %c0_25 = arith.constant 0 : index
    %c20 = arith.constant 20 : index
    %49 = vector.load %arg9[%c0_25, %c20] : memref<32x100xbf16, #tpu.memory_space<vmem>>, vector<32x64xbf16>
    %cst_26 = arith.constant 0.000000e+00 : bf16
    %50 = vector.broadcast %cst_26 : bf16 to vector<32x64xbf16>
    %51 = vector.shape_cast %26 : vector<1x64xi1> to vector<1x64xi1>
    %52 = vector.broadcast %51 : vector<1x64xi1> to vector<32x64xi1>
    %53 = arith.select %52, %49, %50 : vector<32x64xi1>, vector<32x64xbf16>
    %c160 = arith.constant 160 : index
    %c0_27 = arith.constant 0 : index
    %54 = vector.load %arg10[%c160, %c0_27] : memref<288x64xbf16, #tpu.memory_space<vmem>>, vector<32x64xbf16>
    tpu.vector_store %arg10[%c160, %c0_27], %53 {strides = array<i32>} : memref<288x64xbf16, #tpu.memory_space<vmem>>, vector<32x64xbf16>,
    %c0_28 = arith.constant 0 : index
    %c32_29 = arith.constant 32 : index
    %55 = vector.load %arg9[%c0_28, %c32_29] : memref<32x100xbf16, #tpu.memory_space<vmem>>, vector<32x64xbf16>
    %cst_30 = arith.constant 0.000000e+00 : bf16
    %56 = vector.broadcast %cst_30 : bf16 to vector<32x64xbf16>
    %57 = vector.shape_cast %24 : vector<1x64xi1> to vector<1x64xi1>
    %58 = vector.broadcast %57 : vector<1x64xi1> to vector<32x64xi1>
    %59 = arith.select %58, %55, %56 : vector<32x64xi1>, vector<32x64xbf16>
    %c192 = arith.constant 192 : index
    %c0_31 = arith.constant 0 : index
    %60 = vector.load %arg10[%c192, %c0_31] : memref<288x64xbf16, #tpu.memory_space<vmem>>, vector<32x64xbf16>
    tpu.vector_store %arg10[%c192, %c0_31], %59 {strides = array<i32>} : memref<288x64xbf16, #tpu.memory_space<vmem>>, vector<32x64xbf16>,
    %c0_32 = arith.constant 0 : index
    %c34 = arith.constant 34 : index
    %61 = vector.load %arg9[%c0_32, %c34] : memref<32x100xbf16, #tpu.memory_space<vmem>>, vector<32x64xbf16>
    %c224 = arith.constant 224 : index
    %c0_33 = arith.constant 0 : index
    %62 = vector.load %arg10[%c224, %c0_33] : memref<288x64xbf16, #tpu.memory_space<vmem>>, vector<32x64xbf16>
    tpu.vector_store %arg10[%c224, %c0_33], %61 {strides = array<i32>} : memref<288x64xbf16, #tpu.memory_space<vmem>>, vector<32x64xbf16>,
    %c0_34 = arith.constant 0 : index
    %c36 = arith.constant 36 : index
    %63 = vector.load %arg9[%c0_34, %c36] : memref<32x100xbf16, #tpu.memory_space<vmem>>, vector<32x64xbf16>
    %cst_35 = arith.constant 0.000000e+00 : bf16
    %64 = vector.broadcast %cst_35 : bf16 to vector<32x64xbf16>
    %65 = vector.shape_cast %26 : vector<1x64xi1> to vector<1x64xi1>
    %66 = vector.broadcast %65 : vector<1x64xi1> to vector<32x64xi1>
    %67 = arith.select %66, %63, %64 : vector<32x64xi1>, vector<32x64xbf16>
    %c256 = arith.constant 256 : index
    %c0_36 = arith.constant 0 : index
    %68 = vector.load %arg10[%c256, %c0_36] : memref<288x64xbf16, #tpu.memory_space<vmem>>, vector<32x64xbf16>
    tpu.vector_store %arg10[%c256, %c0_36], %67 {strides = array<i32>} : memref<288x64xbf16, #tpu.memory_space<vmem>>, vector<32x64xbf16>,
    %c0_37 = arith.constant 0 : index
    %c0_38 = arith.constant 0 : index
    %69 = vector.load %arg2[%c0_37, %c0_38] : memref<32x288xbf16, #tpu.memory_space<vmem>>, vector<32x288xbf16>
    %c0_39 = arith.constant 0 : index
    %c0_40 = arith.constant 0 : index
    %70 = vector.load %arg10[%c0_39, %c0_40] : memref<288x64xbf16, #tpu.memory_space<vmem>>, vector<288x64xbf16>
    %cst_41 = arith.constant dense<0.000000e+00> : vector<32x64xf32>
    %71 = tpu.matmul %69, %70, %cst_41 {dimension_numbers = #tpu.dot_dimension_numbers<[1], [0], [0], [1], [0, 0, 1, 1], [], []>} : vector<32x288xbf16>, vector<288x64xbf16>, vector<32x64xf32> -> vector<32x64xf32>
    %c0_42 = arith.constant 0 : index
    %c0_43 = arith.constant 0 : index
    %72 = vector.load %arg3[%c0_42, %c0_43] : memref<32x1xf32, #tpu.memory_space<vmem>>, vector<32x1xf32>
    %73 = vector.broadcast %72 : vector<32x1xf32> to vector<32x64xf32>
    %74 = arith.mulf %71, %73 : vector<32x64xf32>
    %c0_44 = arith.constant 0 : index
    %c0_45 = arith.constant 0 : index
    %75 = vector.load %arg4[%c0_44, %c0_45] : memref<32x1xf32, #tpu.memory_space<vmem>>, vector<32x1xf32>
    %76 = vector.broadcast %75 : vector<32x1xf32> to vector<32x64xf32>
    %77 = arith.addf %74, %76 : vector<32x64xf32>
    %cst_46 = arith.constant 0.000000e+00 : f32
    %78 = vector.broadcast %cst_46 : f32 to vector<32x64xf32>
    %79 = arith.maximumf %77, %78 : vector<32x64xf32>
    %c0_47 = arith.constant 0 : index
    %c0_48 = arith.constant 0 : index
    %80 = vector.load %arg5[%c0_47, %c0_48] : memref<16x32xbf16, #tpu.memory_space<vmem>>, vector<16x32xbf16>
    %81 = arith.truncf %79 : vector<32x64xf32> to vector<32x64xbf16>
    %cst_49 = arith.constant dense<0.000000e+00> : vector<16x64xf32>
    %82 = tpu.matmul %80, %81, %cst_49 {dimension_numbers = #tpu.dot_dimension_numbers<[1], [0], [0], [1], [0, 0, 1, 1], [], []>} : vector<16x32xbf16>, vector<32x64xbf16>, vector<16x64xf32> -> vector<16x64xf32>
    %c0_50 = arith.constant 0 : index
    %c0_51 = arith.constant 0 : index
    %83 = vector.load %arg6[%c0_50, %c0_51] : memref<16x1xf32, #tpu.memory_space<vmem>>, vector<16x1xf32>
    %84 = vector.broadcast %83 : vector<16x1xf32> to vector<16x64xf32>
    %85 = arith.mulf %82, %84 : vector<16x64xf32>
    %c0_52 = arith.constant 0 : index
    %c0_53 = arith.constant 0 : index
    %86 = vector.load %arg7[%c0_52, %c0_53] : memref<16x1xf32, #tpu.memory_space<vmem>>, vector<16x1xf32>
    %87 = vector.broadcast %86 : vector<16x1xf32> to vector<16x64xf32>
    %88 = arith.addf %85, %87 : vector<16x64xf32>
    %cst_54 = arith.constant 0.000000e+00 : f32
    %89 = vector.broadcast %cst_54 : f32 to vector<16x64xf32>
    %90 = arith.maximumf %88, %89 : vector<16x64xf32>
    %91 = arith.truncf %90 : vector<16x64xf32> to vector<16x64xbf16>
    %c0_55 = arith.constant 0 : index
    %c0_56 = arith.constant 0 : index
    %c0_57 = arith.constant 0 : index
    %92 = vector.load %arg8[%c0_55, %c0_56, %c0_57] : memref<1x16x64xbf16, #tpu.memory_space<vmem>>, vector<1x16x64xbf16>
    %93 = vector.shape_cast %92 : vector<1x16x64xbf16> to vector<16x64xbf16>
    %94 = vector.shape_cast %91 : vector<16x64xbf16> to vector<1x16x64xbf16>
    tpu.vector_store %arg8[%c0_55, %c0_56, %c0_57], %94 {strides = array<i32>} : memref<1x16x64xbf16, #tpu.memory_space<vmem>>, vector<1x16x64xbf16>,
    return
  }
  func.func @transform_0(%arg0: i32) -> (i32, i32, i32) {
    %c0_i32 = arith.constant 0 : i32
    %c0_i32_0 = arith.constant 0 : i32
    %c0_i32_1 = arith.constant 0 : i32
    return %arg0, %c0_i32, %c0_i32_0 : i32, i32, i32
  }
  func.func @transform_1(%arg0: i32) -> (i32, i32) {
    %c0_i32 = arith.constant 0 : i32
    %c0_i32_0 = arith.constant 0 : i32
    %c0_i32_1 = arith.constant 0 : i32
    return %c0_i32, %c0_i32_0 : i32, i32
  }
  func.func @transform_2(%arg0: i32) -> (i32, i32) {
    %c0_i32 = arith.constant 0 : i32
    %c0_i32_0 = arith.constant 0 : i32
    %c0_i32_1 = arith.constant 0 : i32
    return %c0_i32, %c0_i32_0 : i32, i32
  }
  func.func @transform_3(%arg0: i32) -> (i32, i32) {
    %c0_i32 = arith.constant 0 : i32
    %c0_i32_0 = arith.constant 0 : i32
    %c0_i32_1 = arith.constant 0 : i32
    return %c0_i32, %c0_i32_0 : i32, i32
  }
  func.func @transform_4(%arg0: i32) -> (i32, i32) {
    %c0_i32 = arith.constant 0 : i32
    %c0_i32_0 = arith.constant 0 : i32
    %c0_i32_1 = arith.constant 0 : i32
    return %c0_i32, %c0_i32_0 : i32, i32
  }
  func.func @transform_5(%arg0: i32) -> (i32, i32) {
    %c0_i32 = arith.constant 0 : i32
    %c0_i32_0 = arith.constant 0 : i32
    %c0_i32_1 = arith.constant 0 : i32
    return %c0_i32, %c0_i32_0 : i32, i32
  }
  func.func @transform_6(%arg0: i32) -> (i32, i32) {
    %c0_i32 = arith.constant 0 : i32
    %c0_i32_0 = arith.constant 0 : i32
    %c0_i32_1 = arith.constant 0 : i32
    return %c0_i32, %c0_i32_0 : i32, i32
  }
  func.func @transform_7(%arg0: i32) -> (i32, i32, i32) {
    %c0_i32 = arith.constant 0 : i32
    %c0_i32_0 = arith.constant 0 : i32
    %c0_i32_1 = arith.constant 0 : i32
    return %arg0, %c0_i32, %c0_i32_0 : i32, i32, i32
  }
}

module attributes {stable_mosaic.version = 11 : i64} {
  func.func @_mfca_spatial_kernel(%arg0: i32, %arg1: memref<1x16x64xbf16, #tpu.memory_space<vmem>>, %arg2: memref<1x64xf32, #tpu.memory_space<vmem>>, %arg3: memref<4x64xf32, #tpu.memory_space<vmem>>, %arg4: memref<4x64xf32, #tpu.memory_space<vmem>>, %arg5: memref<1x16xf32, #tpu.memory_space<vmem>>, %arg6: memref<16x1xf32, #tpu.memory_space<vmem>>, %arg7: memref<16x1xf32, #tpu.memory_space<vmem>>, %arg8: memref<2xf32, #tpu.memory_space<smem>>, %arg9: memref<1x16x64xbf16, #tpu.memory_space<vmem>>) attributes {dimension_semantics = [#tpu.dimension_semantics<parallel>], iteration_bounds = array<i64: 2>, scalar_prefetch = 0 : i64, scratch_operands = 0 : i64, tpu.core_type = #tpu.core_type<tc>, window_params = [{transform_indices = @transform_0, window_bounds = array<i64: 1, 16, 64>}, {pipeline_mode = #tpu.pipeline_mode<synchronous>, transform_indices = @transform_1, window_bounds = array<i64: 1, 64>}, {pipeline_mode = #tpu.pipeline_mode<synchronous>, transform_indices = @transform_2, window_bounds = array<i64: 4, 64>}, {pipeline_mode = #tpu.pipeline_mode<synchronous>, transform_indices = @transform_3, window_bounds = array<i64: 4, 64>}, {pipeline_mode = #tpu.pipeline_mode<synchronous>, transform_indices = @transform_4, window_bounds = array<i64: 1, 16>}, {pipeline_mode = #tpu.pipeline_mode<synchronous>, transform_indices = @transform_5, window_bounds = array<i64: 16, 1>}, {pipeline_mode = #tpu.pipeline_mode<synchronous>, transform_indices = @transform_6, window_bounds = array<i64: 16, 1>}, {transform_indices = @transform_7, window_bounds = array<i64: 2>}, {transform_indices = @transform_8, window_bounds = array<i64: 1, 16, 64>}]} {
    %c0 = arith.constant 0 : index
    %c0_0 = arith.constant 0 : index
    %c0_1 = arith.constant 0 : index
    %0 = vector.load %arg1[%c0, %c0_0, %c0_1] : memref<1x16x64xbf16, #tpu.memory_space<vmem>>, vector<1x16x64xbf16>
    %1 = vector.shape_cast %0 : vector<1x16x64xbf16> to vector<16x64xbf16>
    %2 = arith.extf %1 : vector<16x64xbf16> to vector<16x64xf32>
    %c0_2 = arith.constant 0 : index
    %c0_3 = arith.constant 0 : index
    %3 = vector.load %arg2[%c0_2, %c0_3] : memref<1x64xf32, #tpu.memory_space<vmem>>, vector<1x64xf32>
    %4 = vector.broadcast %3 : vector<1x64xf32> to vector<16x64xf32>
    %5 = arith.mulf %2, %4 : vector<16x64xf32>
    %cst = arith.constant dense<0.000000e+00> : vector<16xf32>
    %6 = vector.multi_reduction <add>, %5, %cst [1] : vector<16x64xf32> to vector<16xf32>
    %7 = vector.shape_cast %6 : vector<16xf32> to vector<16x1xf32>
    %cst_4 = arith.constant 0.000000e+00 : f32
    %8 = vector.broadcast %cst_4 : f32 to vector<16x1xf32>
    %cst_5 = arith.constant 0.000000e+00 : f32
    %9 = vector.broadcast %cst_5 : f32 to vector<16x1xf32>
    %c0_6 = arith.constant 0 : index
    %c0_7 = arith.constant 0 : index
    %10 = vector.load %arg3[%c0_6, %c0_7] : memref<4x64xf32, #tpu.memory_space<vmem>>, vector<1x64xf32>
    %11 = vector.broadcast %10 : vector<1x64xf32> to vector<16x64xf32>
    %12 = arith.mulf %2, %11 : vector<16x64xf32>
    %c0_8 = arith.constant 0 : index
    %c0_9 = arith.constant 0 : index
    %13 = vector.load %arg4[%c0_8, %c0_9] : memref<4x64xf32, #tpu.memory_space<vmem>>, vector<1x64xf32>
    %14 = vector.broadcast %13 : vector<1x64xf32> to vector<16x64xf32>
    %15 = arith.mulf %2, %14 : vector<16x64xf32>
    %16 = arith.maximumf %12, %15 : vector<16x64xf32>
    %cst_10 = arith.constant dense<0xFF800000> : vector<16xf32>
    %17 = vector.multi_reduction <maximumf>, %16, %cst_10 [1] : vector<16x64xf32> to vector<16xf32>
    %18 = vector.shape_cast %17 : vector<16xf32> to vector<16x1xf32>
    %19 = arith.addf %8, %18 : vector<16x1xf32>
    %20 = arith.minimumf %12, %15 : vector<16x64xf32>
    %cst_11 = arith.constant dense<0x7F800000> : vector<16xf32>
    %21 = vector.multi_reduction <minimumf>, %20, %cst_11 [1] : vector<16x64xf32> to vector<16xf32>
    %22 = vector.shape_cast %21 : vector<16xf32> to vector<16x1xf32>
    %23 = arith.addf %9, %22 : vector<16x1xf32>
    %c1 = arith.constant 1 : index
    %c0_12 = arith.constant 0 : index
    %24 = vector.load %arg3[%c1, %c0_12] : memref<4x64xf32, #tpu.memory_space<vmem>>, vector<1x64xf32>
    %25 = vector.broadcast %24 : vector<1x64xf32> to vector<16x64xf32>
    %26 = arith.mulf %2, %25 : vector<16x64xf32>
    %c1_13 = arith.constant 1 : index
    %c0_14 = arith.constant 0 : index
    %27 = vector.load %arg4[%c1_13, %c0_14] : memref<4x64xf32, #tpu.memory_space<vmem>>, vector<1x64xf32>
    %28 = vector.broadcast %27 : vector<1x64xf32> to vector<16x64xf32>
    %29 = arith.mulf %2, %28 : vector<16x64xf32>
    %30 = arith.maximumf %26, %29 : vector<16x64xf32>
    %cst_15 = arith.constant dense<0xFF800000> : vector<16xf32>
    %31 = vector.multi_reduction <maximumf>, %30, %cst_15 [1] : vector<16x64xf32> to vector<16xf32>
    %32 = vector.shape_cast %31 : vector<16xf32> to vector<16x1xf32>
    %33 = arith.addf %19, %32 : vector<16x1xf32>
    %34 = arith.minimumf %26, %29 : vector<16x64xf32>
    %cst_16 = arith.constant dense<0x7F800000> : vector<16xf32>
    %35 = vector.multi_reduction <minimumf>, %34, %cst_16 [1] : vector<16x64xf32> to vector<16xf32>
    %36 = vector.shape_cast %35 : vector<16xf32> to vector<16x1xf32>
    %37 = arith.addf %23, %36 : vector<16x1xf32>
    %c2 = arith.constant 2 : index
    %c0_17 = arith.constant 0 : index
    %38 = vector.load %arg3[%c2, %c0_17] : memref<4x64xf32, #tpu.memory_space<vmem>>, vector<1x64xf32>
    %39 = vector.broadcast %38 : vector<1x64xf32> to vector<16x64xf32>
    %40 = arith.mulf %2, %39 : vector<16x64xf32>
    %c2_18 = arith.constant 2 : index
    %c0_19 = arith.constant 0 : index
    %41 = vector.load %arg4[%c2_18, %c0_19] : memref<4x64xf32, #tpu.memory_space<vmem>>, vector<1x64xf32>
    %42 = vector.broadcast %41 : vector<1x64xf32> to vector<16x64xf32>
    %43 = arith.mulf %2, %42 : vector<16x64xf32>
    %44 = arith.maximumf %40, %43 : vector<16x64xf32>
    %cst_20 = arith.constant dense<0xFF800000> : vector<16xf32>
    %45 = vector.multi_reduction <maximumf>, %44, %cst_20 [1] : vector<16x64xf32> to vector<16xf32>
    %46 = vector.shape_cast %45 : vector<16xf32> to vector<16x1xf32>
    %47 = arith.addf %33, %46 : vector<16x1xf32>
    %48 = arith.minimumf %40, %43 : vector<16x64xf32>
    %cst_21 = arith.constant dense<0x7F800000> : vector<16xf32>
    %49 = vector.multi_reduction <minimumf>, %48, %cst_21 [1] : vector<16x64xf32> to vector<16xf32>
    %50 = vector.shape_cast %49 : vector<16xf32> to vector<16x1xf32>
    %51 = arith.addf %37, %50 : vector<16x1xf32>
    %c3 = arith.constant 3 : index
    %c0_22 = arith.constant 0 : index
    %52 = vector.load %arg3[%c3, %c0_22] : memref<4x64xf32, #tpu.memory_space<vmem>>, vector<1x64xf32>
    %53 = vector.broadcast %52 : vector<1x64xf32> to vector<16x64xf32>
    %54 = arith.mulf %2, %53 : vector<16x64xf32>
    %c3_23 = arith.constant 3 : index
    %c0_24 = arith.constant 0 : index
    %55 = vector.load %arg4[%c3_23, %c0_24] : memref<4x64xf32, #tpu.memory_space<vmem>>, vector<1x64xf32>
    %56 = vector.broadcast %55 : vector<1x64xf32> to vector<16x64xf32>
    %57 = arith.mulf %2, %56 : vector<16x64xf32>
    %58 = arith.maximumf %54, %57 : vector<16x64xf32>
    %cst_25 = arith.constant dense<0xFF800000> : vector<16xf32>
    %59 = vector.multi_reduction <maximumf>, %58, %cst_25 [1] : vector<16x64xf32> to vector<16xf32>
    %60 = vector.shape_cast %59 : vector<16xf32> to vector<16x1xf32>
    %61 = arith.addf %47, %60 : vector<16x1xf32>
    %62 = arith.minimumf %54, %57 : vector<16x64xf32>
    %cst_26 = arith.constant dense<0x7F800000> : vector<16xf32>
    %63 = vector.multi_reduction <minimumf>, %62, %cst_26 [1] : vector<16x64xf32> to vector<16xf32>
    %64 = vector.shape_cast %63 : vector<16xf32> to vector<16x1xf32>
    %65 = arith.addf %51, %64 : vector<16x1xf32>
    %66 = tpu.concatenate %7, %61, %65 in 1 : vector<16x1xf32>, vector<16x1xf32>, vector<16x1xf32> -> vector<16x3xf32>
    %c0_27 = arith.constant 0 : index
    %c0_28 = arith.constant 0 : index
    %67 = vector.load %arg5[%c0_27, %c0_28] : memref<1x16xf32, #tpu.memory_space<vmem>>, vector<1x16xf32>
    %cst_29 = arith.constant dense<0.000000e+00> : vector<1x3xf32>
    %68 = tpu.matmul %67, %66, %cst_29 {dimension_numbers = #tpu.dot_dimension_numbers<[1], [0], [0], [1], [0, 0, 1, 1], [], []>} : vector<1x16xf32>, vector<16x3xf32>, vector<1x3xf32> -> vector<1x3xf32>
    %cst_30 = arith.constant 0.000000e+00 : f32
    %69 = vector.broadcast %cst_30 : f32 to vector<1x3xf32>
    %70 = arith.maximumf %68, %69 : vector<1x3xf32>
    %c0_31 = arith.constant 0 : index
    %c0_32 = arith.constant 0 : index
    %71 = vector.load %arg6[%c0_31, %c0_32] : memref<16x1xf32, #tpu.memory_space<vmem>>, vector<16x1xf32>
    %cst_33 = arith.constant dense<0.000000e+00> : vector<16x3xf32>
    %72 = tpu.matmul %71, %70, %cst_33 {dimension_numbers = #tpu.dot_dimension_numbers<[1], [0], [0], [1], [0, 0, 1, 1], [], []>} : vector<16x1xf32>, vector<1x3xf32>, vector<16x3xf32> -> vector<16x3xf32>
    %cst_34 = arith.constant dense<0.000000e+00> : vector<16xf32>
    %73 = vector.multi_reduction <add>, %72, %cst_34 [1] : vector<16x3xf32> to vector<16xf32>
    %74 = vector.shape_cast %73 : vector<16xf32> to vector<16x1xf32>
    %75 = arith.negf %74 : vector<16x1xf32>
    %76 = math.exp %75 : vector<16x1xf32>
    %cst_35 = arith.constant 1.000000e+00 : f32
    %77 = vector.broadcast %cst_35 : f32 to vector<16x1xf32>
    %78 = arith.addf %77, %76 : vector<16x1xf32>
    %79 = arith.divf %77, %78 : vector<16x1xf32>
    %80 = vector.broadcast %79 : vector<16x1xf32> to vector<16x64xf32>
    %81 = arith.mulf %2, %80 : vector<16x64xf32>
    %c0_36 = arith.constant 0 : index
    %c0_37 = arith.constant 0 : index
    %82 = vector.load %arg7[%c0_36, %c0_37] : memref<16x1xf32, #tpu.memory_space<vmem>>, vector<16x1xf32>
    %83 = vector.broadcast %82 : vector<16x1xf32> to vector<16x64xf32>
    %84 = arith.mulf %83, %81 : vector<16x64xf32>
    %cst_38 = arith.constant dense<0.000000e+00> : vector<64xf32>
    %85 = vector.multi_reduction <add>, %84, %cst_38 [0] : vector<16x64xf32> to vector<64xf32>
    %86 = vector.shape_cast %85 : vector<64xf32> to vector<1x64xf32>
    %87 = arith.negf %86 : vector<1x64xf32>
    %88 = math.exp %87 : vector<1x64xf32>
    %cst_39 = arith.constant 1.000000e+00 : f32
    %89 = vector.broadcast %cst_39 : f32 to vector<1x64xf32>
    %90 = arith.addf %89, %88 : vector<1x64xf32>
    %91 = arith.divf %89, %90 : vector<1x64xf32>
    %c0_40 = arith.constant 0 : index
    %92 = memref.load %arg8[%c0_40] : memref<2xf32, #tpu.memory_space<smem>>
    %c1_41 = arith.constant 1 : index
    %93 = memref.load %arg8[%c1_41] : memref<2xf32, #tpu.memory_space<smem>>
    %cst_42 = arith.constant 1.000000e+00 : f32
    %94 = vector.broadcast %cst_42 : f32 to vector<1x64xf32>
    %95 = arith.subf %94, %91 : vector<1x64xf32>
    %96 = vector.broadcast %92 : f32 to vector<1x64xf32>
    %97 = arith.mulf %95, %96 : vector<1x64xf32>
    %98 = vector.broadcast %93 : f32 to vector<1x64xf32>
    %99 = arith.mulf %91, %98 : vector<1x64xf32>
    %100 = arith.addf %97, %99 : vector<1x64xf32>
    %101 = vector.broadcast %100 : vector<1x64xf32> to vector<16x64xf32>
    %102 = arith.mulf %81, %101 : vector<16x64xf32>
    %103 = arith.truncf %102 : vector<16x64xf32> to vector<16x64xbf16>
    %c0_43 = arith.constant 0 : index
    %c0_44 = arith.constant 0 : index
    %c0_45 = arith.constant 0 : index
    %104 = vector.load %arg9[%c0_43, %c0_44, %c0_45] : memref<1x16x64xbf16, #tpu.memory_space<vmem>>, vector<1x16x64xbf16>
    %105 = vector.shape_cast %104 : vector<1x16x64xbf16> to vector<16x64xbf16>
    %106 = vector.shape_cast %103 : vector<16x64xbf16> to vector<1x16x64xbf16>
    tpu.vector_store %arg9[%c0_43, %c0_44, %c0_45], %106 {strides = array<i32>} : memref<1x16x64xbf16, #tpu.memory_space<vmem>>, vector<1x16x64xbf16>,
    return
  }
  func.func @transform_0(%arg0: i32) -> (i32, i32, i32) {
    %c0_i32 = arith.constant 0 : i32
    %c0_i32_0 = arith.constant 0 : i32
    %c0_i32_1 = arith.constant 0 : i32
    return %arg0, %c0_i32, %c0_i32_0 : i32, i32, i32
  }
  func.func @transform_1(%arg0: i32) -> (i32, i32) {
    %c0_i32 = arith.constant 0 : i32
    %c0_i32_0 = arith.constant 0 : i32
    %c0_i32_1 = arith.constant 0 : i32
    return %c0_i32, %c0_i32_0 : i32, i32
  }
  func.func @transform_2(%arg0: i32) -> (i32, i32) {
    %c0_i32 = arith.constant 0 : i32
    %c0_i32_0 = arith.constant 0 : i32
    %c0_i32_1 = arith.constant 0 : i32
    return %c0_i32, %c0_i32_0 : i32, i32
  }
  func.func @transform_3(%arg0: i32) -> (i32, i32) {
    %c0_i32 = arith.constant 0 : i32
    %c0_i32_0 = arith.constant 0 : i32
    %c0_i32_1 = arith.constant 0 : i32
    return %c0_i32, %c0_i32_0 : i32, i32
  }
  func.func @transform_4(%arg0: i32) -> (i32, i32) {
    %c0_i32 = arith.constant 0 : i32
    %c0_i32_0 = arith.constant 0 : i32
    %c0_i32_1 = arith.constant 0 : i32
    return %c0_i32, %c0_i32_0 : i32, i32
  }
  func.func @transform_5(%arg0: i32) -> (i32, i32) {
    %c0_i32 = arith.constant 0 : i32
    %c0_i32_0 = arith.constant 0 : i32
    %c0_i32_1 = arith.constant 0 : i32
    return %c0_i32, %c0_i32_0 : i32, i32
  }
  func.func @transform_6(%arg0: i32) -> (i32, i32) {
    %c0_i32 = arith.constant 0 : i32
    %c0_i32_0 = arith.constant 0 : i32
    %c0_i32_1 = arith.constant 0 : i32
    return %c0_i32, %c0_i32_0 : i32, i32
  }
  func.func @transform_7(%arg0: i32) -> i32 {
    %c0_i32 = arith.constant 0 : i32
    %c0_i32_0 = arith.constant 0 : i32
    return %c0_i32 : i32
  }
  func.func @transform_8(%arg0: i32) -> (i32, i32, i32) {
    %c0_i32 = arith.constant 0 : i32
    %c0_i32_0 = arith.constant 0 : i32
    %c0_i32_1 = arith.constant 0 : i32
    return %arg0, %c0_i32, %c0_i32_0 : i32, i32, i32
  }
}

module attributes {stable_mosaic.version = 11 : i64} {
  func.func @_conv3x3_bn_relu_kernel(%arg0: i32, %arg1: memref<1x16x64xbf16, #tpu.memory_space<vmem>>, %arg2: memref<32x144xbf16, #tpu.memory_space<vmem>>, %arg3: memref<32x1xf32, #tpu.memory_space<vmem>>, %arg4: memref<32x1xf32, #tpu.memory_space<vmem>>, %arg5: memref<1x32x64xbf16, #tpu.memory_space<vmem>>, %arg6: memref<16x82xbf16, #tpu.memory_space<vmem>>, %arg7: memref<144x64xbf16, #tpu.memory_space<vmem>>) attributes {dimension_semantics = [#tpu.dimension_semantics<parallel>], iteration_bounds = array<i64: 2>, scalar_prefetch = 0 : i64, scratch_operands = 2 : i64, tpu.core_type = #tpu.core_type<tc>, window_params = [{transform_indices = @transform_0, window_bounds = array<i64: 1, 16, 64>}, {pipeline_mode = #tpu.pipeline_mode<synchronous>, transform_indices = @transform_1, window_bounds = array<i64: 32, 144>}, {pipeline_mode = #tpu.pipeline_mode<synchronous>, transform_indices = @transform_2, window_bounds = array<i64: 32, 1>}, {pipeline_mode = #tpu.pipeline_mode<synchronous>, transform_indices = @transform_3, window_bounds = array<i64: 32, 1>}, {transform_indices = @transform_4, window_bounds = array<i64: 1, 32, 64>}]} {
    %c0 = arith.constant 0 : index
    %c0_0 = arith.constant 0 : index
    %c0_1 = arith.constant 0 : index
    %0 = vector.load %arg1[%c0, %c0_0, %c0_1] : memref<1x16x64xbf16, #tpu.memory_space<vmem>>, vector<1x16x64xbf16>
    %1 = vector.shape_cast %0 : vector<1x16x64xbf16> to vector<16x64xbf16>
    %cst = arith.constant 0.000000e+00 : bf16
    %2 = vector.broadcast %cst : bf16 to vector<16x9xbf16>
    %c0_2 = arith.constant 0 : index
    %c0_3 = arith.constant 0 : index
    %3 = vector.load %arg6[%c0_2, %c0_3] : memref<16x82xbf16, #tpu.memory_space<vmem>>, vector<16x9xbf16>
    tpu.vector_store %arg6[%c0_2, %c0_3], %2 {strides = array<i32>} : memref<16x82xbf16, #tpu.memory_space<vmem>>, vector<16x9xbf16>,
    %c0_4 = arith.constant 0 : index
    %c73 = arith.constant 73 : index
    %4 = vector.load %arg6[%c0_4, %c73] : memref<16x82xbf16, #tpu.memory_space<vmem>>, vector<16x9xbf16>
    tpu.vector_store %arg6[%c0_4, %c73], %2 {strides = array<i32>} : memref<16x82xbf16, #tpu.memory_space<vmem>>, vector<16x9xbf16>,
    %c0_5 = arith.constant 0 : index
    %c9 = arith.constant 9 : index
    %5 = vector.load %arg6[%c0_5, %c9] : memref<16x82xbf16, #tpu.memory_space<vmem>>, vector<16x64xbf16>
    tpu.vector_store %arg6[%c0_5, %c9], %1 {strides = array<i32>} : memref<16x82xbf16, #tpu.memory_space<vmem>>, vector<16x64xbf16>,
    %6 = tpu.iota {dimensions = array<i32: 1>} : vector<1x64xi32>
    %c8_i32 = arith.constant 8 : i32
    %c0_i32 = arith.constant 0 : i32
    %7 = arith.cmpi eq, %c8_i32, %c0_i32 : i32
    %c1_i32 = arith.constant 1 : i32
    %8 = arith.select %7, %c1_i32, %c8_i32 : i32
    %9 = vector.broadcast %8 : i32 to vector<1x64xi32>
    %10 = arith.remsi %6, %9 : vector<1x64xi32>
    %c0_i32_6 = arith.constant 0 : i32
    %11 = vector.broadcast %c0_i32_6 : i32 to vector<1x64xi32>
    %12 = arith.cmpi ne, %10, %11 : vector<1x64xi32>
    %c0_i32_7 = arith.constant 0 : i32
    %13 = vector.broadcast %c0_i32_7 : i32 to vector<1x64xi32>
    %14 = arith.cmpi slt, %10, %13 : vector<1x64xi32>
    %c0_i32_8 = arith.constant 0 : i32
    %15 = arith.cmpi slt, %8, %c0_i32_8 : i32
    %16 = vector.broadcast %15 : i1 to vector<1x64xi1>
    %17 = vector.broadcast %16 : vector<1x64xi1> to vector<1x64xi1>
    %18 = arith.xori %14, %17 : vector<1x64xi1>
    %19 = arith.andi %18, %12 : vector<1x64xi1>
    %20 = vector.broadcast %8 : i32 to vector<1x64xi32>
    %21 = arith.addi %10, %20 : vector<1x64xi32>
    %22 = arith.select %19, %21, %10 : vector<1x64xi1>, vector<1x64xi32>
    %c1_i32_9 = arith.constant 1 : i32
    %23 = vector.broadcast %c1_i32_9 : i32 to vector<1x64xi32>
    %24 = arith.cmpi sge, %22, %23 : vector<1x64xi32>
    %c7_i32 = arith.constant 7 : i32
    %25 = vector.broadcast %c7_i32 : i32 to vector<1x64xi32>
    %26 = arith.cmpi slt, %22, %25 : vector<1x64xi32>
    %c0_10 = arith.constant 0 : index
    %c0_11 = arith.constant 0 : index
    %27 = vector.load %arg6[%c0_10, %c0_11] : memref<16x82xbf16, #tpu.memory_space<vmem>>, vector<16x64xbf16>
    %cst_12 = arith.constant 0.000000e+00 : bf16
    %28 = vector.broadcast %cst_12 : bf16 to vector<16x64xbf16>
    %29 = vector.shape_cast %24 : vector<1x64xi1> to vector<1x64xi1>
    %30 = vector.broadcast %29 : vector<1x64xi1> to vector<16x64xi1>
    %31 = arith.select %30, %27, %28 : vector<16x64xi1>, vector<16x64xbf16>
    %c0_13 = arith.constant 0 : index
    %c0_14 = arith.constant 0 : index
    %32 = vector.load %arg7[%c0_13, %c0_14] : memref<144x64xbf16, #tpu.memory_space<vmem>>, vector<16x64xbf16>
    tpu.vector_store %arg7[%c0_13, %c0_14], %31 {strides = array<i32>} : memref<144x64xbf16, #tpu.memory_space<vmem>>, vector<16x64xbf16>,
    %c0_15 = arith.constant 0 : index
    %c1 = arith.constant 1 : index
    %33 = vector.load %arg6[%c0_15, %c1] : memref<16x82xbf16, #tpu.memory_space<vmem>>, vector<16x64xbf16>
    %c16 = arith.constant 16 : index
    %c0_16 = arith.constant 0 : index
    %34 = vector.load %arg7[%c16, %c0_16] : memref<144x64xbf16, #tpu.memory_space<vmem>>, vector<16x64xbf16>
    tpu.vector_store %arg7[%c16, %c0_16], %33 {strides = array<i32>} : memref<144x64xbf16, #tpu.memory_space<vmem>>, vector<16x64xbf16>,
    %c0_17 = arith.constant 0 : index
    %c2 = arith.constant 2 : index
    %35 = vector.load %arg6[%c0_17, %c2] : memref<16x82xbf16, #tpu.memory_space<vmem>>, vector<16x64xbf16>
    %cst_18 = arith.constant 0.000000e+00 : bf16
    %36 = vector.broadcast %cst_18 : bf16 to vector<16x64xbf16>
    %37 = vector.shape_cast %26 : vector<1x64xi1> to vector<1x64xi1>
    %38 = vector.broadcast %37 : vector<1x64xi1> to vector<16x64xi1>
    %39 = arith.select %38, %35, %36 : vector<16x64xi1>, vector<16x64xbf16>
    %c32 = arith.constant 32 : index
    %c0_19 = arith.constant 0 : index
    %40 = vector.load %arg7[%c32, %c0_19] : memref<144x64xbf16, #tpu.memory_space<vmem>>, vector<16x64xbf16>
    tpu.vector_store %arg7[%c32, %c0_19], %39 {strides = array<i32>} : memref<144x64xbf16, #tpu.memory_space<vmem>>, vector<16x64xbf16>,
    %c0_20 = arith.constant 0 : index
    %c8 = arith.constant 8 : index
    %41 = vector.load %arg6[%c0_20, %c8] : memref<16x82xbf16, #tpu.memory_space<vmem>>, vector<16x64xbf16>
    %cst_21 = arith.constant 0.000000e+00 : bf16
    %42 = vector.broadcast %cst_21 : bf16 to vector<16x64xbf16>
    %43 = vector.shape_cast %24 : vector<1x64xi1> to vector<1x64xi1>
    %44 = vector.broadcast %43 : vector<1x64xi1> to vector<16x64xi1>
    %45 = arith.select %44, %41, %42 : vector<16x64xi1>, vector<16x64xbf16>
    %c48 = arith.constant 48 : index
    %c0_22 = arith.constant 0 : index
    %46 = vector.load %arg7[%c48, %c0_22] : memref<144x64xbf16, #tpu.memory_space<vmem>>, vector<16x64xbf16>
    tpu.vector_store %arg7[%c48, %c0_22], %45 {strides = array<i32>} : memref<144x64xbf16, #tpu.memory_space<vmem>>, vector<16x64xbf16>,
    %c0_23 = arith.constant 0 : index
    %c9_24 = arith.constant 9 : index
    %47 = vector.load %arg6[%c0_23, %c9_24] : memref<16x82xbf16, #tpu.memory_space<vmem>>, vector<16x64xbf16>
    %c64 = arith.constant 64 : index
    %c0_25 = arith.constant 0 : index
    %48 = vector.load %arg7[%c64, %c0_25] : memref<144x64xbf16, #tpu.memory_space<vmem>>, vector<16x64xbf16>
    tpu.vector_store %arg7[%c64, %c0_25], %47 {strides = array<i32>} : memref<144x64xbf16, #tpu.memory_space<vmem>>, vector<16x64xbf16>,
    %c0_26 = arith.constant 0 : index
    %c10 = arith.constant 10 : index
    %49 = vector.load %arg6[%c0_26, %c10] : memref<16x82xbf16, #tpu.memory_space<vmem>>, vector<16x64xbf16>
    %cst_27 = arith.constant 0.000000e+00 : bf16
    %50 = vector.broadcast %cst_27 : bf16 to vector<16x64xbf16>
    %51 = vector.shape_cast %26 : vector<1x64xi1> to vector<1x64xi1>
    %52 = vector.broadcast %51 : vector<1x64xi1> to vector<16x64xi1>
    %53 = arith.select %52, %49, %50 : vector<16x64xi1>, vector<16x64xbf16>
    %c80 = arith.constant 80 : index
    %c0_28 = arith.constant 0 : index
    %54 = vector.load %arg7[%c80, %c0_28] : memref<144x64xbf16, #tpu.memory_space<vmem>>, vector<16x64xbf16>
    tpu.vector_store %arg7[%c80, %c0_28], %53 {strides = array<i32>} : memref<144x64xbf16, #tpu.memory_space<vmem>>, vector<16x64xbf16>,
    %c0_29 = arith.constant 0 : index
    %c16_30 = arith.constant 16 : index
    %55 = vector.load %arg6[%c0_29, %c16_30] : memref<16x82xbf16, #tpu.memory_space<vmem>>, vector<16x64xbf16>
    %cst_31 = arith.constant 0.000000e+00 : bf16
    %56 = vector.broadcast %cst_31 : bf16 to vector<16x64xbf16>
    %57 = vector.shape_cast %24 : vector<1x64xi1> to vector<1x64xi1>
    %58 = vector.broadcast %57 : vector<1x64xi1> to vector<16x64xi1>
    %59 = arith.select %58, %55, %56 : vector<16x64xi1>, vector<16x64xbf16>
    %c96 = arith.constant 96 : index
    %c0_32 = arith.constant 0 : index
    %60 = vector.load %arg7[%c96, %c0_32] : memref<144x64xbf16, #tpu.memory_space<vmem>>, vector<16x64xbf16>
    tpu.vector_store %arg7[%c96, %c0_32], %59 {strides = array<i32>} : memref<144x64xbf16, #tpu.memory_space<vmem>>, vector<16x64xbf16>,
    %c0_33 = arith.constant 0 : index
    %c17 = arith.constant 17 : index
    %61 = vector.load %arg6[%c0_33, %c17] : memref<16x82xbf16, #tpu.memory_space<vmem>>, vector<16x64xbf16>
    %c112 = arith.constant 112 : index
    %c0_34 = arith.constant 0 : index
    %62 = vector.load %arg7[%c112, %c0_34] : memref<144x64xbf16, #tpu.memory_space<vmem>>, vector<16x64xbf16>
    tpu.vector_store %arg7[%c112, %c0_34], %61 {strides = array<i32>} : memref<144x64xbf16, #tpu.memory_space<vmem>>, vector<16x64xbf16>,
    %c0_35 = arith.constant 0 : index
    %c18 = arith.constant 18 : index
    %63 = vector.load %arg6[%c0_35, %c18] : memref<16x82xbf16, #tpu.memory_space<vmem>>, vector<16x64xbf16>
    %cst_36 = arith.constant 0.000000e+00 : bf16
    %64 = vector.broadcast %cst_36 : bf16 to vector<16x64xbf16>
    %65 = vector.shape_cast %26 : vector<1x64xi1> to vector<1x64xi1>
    %66 = vector.broadcast %65 : vector<1x64xi1> to vector<16x64xi1>
    %67 = arith.select %66, %63, %64 : vector<16x64xi1>, vector<16x64xbf16>
    %c128 = arith.constant 128 : index
    %c0_37 = arith.constant 0 : index
    %68 = vector.load %arg7[%c128, %c0_37] : memref<144x64xbf16, #tpu.memory_space<vmem>>, vector<16x64xbf16>
    tpu.vector_store %arg7[%c128, %c0_37], %67 {strides = array<i32>} : memref<144x64xbf16, #tpu.memory_space<vmem>>, vector<16x64xbf16>,
    %c0_38 = arith.constant 0 : index
    %c0_39 = arith.constant 0 : index
    %69 = vector.load %arg2[%c0_38, %c0_39] : memref<32x144xbf16, #tpu.memory_space<vmem>>, vector<32x144xbf16>
    %c0_40 = arith.constant 0 : index
    %c0_41 = arith.constant 0 : index
    %70 = vector.load %arg7[%c0_40, %c0_41] : memref<144x64xbf16, #tpu.memory_space<vmem>>, vector<144x64xbf16>
    %cst_42 = arith.constant dense<0.000000e+00> : vector<32x64xf32>
    %71 = tpu.matmul %69, %70, %cst_42 {dimension_numbers = #tpu.dot_dimension_numbers<[1], [0], [0], [1], [0, 0, 1, 1], [], []>} : vector<32x144xbf16>, vector<144x64xbf16>, vector<32x64xf32> -> vector<32x64xf32>
    %c0_43 = arith.constant 0 : index
    %c0_44 = arith.constant 0 : index
    %72 = vector.load %arg3[%c0_43, %c0_44] : memref<32x1xf32, #tpu.memory_space<vmem>>, vector<32x1xf32>
    %73 = vector.broadcast %72 : vector<32x1xf32> to vector<32x64xf32>
    %74 = arith.mulf %71, %73 : vector<32x64xf32>
    %c0_45 = arith.constant 0 : index
    %c0_46 = arith.constant 0 : index
    %75 = vector.load %arg4[%c0_45, %c0_46] : memref<32x1xf32, #tpu.memory_space<vmem>>, vector<32x1xf32>
    %76 = vector.broadcast %75 : vector<32x1xf32> to vector<32x64xf32>
    %77 = arith.addf %74, %76 : vector<32x64xf32>
    %cst_47 = arith.constant 0.000000e+00 : f32
    %78 = vector.broadcast %cst_47 : f32 to vector<32x64xf32>
    %79 = arith.maximumf %77, %78 : vector<32x64xf32>
    %80 = arith.truncf %79 : vector<32x64xf32> to vector<32x64xbf16>
    %c0_48 = arith.constant 0 : index
    %c0_49 = arith.constant 0 : index
    %c0_50 = arith.constant 0 : index
    %81 = vector.load %arg5[%c0_48, %c0_49, %c0_50] : memref<1x32x64xbf16, #tpu.memory_space<vmem>>, vector<1x32x64xbf16>
    %82 = vector.shape_cast %81 : vector<1x32x64xbf16> to vector<32x64xbf16>
    %83 = vector.shape_cast %80 : vector<32x64xbf16> to vector<1x32x64xbf16>
    tpu.vector_store %arg5[%c0_48, %c0_49, %c0_50], %83 {strides = array<i32>} : memref<1x32x64xbf16, #tpu.memory_space<vmem>>, vector<1x32x64xbf16>,
    return
  }
  func.func @transform_0(%arg0: i32) -> (i32, i32, i32) {
    %c0_i32 = arith.constant 0 : i32
    %c0_i32_0 = arith.constant 0 : i32
    %c0_i32_1 = arith.constant 0 : i32
    return %arg0, %c0_i32, %c0_i32_0 : i32, i32, i32
  }
  func.func @transform_1(%arg0: i32) -> (i32, i32) {
    %c0_i32 = arith.constant 0 : i32
    %c0_i32_0 = arith.constant 0 : i32
    %c0_i32_1 = arith.constant 0 : i32
    return %c0_i32, %c0_i32_0 : i32, i32
  }
  func.func @transform_2(%arg0: i32) -> (i32, i32) {
    %c0_i32 = arith.constant 0 : i32
    %c0_i32_0 = arith.constant 0 : i32
    %c0_i32_1 = arith.constant 0 : i32
    return %c0_i32, %c0_i32_0 : i32, i32
  }
  func.func @transform_3(%arg0: i32) -> (i32, i32) {
    %c0_i32 = arith.constant 0 : i32
    %c0_i32_0 = arith.constant 0 : i32
    %c0_i32_1 = arith.constant 0 : i32
    return %c0_i32, %c0_i32_0 : i32, i32
  }
  func.func @transform_4(%arg0: i32) -> (i32, i32, i32) {
    %c0_i32 = arith.constant 0 : i32
    %c0_i32_0 = arith.constant 0 : i32
    %c0_i32_1 = arith.constant 0 : i32
    return %arg0, %c0_i32, %c0_i32_0 : i32, i32, i32
  }
}

module attributes {stable_mosaic.version = 11 : i64} {
  func.func @_mfca_spatial_kernel(%arg0: i32, %arg1: memref<1x32x256xbf16, #tpu.memory_space<vmem>>, %arg2: memref<1x256xf32, #tpu.memory_space<vmem>>, %arg3: memref<4x256xf32, #tpu.memory_space<vmem>>, %arg4: memref<4x256xf32, #tpu.memory_space<vmem>>, %arg5: memref<2x32xf32, #tpu.memory_space<vmem>>, %arg6: memref<32x2xf32, #tpu.memory_space<vmem>>, %arg7: memref<32x1xf32, #tpu.memory_space<vmem>>, %arg8: memref<2xf32, #tpu.memory_space<smem>>, %arg9: memref<1x32x256xbf16, #tpu.memory_space<vmem>>) attributes {dimension_semantics = [#tpu.dimension_semantics<parallel>], iteration_bounds = array<i64: 2>, scalar_prefetch = 0 : i64, scratch_operands = 0 : i64, tpu.core_type = #tpu.core_type<tc>, window_params = [{transform_indices = @transform_0, window_bounds = array<i64: 1, 32, 256>}, {pipeline_mode = #tpu.pipeline_mode<synchronous>, transform_indices = @transform_1, window_bounds = array<i64: 1, 256>}, {pipeline_mode = #tpu.pipeline_mode<synchronous>, transform_indices = @transform_2, window_bounds = array<i64: 4, 256>}, {pipeline_mode = #tpu.pipeline_mode<synchronous>, transform_indices = @transform_3, window_bounds = array<i64: 4, 256>}, {pipeline_mode = #tpu.pipeline_mode<synchronous>, transform_indices = @transform_4, window_bounds = array<i64: 2, 32>}, {pipeline_mode = #tpu.pipeline_mode<synchronous>, transform_indices = @transform_5, window_bounds = array<i64: 32, 2>}, {pipeline_mode = #tpu.pipeline_mode<synchronous>, transform_indices = @transform_6, window_bounds = array<i64: 32, 1>}, {transform_indices = @transform_7, window_bounds = array<i64: 2>}, {transform_indices = @transform_8, window_bounds = array<i64: 1, 32, 256>}]} {
    %c0 = arith.constant 0 : index
    %c0_0 = arith.constant 0 : index
    %c0_1 = arith.constant 0 : index
    %0 = vector.load %arg1[%c0, %c0_0, %c0_1] : memref<1x32x256xbf16, #tpu.memory_space<vmem>>, vector<1x32x256xbf16>
    %1 = vector.shape_cast %0 : vector<1x32x256xbf16> to vector<32x256xbf16>
    %2 = arith.extf %1 : vector<32x256xbf16> to vector<32x256xf32>
    %c0_2 = arith.constant 0 : index
    %c0_3 = arith.constant 0 : index
    %3 = vector.load %arg2[%c0_2, %c0_3] : memref<1x256xf32, #tpu.memory_space<vmem>>, vector<1x256xf32>
    %4 = vector.broadcast %3 : vector<1x256xf32> to vector<32x256xf32>
    %5 = arith.mulf %2, %4 : vector<32x256xf32>
    %cst = arith.constant dense<0.000000e+00> : vector<32xf32>
    %6 = vector.multi_reduction <add>, %5, %cst [1] : vector<32x256xf32> to vector<32xf32>
    %7 = vector.shape_cast %6 : vector<32xf32> to vector<32x1xf32>
    %cst_4 = arith.constant 0.000000e+00 : f32
    %8 = vector.broadcast %cst_4 : f32 to vector<32x1xf32>
    %cst_5 = arith.constant 0.000000e+00 : f32
    %9 = vector.broadcast %cst_5 : f32 to vector<32x1xf32>
    %c0_6 = arith.constant 0 : index
    %c0_7 = arith.constant 0 : index
    %10 = vector.load %arg3[%c0_6, %c0_7] : memref<4x256xf32, #tpu.memory_space<vmem>>, vector<1x256xf32>
    %11 = vector.broadcast %10 : vector<1x256xf32> to vector<32x256xf32>
    %12 = arith.mulf %2, %11 : vector<32x256xf32>
    %c0_8 = arith.constant 0 : index
    %c0_9 = arith.constant 0 : index
    %13 = vector.load %arg4[%c0_8, %c0_9] : memref<4x256xf32, #tpu.memory_space<vmem>>, vector<1x256xf32>
    %14 = vector.broadcast %13 : vector<1x256xf32> to vector<32x256xf32>
    %15 = arith.mulf %2, %14 : vector<32x256xf32>
    %16 = arith.maximumf %12, %15 : vector<32x256xf32>
    %cst_10 = arith.constant dense<0xFF800000> : vector<32xf32>
    %17 = vector.multi_reduction <maximumf>, %16, %cst_10 [1] : vector<32x256xf32> to vector<32xf32>
    %18 = vector.shape_cast %17 : vector<32xf32> to vector<32x1xf32>
    %19 = arith.addf %8, %18 : vector<32x1xf32>
    %20 = arith.minimumf %12, %15 : vector<32x256xf32>
    %cst_11 = arith.constant dense<0x7F800000> : vector<32xf32>
    %21 = vector.multi_reduction <minimumf>, %20, %cst_11 [1] : vector<32x256xf32> to vector<32xf32>
    %22 = vector.shape_cast %21 : vector<32xf32> to vector<32x1xf32>
    %23 = arith.addf %9, %22 : vector<32x1xf32>
    %c1 = arith.constant 1 : index
    %c0_12 = arith.constant 0 : index
    %24 = vector.load %arg3[%c1, %c0_12] : memref<4x256xf32, #tpu.memory_space<vmem>>, vector<1x256xf32>
    %25 = vector.broadcast %24 : vector<1x256xf32> to vector<32x256xf32>
    %26 = arith.mulf %2, %25 : vector<32x256xf32>
    %c1_13 = arith.constant 1 : index
    %c0_14 = arith.constant 0 : index
    %27 = vector.load %arg4[%c1_13, %c0_14] : memref<4x256xf32, #tpu.memory_space<vmem>>, vector<1x256xf32>
    %28 = vector.broadcast %27 : vector<1x256xf32> to vector<32x256xf32>
    %29 = arith.mulf %2, %28 : vector<32x256xf32>
    %30 = arith.maximumf %26, %29 : vector<32x256xf32>
    %cst_15 = arith.constant dense<0xFF800000> : vector<32xf32>
    %31 = vector.multi_reduction <maximumf>, %30, %cst_15 [1] : vector<32x256xf32> to vector<32xf32>
    %32 = vector.shape_cast %31 : vector<32xf32> to vector<32x1xf32>
    %33 = arith.addf %19, %32 : vector<32x1xf32>
    %34 = arith.minimumf %26, %29 : vector<32x256xf32>
    %cst_16 = arith.constant dense<0x7F800000> : vector<32xf32>
    %35 = vector.multi_reduction <minimumf>, %34, %cst_16 [1] : vector<32x256xf32> to vector<32xf32>
    %36 = vector.shape_cast %35 : vector<32xf32> to vector<32x1xf32>
    %37 = arith.addf %23, %36 : vector<32x1xf32>
    %c2 = arith.constant 2 : index
    %c0_17 = arith.constant 0 : index
    %38 = vector.load %arg3[%c2, %c0_17] : memref<4x256xf32, #tpu.memory_space<vmem>>, vector<1x256xf32>
    %39 = vector.broadcast %38 : vector<1x256xf32> to vector<32x256xf32>
    %40 = arith.mulf %2, %39 : vector<32x256xf32>
    %c2_18 = arith.constant 2 : index
    %c0_19 = arith.constant 0 : index
    %41 = vector.load %arg4[%c2_18, %c0_19] : memref<4x256xf32, #tpu.memory_space<vmem>>, vector<1x256xf32>
    %42 = vector.broadcast %41 : vector<1x256xf32> to vector<32x256xf32>
    %43 = arith.mulf %2, %42 : vector<32x256xf32>
    %44 = arith.maximumf %40, %43 : vector<32x256xf32>
    %cst_20 = arith.constant dense<0xFF800000> : vector<32xf32>
    %45 = vector.multi_reduction <maximumf>, %44, %cst_20 [1] : vector<32x256xf32> to vector<32xf32>
    %46 = vector.shape_cast %45 : vector<32xf32> to vector<32x1xf32>
    %47 = arith.addf %33, %46 : vector<32x1xf32>
    %48 = arith.minimumf %40, %43 : vector<32x256xf32>
    %cst_21 = arith.constant dense<0x7F800000> : vector<32xf32>
    %49 = vector.multi_reduction <minimumf>, %48, %cst_21 [1] : vector<32x256xf32> to vector<32xf32>
    %50 = vector.shape_cast %49 : vector<32xf32> to vector<32x1xf32>
    %51 = arith.addf %37, %50 : vector<32x1xf32>
    %c3 = arith.constant 3 : index
    %c0_22 = arith.constant 0 : index
    %52 = vector.load %arg3[%c3, %c0_22] : memref<4x256xf32, #tpu.memory_space<vmem>>, vector<1x256xf32>
    %53 = vector.broadcast %52 : vector<1x256xf32> to vector<32x256xf32>
    %54 = arith.mulf %2, %53 : vector<32x256xf32>
    %c3_23 = arith.constant 3 : index
    %c0_24 = arith.constant 0 : index
    %55 = vector.load %arg4[%c3_23, %c0_24] : memref<4x256xf32, #tpu.memory_space<vmem>>, vector<1x256xf32>
    %56 = vector.broadcast %55 : vector<1x256xf32> to vector<32x256xf32>
    %57 = arith.mulf %2, %56 : vector<32x256xf32>
    %58 = arith.maximumf %54, %57 : vector<32x256xf32>
    %cst_25 = arith.constant dense<0xFF800000> : vector<32xf32>
    %59 = vector.multi_reduction <maximumf>, %58, %cst_25 [1] : vector<32x256xf32> to vector<32xf32>
    %60 = vector.shape_cast %59 : vector<32xf32> to vector<32x1xf32>
    %61 = arith.addf %47, %60 : vector<32x1xf32>
    %62 = arith.minimumf %54, %57 : vector<32x256xf32>
    %cst_26 = arith.constant dense<0x7F800000> : vector<32xf32>
    %63 = vector.multi_reduction <minimumf>, %62, %cst_26 [1] : vector<32x256xf32> to vector<32xf32>
    %64 = vector.shape_cast %63 : vector<32xf32> to vector<32x1xf32>
    %65 = arith.addf %51, %64 : vector<32x1xf32>
    %66 = tpu.concatenate %7, %61, %65 in 1 : vector<32x1xf32>, vector<32x1xf32>, vector<32x1xf32> -> vector<32x3xf32>
    %c0_27 = arith.constant 0 : index
    %c0_28 = arith.constant 0 : index
    %67 = vector.load %arg5[%c0_27, %c0_28] : memref<2x32xf32, #tpu.memory_space<vmem>>, vector<2x32xf32>
    %cst_29 = arith.constant dense<0.000000e+00> : vector<2x3xf32>
    %68 = tpu.matmul %67, %66, %cst_29 {dimension_numbers = #tpu.dot_dimension_numbers<[1], [0], [0], [1], [0, 0, 1, 1], [], []>} : vector<2x32xf32>, vector<32x3xf32>, vector<2x3xf32> -> vector<2x3xf32>
    %cst_30 = arith.constant 0.000000e+00 : f32
    %69 = vector.broadcast %cst_30 : f32 to vector<2x3xf32>
    %70 = arith.maximumf %68, %69 : vector<2x3xf32>
    %c0_31 = arith.constant 0 : index
    %c0_32 = arith.constant 0 : index
    %71 = vector.load %arg6[%c0_31, %c0_32] : memref<32x2xf32, #tpu.memory_space<vmem>>, vector<32x2xf32>
    %cst_33 = arith.constant dense<0.000000e+00> : vector<32x3xf32>
    %72 = tpu.matmul %71, %70, %cst_33 {dimension_numbers = #tpu.dot_dimension_numbers<[1], [0], [0], [1], [0, 0, 1, 1], [], []>} : vector<32x2xf32>, vector<2x3xf32>, vector<32x3xf32> -> vector<32x3xf32>
    %cst_34 = arith.constant dense<0.000000e+00> : vector<32xf32>
    %73 = vector.multi_reduction <add>, %72, %cst_34 [1] : vector<32x3xf32> to vector<32xf32>
    %74 = vector.shape_cast %73 : vector<32xf32> to vector<32x1xf32>
    %75 = arith.negf %74 : vector<32x1xf32>
    %76 = math.exp %75 : vector<32x1xf32>
    %cst_35 = arith.constant 1.000000e+00 : f32
    %77 = vector.broadcast %cst_35 : f32 to vector<32x1xf32>
    %78 = arith.addf %77, %76 : vector<32x1xf32>
    %79 = arith.divf %77, %78 : vector<32x1xf32>
    %80 = vector.broadcast %79 : vector<32x1xf32> to vector<32x256xf32>
    %81 = arith.mulf %2, %80 : vector<32x256xf32>
    %c0_36 = arith.constant 0 : index
    %c0_37 = arith.constant 0 : index
    %82 = vector.load %arg7[%c0_36, %c0_37] : memref<32x1xf32, #tpu.memory_space<vmem>>, vector<32x1xf32>
    %83 = vector.broadcast %82 : vector<32x1xf32> to vector<32x256xf32>
    %84 = arith.mulf %83, %81 : vector<32x256xf32>
    %cst_38 = arith.constant dense<0.000000e+00> : vector<256xf32>
    %85 = vector.multi_reduction <add>, %84, %cst_38 [0] : vector<32x256xf32> to vector<256xf32>
    %86 = vector.shape_cast %85 : vector<256xf32> to vector<1x256xf32>
    %87 = arith.negf %86 : vector<1x256xf32>
    %88 = math.exp %87 : vector<1x256xf32>
    %cst_39 = arith.constant 1.000000e+00 : f32
    %89 = vector.broadcast %cst_39 : f32 to vector<1x256xf32>
    %90 = arith.addf %89, %88 : vector<1x256xf32>
    %91 = arith.divf %89, %90 : vector<1x256xf32>
    %c0_40 = arith.constant 0 : index
    %92 = memref.load %arg8[%c0_40] : memref<2xf32, #tpu.memory_space<smem>>
    %c1_41 = arith.constant 1 : index
    %93 = memref.load %arg8[%c1_41] : memref<2xf32, #tpu.memory_space<smem>>
    %cst_42 = arith.constant 1.000000e+00 : f32
    %94 = vector.broadcast %cst_42 : f32 to vector<1x256xf32>
    %95 = arith.subf %94, %91 : vector<1x256xf32>
    %96 = vector.broadcast %92 : f32 to vector<1x256xf32>
    %97 = arith.mulf %95, %96 : vector<1x256xf32>
    %98 = vector.broadcast %93 : f32 to vector<1x256xf32>
    %99 = arith.mulf %91, %98 : vector<1x256xf32>
    %100 = arith.addf %97, %99 : vector<1x256xf32>
    %101 = vector.broadcast %100 : vector<1x256xf32> to vector<32x256xf32>
    %102 = arith.mulf %81, %101 : vector<32x256xf32>
    %103 = arith.truncf %102 : vector<32x256xf32> to vector<32x256xbf16>
    %c0_43 = arith.constant 0 : index
    %c0_44 = arith.constant 0 : index
    %c0_45 = arith.constant 0 : index
    %104 = vector.load %arg9[%c0_43, %c0_44, %c0_45] : memref<1x32x256xbf16, #tpu.memory_space<vmem>>, vector<1x32x256xbf16>
    %105 = vector.shape_cast %104 : vector<1x32x256xbf16> to vector<32x256xbf16>
    %106 = vector.shape_cast %103 : vector<32x256xbf16> to vector<1x32x256xbf16>
    tpu.vector_store %arg9[%c0_43, %c0_44, %c0_45], %106 {strides = array<i32>} : memref<1x32x256xbf16, #tpu.memory_space<vmem>>, vector<1x32x256xbf16>,
    return
  }
  func.func @transform_0(%arg0: i32) -> (i32, i32, i32) {
    %c0_i32 = arith.constant 0 : i32
    %c0_i32_0 = arith.constant 0 : i32
    %c0_i32_1 = arith.constant 0 : i32
    return %arg0, %c0_i32, %c0_i32_0 : i32, i32, i32
  }
  func.func @transform_1(%arg0: i32) -> (i32, i32) {
    %c0_i32 = arith.constant 0 : i32
    %c0_i32_0 = arith.constant 0 : i32
    %c0_i32_1 = arith.constant 0 : i32
    return %c0_i32, %c0_i32_0 : i32, i32
  }
  func.func @transform_2(%arg0: i32) -> (i32, i32) {
    %c0_i32 = arith.constant 0 : i32
    %c0_i32_0 = arith.constant 0 : i32
    %c0_i32_1 = arith.constant 0 : i32
    return %c0_i32, %c0_i32_0 : i32, i32
  }
  func.func @transform_3(%arg0: i32) -> (i32, i32) {
    %c0_i32 = arith.constant 0 : i32
    %c0_i32_0 = arith.constant 0 : i32
    %c0_i32_1 = arith.constant 0 : i32
    return %c0_i32, %c0_i32_0 : i32, i32
  }
  func.func @transform_4(%arg0: i32) -> (i32, i32) {
    %c0_i32 = arith.constant 0 : i32
    %c0_i32_0 = arith.constant 0 : i32
    %c0_i32_1 = arith.constant 0 : i32
    return %c0_i32, %c0_i32_0 : i32, i32
  }
  func.func @transform_5(%arg0: i32) -> (i32, i32) {
    %c0_i32 = arith.constant 0 : i32
    %c0_i32_0 = arith.constant 0 : i32
    %c0_i32_1 = arith.constant 0 : i32
    return %c0_i32, %c0_i32_0 : i32, i32
  }
  func.func @transform_6(%arg0: i32) -> (i32, i32) {
    %c0_i32 = arith.constant 0 : i32
    %c0_i32_0 = arith.constant 0 : i32
    %c0_i32_1 = arith.constant 0 : i32
    return %c0_i32, %c0_i32_0 : i32, i32
  }
  func.func @transform_7(%arg0: i32) -> i32 {
    %c0_i32 = arith.constant 0 : i32
    %c0_i32_0 = arith.constant 0 : i32
    return %c0_i32 : i32
  }
  func.func @transform_8(%arg0: i32) -> (i32, i32, i32) {
    %c0_i32 = arith.constant 0 : i32
    %c0_i32_0 = arith.constant 0 : i32
    %c0_i32_1 = arith.constant 0 : i32
    return %arg0, %c0_i32, %c0_i32_0 : i32, i32, i32
  }
}

module attributes {stable_mosaic.version = 11 : i64} {
  func.func @_msb_fused_kernel(%arg0: i32, %arg1: memref<1x32x256xbf16, #tpu.memory_space<vmem>>, %arg2: memref<32x288xbf16, #tpu.memory_space<vmem>>, %arg3: memref<32x1xf32, #tpu.memory_space<vmem>>, %arg4: memref<32x1xf32, #tpu.memory_space<vmem>>, %arg5: memref<32x32xbf16, #tpu.memory_space<vmem>>, %arg6: memref<32x1xf32, #tpu.memory_space<vmem>>, %arg7: memref<32x1xf32, #tpu.memory_space<vmem>>, %arg8: memref<1x32x256xbf16, #tpu.memory_space<vmem>>, %arg9: memref<32x290xbf16, #tpu.memory_space<vmem>>, %arg10: memref<288x256xbf16, #tpu.memory_space<vmem>>) attributes {dimension_semantics = [#tpu.dimension_semantics<parallel>], iteration_bounds = array<i64: 2>, scalar_prefetch = 0 : i64, scratch_operands = 2 : i64, tpu.core_type = #tpu.core_type<tc>, window_params = [{transform_indices = @transform_0, window_bounds = array<i64: 1, 32, 256>}, {pipeline_mode = #tpu.pipeline_mode<synchronous>, transform_indices = @transform_1, window_bounds = array<i64: 32, 288>}, {pipeline_mode = #tpu.pipeline_mode<synchronous>, transform_indices = @transform_2, window_bounds = array<i64: 32, 1>}, {pipeline_mode = #tpu.pipeline_mode<synchronous>, transform_indices = @transform_3, window_bounds = array<i64: 32, 1>}, {pipeline_mode = #tpu.pipeline_mode<synchronous>, transform_indices = @transform_4, window_bounds = array<i64: 32, 32>}, {pipeline_mode = #tpu.pipeline_mode<synchronous>, transform_indices = @transform_5, window_bounds = array<i64: 32, 1>}, {pipeline_mode = #tpu.pipeline_mode<synchronous>, transform_indices = @transform_6, window_bounds = array<i64: 32, 1>}, {transform_indices = @transform_7, window_bounds = array<i64: 1, 32, 256>}]} {
    %c0 = arith.constant 0 : index
    %c0_0 = arith.constant 0 : index
    %c0_1 = arith.constant 0 : index
    %0 = vector.load %arg1[%c0, %c0_0, %c0_1] : memref<1x32x256xbf16, #tpu.memory_space<vmem>>, vector<1x32x256xbf16>
    %1 = vector.shape_cast %0 : vector<1x32x256xbf16> to vector<32x256xbf16>
    %cst = arith.constant 0.000000e+00 : bf16
    %2 = vector.broadcast %cst : bf16 to vector<32x17xbf16>
    %c0_2 = arith.constant 0 : index
    %c0_3 = arith.constant 0 : index
    %3 = vector.load %arg9[%c0_2, %c0_3] : memref<32x290xbf16, #tpu.memory_space<vmem>>, vector<32x17xbf16>
    tpu.vector_store %arg9[%c0_2, %c0_3], %2 {strides = array<i32>} : memref<32x290xbf16, #tpu.memory_space<vmem>>, vector<32x17xbf16>,
    %c0_4 = arith.constant 0 : index
    %c273 = arith.constant 273 : index
    %4 = vector.load %arg9[%c0_4, %c273] : memref<32x290xbf16, #tpu.memory_space<vmem>>, vector<32x17xbf16>
    tpu.vector_store %arg9[%c0_4, %c273], %2 {strides = array<i32>} : memref<32x290xbf16, #tpu.memory_space<vmem>>, vector<32x17xbf16>,
    %c0_5 = arith.constant 0 : index
    %c17 = arith.constant 17 : index
    %5 = vector.load %arg9[%c0_5, %c17] : memref<32x290xbf16, #tpu.memory_space<vmem>>, vector<32x256xbf16>
    tpu.vector_store %arg9[%c0_5, %c17], %1 {strides = array<i32>} : memref<32x290xbf16, #tpu.memory_space<vmem>>, vector<32x256xbf16>,
    %6 = tpu.iota {dimensions = array<i32: 1>} : vector<1x256xi32>
    %c16_i32 = arith.constant 16 : i32
    %c0_i32 = arith.constant 0 : i32
    %7 = arith.cmpi eq, %c16_i32, %c0_i32 : i32
    %c1_i32 = arith.constant 1 : i32
    %8 = arith.select %7, %c1_i32, %c16_i32 : i32
    %9 = vector.broadcast %8 : i32 to vector<1x256xi32>
    %10 = arith.remsi %6, %9 : vector<1x256xi32>
    %c0_i32_6 = arith.constant 0 : i32
    %11 = vector.broadcast %c0_i32_6 : i32 to vector<1x256xi32>
    %12 = arith.cmpi ne, %10, %11 : vector<1x256xi32>
    %c0_i32_7 = arith.constant 0 : i32
    %13 = vector.broadcast %c0_i32_7 : i32 to vector<1x256xi32>
    %14 = arith.cmpi slt, %10, %13 : vector<1x256xi32>
    %c0_i32_8 = arith.constant 0 : i32
    %15 = arith.cmpi slt, %8, %c0_i32_8 : i32
    %16 = vector.broadcast %15 : i1 to vector<1x256xi1>
    %17 = vector.broadcast %16 : vector<1x256xi1> to vector<1x256xi1>
    %18 = arith.xori %14, %17 : vector<1x256xi1>
    %19 = arith.andi %18, %12 : vector<1x256xi1>
    %20 = vector.broadcast %8 : i32 to vector<1x256xi32>
    %21 = arith.addi %10, %20 : vector<1x256xi32>
    %22 = arith.select %19, %21, %10 : vector<1x256xi1>, vector<1x256xi32>
    %c1_i32_9 = arith.constant 1 : i32
    %23 = vector.broadcast %c1_i32_9 : i32 to vector<1x256xi32>
    %24 = arith.cmpi sge, %22, %23 : vector<1x256xi32>
    %c15_i32 = arith.constant 15 : i32
    %25 = vector.broadcast %c15_i32 : i32 to vector<1x256xi32>
    %26 = arith.cmpi slt, %22, %25 : vector<1x256xi32>
    %c0_10 = arith.constant 0 : index
    %c0_11 = arith.constant 0 : index
    %27 = vector.load %arg9[%c0_10, %c0_11] : memref<32x290xbf16, #tpu.memory_space<vmem>>, vector<32x256xbf16>
    %cst_12 = arith.constant 0.000000e+00 : bf16
    %28 = vector.broadcast %cst_12 : bf16 to vector<32x256xbf16>
    %29 = vector.shape_cast %24 : vector<1x256xi1> to vector<1x256xi1>
    %30 = vector.broadcast %29 : vector<1x256xi1> to vector<32x256xi1>
    %31 = arith.select %30, %27, %28 : vector<32x256xi1>, vector<32x256xbf16>
    %c0_13 = arith.constant 0 : index
    %c0_14 = arith.constant 0 : index
    %32 = vector.load %arg10[%c0_13, %c0_14] : memref<288x256xbf16, #tpu.memory_space<vmem>>, vector<32x256xbf16>
    tpu.vector_store %arg10[%c0_13, %c0_14], %31 {strides = array<i32>} : memref<288x256xbf16, #tpu.memory_space<vmem>>, vector<32x256xbf16>,
    %c0_15 = arith.constant 0 : index
    %c1 = arith.constant 1 : index
    %33 = vector.load %arg9[%c0_15, %c1] : memref<32x290xbf16, #tpu.memory_space<vmem>>, vector<32x256xbf16>
    %c32 = arith.constant 32 : index
    %c0_16 = arith.constant 0 : index
    %34 = vector.load %arg10[%c32, %c0_16] : memref<288x256xbf16, #tpu.memory_space<vmem>>, vector<32x256xbf16>
    tpu.vector_store %arg10[%c32, %c0_16], %33 {strides = array<i32>} : memref<288x256xbf16, #tpu.memory_space<vmem>>, vector<32x256xbf16>,
    %c0_17 = arith.constant 0 : index
    %c2 = arith.constant 2 : index
    %35 = vector.load %arg9[%c0_17, %c2] : memref<32x290xbf16, #tpu.memory_space<vmem>>, vector<32x256xbf16>
    %cst_18 = arith.constant 0.000000e+00 : bf16
    %36 = vector.broadcast %cst_18 : bf16 to vector<32x256xbf16>
    %37 = vector.shape_cast %26 : vector<1x256xi1> to vector<1x256xi1>
    %38 = vector.broadcast %37 : vector<1x256xi1> to vector<32x256xi1>
    %39 = arith.select %38, %35, %36 : vector<32x256xi1>, vector<32x256xbf16>
    %c64 = arith.constant 64 : index
    %c0_19 = arith.constant 0 : index
    %40 = vector.load %arg10[%c64, %c0_19] : memref<288x256xbf16, #tpu.memory_space<vmem>>, vector<32x256xbf16>
    tpu.vector_store %arg10[%c64, %c0_19], %39 {strides = array<i32>} : memref<288x256xbf16, #tpu.memory_space<vmem>>, vector<32x256xbf16>,
    %c0_20 = arith.constant 0 : index
    %c16 = arith.constant 16 : index
    %41 = vector.load %arg9[%c0_20, %c16] : memref<32x290xbf16, #tpu.memory_space<vmem>>, vector<32x256xbf16>
    %cst_21 = arith.constant 0.000000e+00 : bf16
    %42 = vector.broadcast %cst_21 : bf16 to vector<32x256xbf16>
    %43 = vector.shape_cast %24 : vector<1x256xi1> to vector<1x256xi1>
    %44 = vector.broadcast %43 : vector<1x256xi1> to vector<32x256xi1>
    %45 = arith.select %44, %41, %42 : vector<32x256xi1>, vector<32x256xbf16>
    %c96 = arith.constant 96 : index
    %c0_22 = arith.constant 0 : index
    %46 = vector.load %arg10[%c96, %c0_22] : memref<288x256xbf16, #tpu.memory_space<vmem>>, vector<32x256xbf16>
    tpu.vector_store %arg10[%c96, %c0_22], %45 {strides = array<i32>} : memref<288x256xbf16, #tpu.memory_space<vmem>>, vector<32x256xbf16>,
    %c0_23 = arith.constant 0 : index
    %c17_24 = arith.constant 17 : index
    %47 = vector.load %arg9[%c0_23, %c17_24] : memref<32x290xbf16, #tpu.memory_space<vmem>>, vector<32x256xbf16>
    %c128 = arith.constant 128 : index
    %c0_25 = arith.constant 0 : index
    %48 = vector.load %arg10[%c128, %c0_25] : memref<288x256xbf16, #tpu.memory_space<vmem>>, vector<32x256xbf16>
    tpu.vector_store %arg10[%c128, %c0_25], %47 {strides = array<i32>} : memref<288x256xbf16, #tpu.memory_space<vmem>>, vector<32x256xbf16>,
    %c0_26 = arith.constant 0 : index
    %c18 = arith.constant 18 : index
    %49 = vector.load %arg9[%c0_26, %c18] : memref<32x290xbf16, #tpu.memory_space<vmem>>, vector<32x256xbf16>
    %cst_27 = arith.constant 0.000000e+00 : bf16
    %50 = vector.broadcast %cst_27 : bf16 to vector<32x256xbf16>
    %51 = vector.shape_cast %26 : vector<1x256xi1> to vector<1x256xi1>
    %52 = vector.broadcast %51 : vector<1x256xi1> to vector<32x256xi1>
    %53 = arith.select %52, %49, %50 : vector<32x256xi1>, vector<32x256xbf16>
    %c160 = arith.constant 160 : index
    %c0_28 = arith.constant 0 : index
    %54 = vector.load %arg10[%c160, %c0_28] : memref<288x256xbf16, #tpu.memory_space<vmem>>, vector<32x256xbf16>
    tpu.vector_store %arg10[%c160, %c0_28], %53 {strides = array<i32>} : memref<288x256xbf16, #tpu.memory_space<vmem>>, vector<32x256xbf16>,
    %c0_29 = arith.constant 0 : index
    %c32_30 = arith.constant 32 : index
    %55 = vector.load %arg9[%c0_29, %c32_30] : memref<32x290xbf16, #tpu.memory_space<vmem>>, vector<32x256xbf16>
    %cst_31 = arith.constant 0.000000e+00 : bf16
    %56 = vector.broadcast %cst_31 : bf16 to vector<32x256xbf16>
    %57 = vector.shape_cast %24 : vector<1x256xi1> to vector<1x256xi1>
    %58 = vector.broadcast %57 : vector<1x256xi1> to vector<32x256xi1>
    %59 = arith.select %58, %55, %56 : vector<32x256xi1>, vector<32x256xbf16>
    %c192 = arith.constant 192 : index
    %c0_32 = arith.constant 0 : index
    %60 = vector.load %arg10[%c192, %c0_32] : memref<288x256xbf16, #tpu.memory_space<vmem>>, vector<32x256xbf16>
    tpu.vector_store %arg10[%c192, %c0_32], %59 {strides = array<i32>} : memref<288x256xbf16, #tpu.memory_space<vmem>>, vector<32x256xbf16>,
    %c0_33 = arith.constant 0 : index
    %c33 = arith.constant 33 : index
    %61 = vector.load %arg9[%c0_33, %c33] : memref<32x290xbf16, #tpu.memory_space<vmem>>, vector<32x256xbf16>
    %c224 = arith.constant 224 : index
    %c0_34 = arith.constant 0 : index
    %62 = vector.load %arg10[%c224, %c0_34] : memref<288x256xbf16, #tpu.memory_space<vmem>>, vector<32x256xbf16>
    tpu.vector_store %arg10[%c224, %c0_34], %61 {strides = array<i32>} : memref<288x256xbf16, #tpu.memory_space<vmem>>, vector<32x256xbf16>,
    %c0_35 = arith.constant 0 : index
    %c34 = arith.constant 34 : index
    %63 = vector.load %arg9[%c0_35, %c34] : memref<32x290xbf16, #tpu.memory_space<vmem>>, vector<32x256xbf16>
    %cst_36 = arith.constant 0.000000e+00 : bf16
    %64 = vector.broadcast %cst_36 : bf16 to vector<32x256xbf16>
    %65 = vector.shape_cast %26 : vector<1x256xi1> to vector<1x256xi1>
    %66 = vector.broadcast %65 : vector<1x256xi1> to vector<32x256xi1>
    %67 = arith.select %66, %63, %64 : vector<32x256xi1>, vector<32x256xbf16>
    %c256 = arith.constant 256 : index
    %c0_37 = arith.constant 0 : index
    %68 = vector.load %arg10[%c256, %c0_37] : memref<288x256xbf16, #tpu.memory_space<vmem>>, vector<32x256xbf16>
    tpu.vector_store %arg10[%c256, %c0_37], %67 {strides = array<i32>} : memref<288x256xbf16, #tpu.memory_space<vmem>>, vector<32x256xbf16>,
    %c0_38 = arith.constant 0 : index
    %c0_39 = arith.constant 0 : index
    %69 = vector.load %arg2[%c0_38, %c0_39] : memref<32x288xbf16, #tpu.memory_space<vmem>>, vector<32x288xbf16>
    %c0_40 = arith.constant 0 : index
    %c0_41 = arith.constant 0 : index
    %70 = vector.load %arg10[%c0_40, %c0_41] : memref<288x256xbf16, #tpu.memory_space<vmem>>, vector<288x256xbf16>
    %cst_42 = arith.constant dense<0.000000e+00> : vector<32x256xf32>
    %71 = tpu.matmul %69, %70, %cst_42 {dimension_numbers = #tpu.dot_dimension_numbers<[1], [0], [0], [1], [0, 0, 1, 1], [], []>} : vector<32x288xbf16>, vector<288x256xbf16>, vector<32x256xf32> -> vector<32x256xf32>
    %c0_43 = arith.constant 0 : index
    %c0_44 = arith.constant 0 : index
    %72 = vector.load %arg3[%c0_43, %c0_44] : memref<32x1xf32, #tpu.memory_space<vmem>>, vector<32x1xf32>
    %73 = vector.broadcast %72 : vector<32x1xf32> to vector<32x256xf32>
    %74 = arith.mulf %71, %73 : vector<32x256xf32>
    %c0_45 = arith.constant 0 : index
    %c0_46 = arith.constant 0 : index
    %75 = vector.load %arg4[%c0_45, %c0_46] : memref<32x1xf32, #tpu.memory_space<vmem>>, vector<32x1xf32>
    %76 = vector.broadcast %75 : vector<32x1xf32> to vector<32x256xf32>
    %77 = arith.addf %74, %76 : vector<32x256xf32>
    %cst_47 = arith.constant 0.000000e+00 : f32
    %78 = vector.broadcast %cst_47 : f32 to vector<32x256xf32>
    %79 = arith.maximumf %77, %78 : vector<32x256xf32>
    %c0_48 = arith.constant 0 : index
    %c0_49 = arith.constant 0 : index
    %80 = vector.load %arg5[%c0_48, %c0_49] : memref<32x32xbf16, #tpu.memory_space<vmem>>, vector<32x32xbf16>
    %81 = arith.truncf %79 : vector<32x256xf32> to vector<32x256xbf16>
    %cst_50 = arith.constant dense<0.000000e+00> : vector<32x256xf32>
    %82 = tpu.matmul %80, %81, %cst_50 {dimension_numbers = #tpu.dot_dimension_numbers<[1], [0], [0], [1], [0, 0, 1, 1], [], []>} : vector<32x32xbf16>, vector<32x256xbf16>, vector<32x256xf32> -> vector<32x256xf32>
    %c0_51 = arith.constant 0 : index
    %c0_52 = arith.constant 0 : index
    %83 = vector.load %arg6[%c0_51, %c0_52] : memref<32x1xf32, #tpu.memory_space<vmem>>, vector<32x1xf32>
    %84 = vector.broadcast %83 : vector<32x1xf32> to vector<32x256xf32>
    %85 = arith.mulf %82, %84 : vector<32x256xf32>
    %c0_53 = arith.constant 0 : index
    %c0_54 = arith.constant 0 : index
    %86 = vector.load %arg7[%c0_53, %c0_54] : memref<32x1xf32, #tpu.memory_space<vmem>>, vector<32x1xf32>
    %87 = vector.broadcast %86 : vector<32x1xf32> to vector<32x256xf32>
    %88 = arith.addf %85, %87 : vector<32x256xf32>
    %cst_55 = arith.constant 0.000000e+00 : f32
    %89 = vector.broadcast %cst_55 : f32 to vector<32x256xf32>
    %90 = arith.maximumf %88, %89 : vector<32x256xf32>
    %91 = arith.truncf %90 : vector<32x256xf32> to vector<32x256xbf16>
    %c0_56 = arith.constant 0 : index
    %c0_57 = arith.constant 0 : index
    %c0_58 = arith.constant 0 : index
    %92 = vector.load %arg8[%c0_56, %c0_57, %c0_58] : memref<1x32x256xbf16, #tpu.memory_space<vmem>>, vector<1x32x256xbf16>
    %93 = vector.shape_cast %92 : vector<1x32x256xbf16> to vector<32x256xbf16>
    %94 = vector.shape_cast %91 : vector<32x256xbf16> to vector<1x32x256xbf16>
    tpu.vector_store %arg8[%c0_56, %c0_57, %c0_58], %94 {strides = array<i32>} : memref<1x32x256xbf16, #tpu.memory_space<vmem>>, vector<1x32x256xbf16>,
    return
  }
  func.func @transform_0(%arg0: i32) -> (i32, i32, i32) {
    %c0_i32 = arith.constant 0 : i32
    %c0_i32_0 = arith.constant 0 : i32
    %c0_i32_1 = arith.constant 0 : i32
    return %arg0, %c0_i32, %c0_i32_0 : i32, i32, i32
  }
  func.func @transform_1(%arg0: i32) -> (i32, i32) {
    %c0_i32 = arith.constant 0 : i32
    %c0_i32_0 = arith.constant 0 : i32
    %c0_i32_1 = arith.constant 0 : i32
    return %c0_i32, %c0_i32_0 : i32, i32
  }
  func.func @transform_2(%arg0: i32) -> (i32, i32) {
    %c0_i32 = arith.constant 0 : i32
    %c0_i32_0 = arith.constant 0 : i32
    %c0_i32_1 = arith.constant 0 : i32
    return %c0_i32, %c0_i32_0 : i32, i32
  }
  func.func @transform_3(%arg0: i32) -> (i32, i32) {
    %c0_i32 = arith.constant 0 : i32
    %c0_i32_0 = arith.constant 0 : i32
    %c0_i32_1 = arith.constant 0 : i32
    return %c0_i32, %c0_i32_0 : i32, i32
  }
  func.func @transform_4(%arg0: i32) -> (i32, i32) {
    %c0_i32 = arith.constant 0 : i32
    %c0_i32_0 = arith.constant 0 : i32
    %c0_i32_1 = arith.constant 0 : i32
    return %c0_i32, %c0_i32_0 : i32, i32
  }
  func.func @transform_5(%arg0: i32) -> (i32, i32) {
    %c0_i32 = arith.constant 0 : i32
    %c0_i32_0 = arith.constant 0 : i32
    %c0_i32_1 = arith.constant 0 : i32
    return %c0_i32, %c0_i32_0 : i32, i32
  }
  func.func @transform_6(%arg0: i32) -> (i32, i32) {
    %c0_i32 = arith.constant 0 : i32
    %c0_i32_0 = arith.constant 0 : i32
    %c0_i32_1 = arith.constant 0 : i32
    return %c0_i32, %c0_i32_0 : i32, i32
  }
  func.func @transform_7(%arg0: i32) -> (i32, i32, i32) {
    %c0_i32 = arith.constant 0 : i32
    %c0_i32_0 = arith.constant 0 : i32
    %c0_i32_1 = arith.constant 0 : i32
    return %arg0, %c0_i32, %c0_i32_0 : i32, i32, i32
  }
}

module attributes {stable_mosaic.version = 11 : i64} {
  func.func @_conv3x3_bn_relu_kernel(%arg0: i32, %arg1: memref<1x32x256xbf16, #tpu.memory_space<vmem>>, %arg2: memref<32x288xbf16, #tpu.memory_space<vmem>>, %arg3: memref<32x1xf32, #tpu.memory_space<vmem>>, %arg4: memref<32x1xf32, #tpu.memory_space<vmem>>, %arg5: memref<1x32x256xbf16, #tpu.memory_space<vmem>>, %arg6: memref<32x290xbf16, #tpu.memory_space<vmem>>, %arg7: memref<288x256xbf16, #tpu.memory_space<vmem>>) attributes {dimension_semantics = [#tpu.dimension_semantics<parallel>], iteration_bounds = array<i64: 2>, scalar_prefetch = 0 : i64, scratch_operands = 2 : i64, tpu.core_type = #tpu.core_type<tc>, window_params = [{transform_indices = @transform_0, window_bounds = array<i64: 1, 32, 256>}, {pipeline_mode = #tpu.pipeline_mode<synchronous>, transform_indices = @transform_1, window_bounds = array<i64: 32, 288>}, {pipeline_mode = #tpu.pipeline_mode<synchronous>, transform_indices = @transform_2, window_bounds = array<i64: 32, 1>}, {pipeline_mode = #tpu.pipeline_mode<synchronous>, transform_indices = @transform_3, window_bounds = array<i64: 32, 1>}, {transform_indices = @transform_4, window_bounds = array<i64: 1, 32, 256>}]} {
    %c0 = arith.constant 0 : index
    %c0_0 = arith.constant 0 : index
    %c0_1 = arith.constant 0 : index
    %0 = vector.load %arg1[%c0, %c0_0, %c0_1] : memref<1x32x256xbf16, #tpu.memory_space<vmem>>, vector<1x32x256xbf16>
    %1 = vector.shape_cast %0 : vector<1x32x256xbf16> to vector<32x256xbf16>
    %cst = arith.constant 0.000000e+00 : bf16
    %2 = vector.broadcast %cst : bf16 to vector<32x17xbf16>
    %c0_2 = arith.constant 0 : index
    %c0_3 = arith.constant 0 : index
    %3 = vector.load %arg6[%c0_2, %c0_3] : memref<32x290xbf16, #tpu.memory_space<vmem>>, vector<32x17xbf16>
    tpu.vector_store %arg6[%c0_2, %c0_3], %2 {strides = array<i32>} : memref<32x290xbf16, #tpu.memory_space<vmem>>, vector<32x17xbf16>,
    %c0_4 = arith.constant 0 : index
    %c273 = arith.constant 273 : index
    %4 = vector.load %arg6[%c0_4, %c273] : memref<32x290xbf16, #tpu.memory_space<vmem>>, vector<32x17xbf16>
    tpu.vector_store %arg6[%c0_4, %c273], %2 {strides = array<i32>} : memref<32x290xbf16, #tpu.memory_space<vmem>>, vector<32x17xbf16>,
    %c0_5 = arith.constant 0 : index
    %c17 = arith.constant 17 : index
    %5 = vector.load %arg6[%c0_5, %c17] : memref<32x290xbf16, #tpu.memory_space<vmem>>, vector<32x256xbf16>
    tpu.vector_store %arg6[%c0_5, %c17], %1 {strides = array<i32>} : memref<32x290xbf16, #tpu.memory_space<vmem>>, vector<32x256xbf16>,
    %6 = tpu.iota {dimensions = array<i32: 1>} : vector<1x256xi32>
    %c16_i32 = arith.constant 16 : i32
    %c0_i32 = arith.constant 0 : i32
    %7 = arith.cmpi eq, %c16_i32, %c0_i32 : i32
    %c1_i32 = arith.constant 1 : i32
    %8 = arith.select %7, %c1_i32, %c16_i32 : i32
    %9 = vector.broadcast %8 : i32 to vector<1x256xi32>
    %10 = arith.remsi %6, %9 : vector<1x256xi32>
    %c0_i32_6 = arith.constant 0 : i32
    %11 = vector.broadcast %c0_i32_6 : i32 to vector<1x256xi32>
    %12 = arith.cmpi ne, %10, %11 : vector<1x256xi32>
    %c0_i32_7 = arith.constant 0 : i32
    %13 = vector.broadcast %c0_i32_7 : i32 to vector<1x256xi32>
    %14 = arith.cmpi slt, %10, %13 : vector<1x256xi32>
    %c0_i32_8 = arith.constant 0 : i32
    %15 = arith.cmpi slt, %8, %c0_i32_8 : i32
    %16 = vector.broadcast %15 : i1 to vector<1x256xi1>
    %17 = vector.broadcast %16 : vector<1x256xi1> to vector<1x256xi1>
    %18 = arith.xori %14, %17 : vector<1x256xi1>
    %19 = arith.andi %18, %12 : vector<1x256xi1>
    %20 = vector.broadcast %8 : i32 to vector<1x256xi32>
    %21 = arith.addi %10, %20 : vector<1x256xi32>
    %22 = arith.select %19, %21, %10 : vector<1x256xi1>, vector<1x256xi32>
    %c1_i32_9 = arith.constant 1 : i32
    %23 = vector.broadcast %c1_i32_9 : i32 to vector<1x256xi32>
    %24 = arith.cmpi sge, %22, %23 : vector<1x256xi32>
    %c15_i32 = arith.constant 15 : i32
    %25 = vector.broadcast %c15_i32 : i32 to vector<1x256xi32>
    %26 = arith.cmpi slt, %22, %25 : vector<1x256xi32>
    %c0_10 = arith.constant 0 : index
    %c0_11 = arith.constant 0 : index
    %27 = vector.load %arg6[%c0_10, %c0_11] : memref<32x290xbf16, #tpu.memory_space<vmem>>, vector<32x256xbf16>
    %cst_12 = arith.constant 0.000000e+00 : bf16
    %28 = vector.broadcast %cst_12 : bf16 to vector<32x256xbf16>
    %29 = vector.shape_cast %24 : vector<1x256xi1> to vector<1x256xi1>
    %30 = vector.broadcast %29 : vector<1x256xi1> to vector<32x256xi1>
    %31 = arith.select %30, %27, %28 : vector<32x256xi1>, vector<32x256xbf16>
    %c0_13 = arith.constant 0 : index
    %c0_14 = arith.constant 0 : index
    %32 = vector.load %arg7[%c0_13, %c0_14] : memref<288x256xbf16, #tpu.memory_space<vmem>>, vector<32x256xbf16>
    tpu.vector_store %arg7[%c0_13, %c0_14], %31 {strides = array<i32>} : memref<288x256xbf16, #tpu.memory_space<vmem>>, vector<32x256xbf16>,
    %c0_15 = arith.constant 0 : index
    %c1 = arith.constant 1 : index
    %33 = vector.load %arg6[%c0_15, %c1] : memref<32x290xbf16, #tpu.memory_space<vmem>>, vector<32x256xbf16>
    %c32 = arith.constant 32 : index
    %c0_16 = arith.constant 0 : index
    %34 = vector.load %arg7[%c32, %c0_16] : memref<288x256xbf16, #tpu.memory_space<vmem>>, vector<32x256xbf16>
    tpu.vector_store %arg7[%c32, %c0_16], %33 {strides = array<i32>} : memref<288x256xbf16, #tpu.memory_space<vmem>>, vector<32x256xbf16>,
    %c0_17 = arith.constant 0 : index
    %c2 = arith.constant 2 : index
    %35 = vector.load %arg6[%c0_17, %c2] : memref<32x290xbf16, #tpu.memory_space<vmem>>, vector<32x256xbf16>
    %cst_18 = arith.constant 0.000000e+00 : bf16
    %36 = vector.broadcast %cst_18 : bf16 to vector<32x256xbf16>
    %37 = vector.shape_cast %26 : vector<1x256xi1> to vector<1x256xi1>
    %38 = vector.broadcast %37 : vector<1x256xi1> to vector<32x256xi1>
    %39 = arith.select %38, %35, %36 : vector<32x256xi1>, vector<32x256xbf16>
    %c64 = arith.constant 64 : index
    %c0_19 = arith.constant 0 : index
    %40 = vector.load %arg7[%c64, %c0_19] : memref<288x256xbf16, #tpu.memory_space<vmem>>, vector<32x256xbf16>
    tpu.vector_store %arg7[%c64, %c0_19], %39 {strides = array<i32>} : memref<288x256xbf16, #tpu.memory_space<vmem>>, vector<32x256xbf16>,
    %c0_20 = arith.constant 0 : index
    %c16 = arith.constant 16 : index
    %41 = vector.load %arg6[%c0_20, %c16] : memref<32x290xbf16, #tpu.memory_space<vmem>>, vector<32x256xbf16>
    %cst_21 = arith.constant 0.000000e+00 : bf16
    %42 = vector.broadcast %cst_21 : bf16 to vector<32x256xbf16>
    %43 = vector.shape_cast %24 : vector<1x256xi1> to vector<1x256xi1>
    %44 = vector.broadcast %43 : vector<1x256xi1> to vector<32x256xi1>
    %45 = arith.select %44, %41, %42 : vector<32x256xi1>, vector<32x256xbf16>
    %c96 = arith.constant 96 : index
    %c0_22 = arith.constant 0 : index
    %46 = vector.load %arg7[%c96, %c0_22] : memref<288x256xbf16, #tpu.memory_space<vmem>>, vector<32x256xbf16>
    tpu.vector_store %arg7[%c96, %c0_22], %45 {strides = array<i32>} : memref<288x256xbf16, #tpu.memory_space<vmem>>, vector<32x256xbf16>,
    %c0_23 = arith.constant 0 : index
    %c17_24 = arith.constant 17 : index
    %47 = vector.load %arg6[%c0_23, %c17_24] : memref<32x290xbf16, #tpu.memory_space<vmem>>, vector<32x256xbf16>
    %c128 = arith.constant 128 : index
    %c0_25 = arith.constant 0 : index
    %48 = vector.load %arg7[%c128, %c0_25] : memref<288x256xbf16, #tpu.memory_space<vmem>>, vector<32x256xbf16>
    tpu.vector_store %arg7[%c128, %c0_25], %47 {strides = array<i32>} : memref<288x256xbf16, #tpu.memory_space<vmem>>, vector<32x256xbf16>,
    %c0_26 = arith.constant 0 : index
    %c18 = arith.constant 18 : index
    %49 = vector.load %arg6[%c0_26, %c18] : memref<32x290xbf16, #tpu.memory_space<vmem>>, vector<32x256xbf16>
    %cst_27 = arith.constant 0.000000e+00 : bf16
    %50 = vector.broadcast %cst_27 : bf16 to vector<32x256xbf16>
    %51 = vector.shape_cast %26 : vector<1x256xi1> to vector<1x256xi1>
    %52 = vector.broadcast %51 : vector<1x256xi1> to vector<32x256xi1>
    %53 = arith.select %52, %49, %50 : vector<32x256xi1>, vector<32x256xbf16>
    %c160 = arith.constant 160 : index
    %c0_28 = arith.constant 0 : index
    %54 = vector.load %arg7[%c160, %c0_28] : memref<288x256xbf16, #tpu.memory_space<vmem>>, vector<32x256xbf16>
    tpu.vector_store %arg7[%c160, %c0_28], %53 {strides = array<i32>} : memref<288x256xbf16, #tpu.memory_space<vmem>>, vector<32x256xbf16>,
    %c0_29 = arith.constant 0 : index
    %c32_30 = arith.constant 32 : index
    %55 = vector.load %arg6[%c0_29, %c32_30] : memref<32x290xbf16, #tpu.memory_space<vmem>>, vector<32x256xbf16>
    %cst_31 = arith.constant 0.000000e+00 : bf16
    %56 = vector.broadcast %cst_31 : bf16 to vector<32x256xbf16>
    %57 = vector.shape_cast %24 : vector<1x256xi1> to vector<1x256xi1>
    %58 = vector.broadcast %57 : vector<1x256xi1> to vector<32x256xi1>
    %59 = arith.select %58, %55, %56 : vector<32x256xi1>, vector<32x256xbf16>
    %c192 = arith.constant 192 : index
    %c0_32 = arith.constant 0 : index
    %60 = vector.load %arg7[%c192, %c0_32] : memref<288x256xbf16, #tpu.memory_space<vmem>>, vector<32x256xbf16>
    tpu.vector_store %arg7[%c192, %c0_32], %59 {strides = array<i32>} : memref<288x256xbf16, #tpu.memory_space<vmem>>, vector<32x256xbf16>,
    %c0_33 = arith.constant 0 : index
    %c33 = arith.constant 33 : index
    %61 = vector.load %arg6[%c0_33, %c33] : memref<32x290xbf16, #tpu.memory_space<vmem>>, vector<32x256xbf16>
    %c224 = arith.constant 224 : index
    %c0_34 = arith.constant 0 : index
    %62 = vector.load %arg7[%c224, %c0_34] : memref<288x256xbf16, #tpu.memory_space<vmem>>, vector<32x256xbf16>
    tpu.vector_store %arg7[%c224, %c0_34], %61 {strides = array<i32>} : memref<288x256xbf16, #tpu.memory_space<vmem>>, vector<32x256xbf16>,
    %c0_35 = arith.constant 0 : index
    %c34 = arith.constant 34 : index
    %63 = vector.load %arg6[%c0_35, %c34] : memref<32x290xbf16, #tpu.memory_space<vmem>>, vector<32x256xbf16>
    %cst_36 = arith.constant 0.000000e+00 : bf16
    %64 = vector.broadcast %cst_36 : bf16 to vector<32x256xbf16>
    %65 = vector.shape_cast %26 : vector<1x256xi1> to vector<1x256xi1>
    %66 = vector.broadcast %65 : vector<1x256xi1> to vector<32x256xi1>
    %67 = arith.select %66, %63, %64 : vector<32x256xi1>, vector<32x256xbf16>
    %c256 = arith.constant 256 : index
    %c0_37 = arith.constant 0 : index
    %68 = vector.load %arg7[%c256, %c0_37] : memref<288x256xbf16, #tpu.memory_space<vmem>>, vector<32x256xbf16>
    tpu.vector_store %arg7[%c256, %c0_37], %67 {strides = array<i32>} : memref<288x256xbf16, #tpu.memory_space<vmem>>, vector<32x256xbf16>,
    %c0_38 = arith.constant 0 : index
    %c0_39 = arith.constant 0 : index
    %69 = vector.load %arg2[%c0_38, %c0_39] : memref<32x288xbf16, #tpu.memory_space<vmem>>, vector<32x288xbf16>
    %c0_40 = arith.constant 0 : index
    %c0_41 = arith.constant 0 : index
    %70 = vector.load %arg7[%c0_40, %c0_41] : memref<288x256xbf16, #tpu.memory_space<vmem>>, vector<288x256xbf16>
    %cst_42 = arith.constant dense<0.000000e+00> : vector<32x256xf32>
    %71 = tpu.matmul %69, %70, %cst_42 {dimension_numbers = #tpu.dot_dimension_numbers<[1], [0], [0], [1], [0, 0, 1, 1], [], []>} : vector<32x288xbf16>, vector<288x256xbf16>, vector<32x256xf32> -> vector<32x256xf32>
    %c0_43 = arith.constant 0 : index
    %c0_44 = arith.constant 0 : index
    %72 = vector.load %arg3[%c0_43, %c0_44] : memref<32x1xf32, #tpu.memory_space<vmem>>, vector<32x1xf32>
    %73 = vector.broadcast %72 : vector<32x1xf32> to vector<32x256xf32>
    %74 = arith.mulf %71, %73 : vector<32x256xf32>
    %c0_45 = arith.constant 0 : index
    %c0_46 = arith.constant 0 : index
    %75 = vector.load %arg4[%c0_45, %c0_46] : memref<32x1xf32, #tpu.memory_space<vmem>>, vector<32x1xf32>
    %76 = vector.broadcast %75 : vector<32x1xf32> to vector<32x256xf32>
    %77 = arith.addf %74, %76 : vector<32x256xf32>
    %cst_47 = arith.constant 0.000000e+00 : f32
    %78 = vector.broadcast %cst_47 : f32 to vector<32x256xf32>
    %79 = arith.maximumf %77, %78 : vector<32x256xf32>
    %80 = arith.truncf %79 : vector<32x256xf32> to vector<32x256xbf16>
    %c0_48 = arith.constant 0 : index
    %c0_49 = arith.constant 0 : index
    %c0_50 = arith.constant 0 : index
    %81 = vector.load %arg5[%c0_48, %c0_49, %c0_50] : memref<1x32x256xbf16, #tpu.memory_space<vmem>>, vector<1x32x256xbf16>
    %82 = vector.shape_cast %81 : vector<1x32x256xbf16> to vector<32x256xbf16>
    %83 = vector.shape_cast %80 : vector<32x256xbf16> to vector<1x32x256xbf16>
    tpu.vector_store %arg5[%c0_48, %c0_49, %c0_50], %83 {strides = array<i32>} : memref<1x32x256xbf16, #tpu.memory_space<vmem>>, vector<1x32x256xbf16>,
    return
  }
  func.func @transform_0(%arg0: i32) -> (i32, i32, i32) {
    %c0_i32 = arith.constant 0 : i32
    %c0_i32_0 = arith.constant 0 : i32
    %c0_i32_1 = arith.constant 0 : i32
    return %arg0, %c0_i32, %c0_i32_0 : i32, i32, i32
  }
  func.func @transform_1(%arg0: i32) -> (i32, i32) {
    %c0_i32 = arith.constant 0 : i32
    %c0_i32_0 = arith.constant 0 : i32
    %c0_i32_1 = arith.constant 0 : i32
    return %c0_i32, %c0_i32_0 : i32, i32
  }
  func.func @transform_2(%arg0: i32) -> (i32, i32) {
    %c0_i32 = arith.constant 0 : i32
    %c0_i32_0 = arith.constant 0 : i32
    %c0_i32_1 = arith.constant 0 : i32
    return %c0_i32, %c0_i32_0 : i32, i32
  }
  func.func @transform_3(%arg0: i32) -> (i32, i32) {
    %c0_i32 = arith.constant 0 : i32
    %c0_i32_0 = arith.constant 0 : i32
    %c0_i32_1 = arith.constant 0 : i32
    return %c0_i32, %c0_i32_0 : i32, i32
  }
  func.func @transform_4(%arg0: i32) -> (i32, i32, i32) {
    %c0_i32 = arith.constant 0 : i32
    %c0_i32_0 = arith.constant 0 : i32
    %c0_i32_1 = arith.constant 0 : i32
    return %arg0, %c0_i32, %c0_i32_0 : i32, i32, i32
  }
}

module attributes {stable_mosaic.version = 11 : i64} {
  func.func @_aggregate_kernel(%arg0: i32, %arg1: i32, %arg2: memref<64x256xbf16, #tpu.memory_space<vmem>>, %arg3: memref<64x256xf32, #tpu.memory_space<vmem>>, %arg4: memref<64x256xf32, #tpu.memory_space<vmem>>, %arg5: memref<64x256xf32, #tpu.memory_space<vmem>>) attributes {dimension_semantics = [#tpu.dimension_semantics<parallel>, #tpu.dimension_semantics<parallel>], iteration_bounds = array<i64: 1, 1>, scalar_prefetch = 0 : i64, scratch_operands = 0 : i64, tpu.core_type = #tpu.core_type<tc>, window_params = [{transform_indices = @transform_0, window_bounds = array<i64: 64, 256>}, {transform_indices = @transform_1, window_bounds = array<i64: 64, 256>}, {transform_indices = @transform_2, window_bounds = array<i64: 64, 256>}, {transform_indices = @transform_3, window_bounds = array<i64: 64, 256>}]} {
    %c0 = arith.constant 0 : index
    %c0_0 = arith.constant 0 : index
    %0 = vector.load %arg2[%c0, %c0_0] : memref<64x256xbf16, #tpu.memory_space<vmem>>, vector<64x256xbf16>
    %1 = arith.extf %0 : vector<64x256xbf16> to vector<64x256xf32>
    %c0_1 = arith.constant 0 : index
    %c0_2 = arith.constant 0 : index
    %2 = vector.load %arg3[%c0_1, %c0_2] : memref<64x256xf32, #tpu.memory_space<vmem>>, vector<64x256xf32>
    %3 = arith.addf %1, %2 : vector<64x256xf32>
    %cst = arith.constant 5.000000e-01 : f32
    %4 = vector.broadcast %cst : f32 to vector<64x256xf32>
    %5 = arith.mulf %3, %4 : vector<64x256xf32>
    %c0_3 = arith.constant 0 : index
    %c0_4 = arith.constant 0 : index
    %6 = vector.load %arg4[%c0_3, %c0_4] : memref<64x256xf32, #tpu.memory_space<vmem>>, vector<64x256xf32>
    %7 = arith.addf %5, %6 : vector<64x256xf32>
    %c0_5 = arith.constant 0 : index
    %c0_6 = arith.constant 0 : index
    %8 = vector.load %arg5[%c0_5, %c0_6] : memref<64x256xf32, #tpu.memory_space<vmem>>, vector<64x256xf32>
    tpu.vector_store %arg5[%c0_5, %c0_6], %7 {strides = array<i32>} : memref<64x256xf32, #tpu.memory_space<vmem>>, vector<64x256xf32>,
    return
  }
  func.func @transform_0(%arg0: i32, %arg1: i32) -> (i32, i32) {
    %c0_i32 = arith.constant 0 : i32
    return %arg0, %arg1 : i32, i32
  }
  func.func @transform_1(%arg0: i32, %arg1: i32) -> (i32, i32) {
    %c0_i32 = arith.constant 0 : i32
    return %arg0, %arg1 : i32, i32
  }
  func.func @transform_2(%arg0: i32, %arg1: i32) -> (i32, i32) {
    %c0_i32 = arith.constant 0 : i32
    return %arg0, %arg1 : i32, i32
  }
  func.func @transform_3(%arg0: i32, %arg1: i32) -> (i32, i32) {
    %c0_i32 = arith.constant 0 : i32
    return %arg0, %arg1 : i32, i32
  }
}

</mosaic_0001>

<bundles_post_ra>
// kernel: mfms_attention_block.11
= control target key start
LH: loop header
LB: loop body
LE: loop exit
PB: predicated region body
PF: predicated region fallthrough
CT: control target
= control target key end

     0   :  { %13 = vsyncpa [#allocation3], 0  ;;  %s953_s27 = smov 0   ;;  %s1083_s0 = inlined_call_operand.vmem [shape: bf16[2,16,64], index: 0, kind: input, shape index: {}]   ;;  %s1084_s1 = inlined_call_operand.vmem [shape: f32[1,64], index: 1, kind: input, shape index: {}]   ;;  %s1085_s2 = inlined_call_operand.vmem [shape: f32[4,64], index: 2, kind: input, shape index: {}]   ;;  %s1086_s3 = inlined_call_operand.vmem [shape: f32[4,64], index: 3, kind: input, shape index: {}]   ;;  %s1087_s4 = inlined_call_operand.vmem [shape: f32[1,16], index: 4, kind: input, shape index: {}]   ;;  %s1088_s5 = inlined_call_operand.vmem [shape: f32[16,1], index: 5, kind: input, shape index: {}]   ;;  %s1089_s6 = inlined_call_operand.vmem [shape: f32[16,1], index: 6, kind: input, shape index: {}]   ;;  %s1090_s7 = inlined_call_operand.vmem [shape: f32[2], index: 7, kind: input, shape index: {}]   ;;  %s1091_s8 = inlined_call_operand.vmem [shape: bf16[2,16,64], index: 8, kind: output, shape index: {}]  }
   0x1 LB: > { %s783_s28 = sadd.s32 4294967295, %s902_s27   ;;  %p785_p0 = scmp.ge.s32.totalorder %s902_s27, 1  ;;  %s902_s27 = sphi %s953_s27, %s19_s27  }
   0x2   : > { %p223_p1 = scmp.lt.s32.totalorder %s902_s27, 3  ;;  %s254_s9 = sshll.u32 %s1090_s7, 4  ;;  %s255_s9 = int_to_ptr.vmem [resolvable:$true] %s254_s9 }
   0x3   : > { %p849_p3 = scmp.eq.s32.totalorder %s783_s28, 0  ;;  %s877_s11 = scalar_lea.vmem %s255_s9, 16 }
   0x4   : > { %p964_p2 = pnand %p785_p0, %p223_p1  ;;  %p878_p6 = scmp.ne.s32.totalorder %s255_s9, %s877_s11 }
   0x5   : > { %p885_p10 = scmp.lt.s32.totalorder %s255_s9, %s255_s9  ;;  %p886_p11 = scmp.lt.s32.totalorder %s877_s11, %s877_s11 }
   0x6   : > { %p845_p4 = pneg %p964_p2 }
   0x7   : > { %p887_p12 = por %p886_p11, %p885_p10 }
   0x8   : > { %p846_p5 = pnand %p849_p3, %p845_p4 }
   0xa   : > { %p879_p7 = pneg %p846_p5 }
   0xc   : > { %p880_p8 = pnand %p879_p7, %p878_p6 }
   0xe   : > { %p881_p9 = pneg %p880_p8 }
  0x10   : > { %p888_p13 = pnand %p887_p12, %p881_p9 }
  0x12   : > { %891 = shalt.err (!%p888_p13)
}
  0x13   : > { %s904_s12 = smov [#allocation2]   ;;  %275 = sbr.rel (%p964_p2) target bundleno = 839 (0x347), region = 52 }
  0x14   : > { %848 = dma.vmem_to_smem (!%p846_p5), %s255_s9, 16, %s904_s12, [#allocation3]  }
  0x18   : > { %897 = dma.done.wait (%p849_p3), [#allocation3], 16  }
  0x19   : > { %899 = vsyncadd (%p849_p3), [#allocation3], 4294967280 }
  0x1a   : > { %281 = sfence }
  0x1b   : > { %p310_p0 = scmp.lt.s32.totalorder %s783_s28, 1  ;;  %v795_v0 = vld [vmem:[%s1085_s2] ss:$0 sm:$0xff]  ;;  %v797_v3 = vld [vmem:[%s1085_s2 + $0x1] ss:$0 sm:$0xff]  ;;  %vm333_vm0 = vcmask 523264  }
  0x1c   : > { %v796_v1 = vld [vmem:[%s1086_s3] ss:$0 sm:$0xff]  ;;  %v798_v4 = vld [vmem:[%s1086_s3 + $0x1] ss:$0 sm:$0xff]  ;;  %v799_v19 = vld [vmem:[%s1085_s2 + $0x2] ss:$0 sm:$0xff] }
  0x1d   : > { %s1094_s28 = smov (!%p310_p0, %s783_s28), 1  ;;  %v800_v20 = vld [vmem:[%s1086_s3 + $0x2] ss:$0 sm:$0xff]  ;;  %v801_v33 = vld [vmem:[%s1085_s2 + $0x3] ss:$0 sm:$0xff]  ;;  %vm906_vm1 = vmmov 0  }
  0x1e   : > { %s815_s13 = sshll.u32 %s1094_s28, 3  ;;  %v802_v34 = vld [vmem:[%s1086_s3 + $0x3] ss:$0 sm:$0xff]  ;;  %v794_v53 = vld [vmem:[%s1084_s1] ss:$0 sm:$0xff]  ;;  %vm476_vm2 = vcmask 7168  }
  0x1f   : > { %s314_s16 = scalar_lea.vmem %s1083_s0, %s815_s13  ;;  %vm479_vm3 = vcmask 15360   ;;  %vm483_vm4 = vcmask 130048   ;;  %vm566_vm5 = vcmask 1040384   ;;  %vm645_vm6 = vcmask 23552   ;;  %s695_s26 = sld [smem:[#allocation2]] }
  0x20   : > { %v820_v2 = vld [vmem:[%s314_s16] sm:$0xff]   ;;  %s810_s29 = sld [smem:[#allocation2 + $0x1]]  ;;  %s319_s10 = scalar_lea.vmem %s1091_s8, %s815_s13  ;;  %vm713_vm7 = vcmask 519168  }
  0x21   : > { %v995_v5 = vunpack.c.h.bf16 %v820_v2  ;;  %v997_v6 = vunpack.c.l.bf16 %v820_v2 }
  0x23   : > { %v346_v7 = vmul.f32 %v995_v5, %v795_v0  ;;  %v353_v8 = vmul.f32 %v995_v5, %v796_v1  ;;  %v380_v9 = vmul.f32 %v995_v5, %v797_v3  ;;  %v387_v10 = vmul.f32 %v995_v5, %v798_v4 }
  0x24   : > { %v379_v11 = vmul.f32 %v997_v6, %v797_v3  ;;  %v386_v12 = vmul.f32 %v997_v6, %v798_v4  ;;  %v345_v13 = vmul.f32 %v997_v6, %v795_v0  ;;  %v352_v14 = vmul.f32 %v997_v6, %v796_v1 }
  0x25   : > { %v365_v15 = vmin.f32 %v346_v7, %v353_v8  ;;  %v355_v16 = vmax.f32 %v346_v7, %v353_v8  ;;  %v399_v17 = vmin.f32 %v380_v9, %v387_v10  ;;  %v389_v18 = vmax.f32 %v380_v9, %v387_v10 }
  0x26   : > { %v388_v23 = vmax.f32 %v379_v11, %v386_v12  ;;  %v354_v24 = vmax.f32 %v345_v13, %v352_v14  ;;  %v414_v27 = vmul.f32 %v995_v5, %v799_v19  ;;  %v421_v28 = vmul.f32 %v995_v5, %v800_v20 }
  0x27   : > { %v369_v21 = vsel %vm333_vm0, %v365_v15, inf  ;;  %v359_v22 = vsel %vm333_vm0, %v355_v16, -inf  ;;  %v403_v25 = vsel %vm333_vm0, %v399_v17, inf  ;;  %v393_v26 = vsel %vm333_vm0, %v389_v18, -inf }
  0x28   : > { %370 = vmin.xlane.f32.xlu1 %v369_v21  ;;  %360 = vmax.xlane.f32.xlu0 %v359_v22  ;;  %v364_v29 = vmin.f32 %v345_v13, %v352_v14  ;;  %v390_v30 = vsel %vm333_vm0, %v388_v23, -inf  ;;  %v356_v31 = vsel %vm333_vm0, %v354_v24, -inf  ;;  %v423_v32 = vmax.f32 %v414_v27, %v421_v28 }
  0x29   : > { %v398_v36 = vmin.f32 %v379_v11, %v386_v12  ;;  %v448_v37 = vmul.f32 %v995_v5, %v801_v33  ;;  %v455_v38 = vmul.f32 %v995_v5, %v802_v34  ;;  %v433_v40 = vmin.f32 %v414_v27, %v421_v28 }
  0x2a   : > { %v366_v35 = vsel %vm333_vm0, %v364_v29, inf  ;;  %v427_v39 = vsel %vm333_vm0, %v423_v32, -inf  ;;  %v413_v41 = vmul.f32 %v997_v6, %v799_v19  ;;  %v420_v42 = vmul.f32 %v997_v6, %v800_v20 }
  0x2b   : > { %v437_v43 = vsel %vm333_vm0, %v433_v40, inf  ;;  %v400_v44 = vsel %vm333_vm0, %v398_v36, inf  ;;  %v457_v45 = vmax.f32 %v448_v37, %v455_v38  ;;  %v467_v47 = vmin.f32 %v448_v37, %v455_v38  ;;  %v482_v36 = vld [vmem:[%s1087_s4] sm:$0x1] }
  0x2c   : > { %404 = vmin.xlane.f32.xlu1 %v403_v25  ;;  %394 = vmax.xlane.f32.xlu0 %v393_v26  ;;  %v422_v46 = vmax.f32 %v413_v41, %v420_v42  ;;  %v447_v48 = vmul.f32 %v997_v6, %v801_v33  ;;  %v432_v51 = vmin.f32 %v413_v41, %v420_v42  ;;  %v905_v0 = vmov 0.0   ;;  %v558_v38 = vld [vmem:[%s1088_s5] sm:$0xff]  ;;  %v559_v42 = vld [vmem:[%s1088_s5 + $0x8] sm:$0xff] }
  0x2d   : > { %v461_v49 = vsel %vm333_vm0, %v457_v45, -inf  ;;  %v454_v52 = vmul.f32 %v997_v6, %v802_v34  ;;  %v471_v54 = vsel %vm333_vm0, %v467_v47, inf  ;;  %v332_v57 = vmul.f32 %v995_v5, %v794_v53  ;;  %829 = vmatprep.subr.mxu0 %v905_v0  ;;  %833 = vmatprep.mubr.msk.f32.mxu0 %vm906_vm1, %v905_v0 }
  0x2e   : > { %v424_v50 = vsel %vm333_vm0, %v422_v46, -inf  ;;  %v434_v55 = vsel %vm333_vm0, %v432_v51, inf  ;;  %v331_v61 = vmul.f32 %v997_v6, %v794_v53  ;;  %838 = vmatprep.mubr.msk.f32.mxu1 %vm476_vm2, %v558_v38 }
  0x2f   : > { %v456_v56 = vmax.f32 %v447_v48, %v454_v52  ;;  %v337_v59 = vsel %vm333_vm0, %v332_v57, 0.0  ;;  %v466_v60 = vmin.f32 %v447_v48, %v454_v52  ;;  %v667_v48 = vld [vmem:[%s1089_s6 + $0x8] sm:$0xff] }
  0x30   : > { %391 = vmax.xlane.f32.xlu1 %v390_v30  ;;  %357 = vmax.xlane.f32.xlu0 %v356_v31  ;;  %v334_v63 = vsel %vm333_vm0, %v331_v61, 0.0 }
  0x31   : > { %v458_v58 = vsel %vm333_vm0, %v456_v56, -inf  ;;  %v468_v62 = vsel %vm333_vm0, %v466_v60, inf }
  0x34   : > { %367 = vmin.xlane.f32.xlu1 %v366_v35  ;;  %428 = vmax.xlane.f32.xlu0 %v427_v39 }
  0x38   : > { %438 = vmin.xlane.f32.xlu1 %v437_v43  ;;  %401 = vmin.xlane.f32.xlu0 %v400_v44  ;;  %v907_v43 = vmov 0  }
  0x39   : > { %864 = vset.pattern.permute.xlu1 %v907_v43  ;;  %863 = vset.pattern.permute.xlu0 %v907_v43 }
  0x3c   : > { %462 = vmax.xlane.f32.xlu1 %v461_v49  ;;  %425 = vmax.xlane.f32.xlu0 %v424_v50  ;;  %v666_v49 = vld [vmem:[%s1089_s6] sm:$0xff] }
  0x40   : > { %472 = vmin.xlane.f32.xlu1 %v471_v54  ;;  %435 = vmin.xlane.f32.xlu0 %v434_v55 }
  0x44   : > { %459 = vmax.xlane.f32.xlu1 %v458_v58  ;;  %338 = vadd.xlane.f32.xlu0 %v337_v59 }
  0x48   : > { %469 = vmin.xlane.f32.xlu0 %v468_v62  ;;  %335 = vadd.xlane.f32.xlu1 %v334_v63 }
  0xb1   : > { %v371_v1 = vpop.xlane.xlu1 %370  ;;  %v361_v2 = vpop.xlane.xlu0 %360 }
  0xb5   : > { %v405_v3 = vpop.xlane.xlu1 %404  ;;  %v395_v4 = vpop.xlane.xlu0 %394 }
  0xb6   : > { %v397_v15 = vadd.f32 %v395_v4, %v361_v2  ;;  %v407_v16 = vadd.f32 %v405_v3, %v371_v1 }
  0xb9   : > { %v392_v7 = vpop.xlane.xlu1 %391  ;;  %v358_v8 = vpop.xlane.xlu0 %357 }
  0xba   : > { %v396_v21 = vadd.f32 %v392_v7, %v358_v8 }
  0xbd   : > { %v368_v9 = vpop.xlane.xlu1 %367  ;;  %v429_v10 = vpop.xlane.xlu0 %428 }
  0xbe   : > { %v431_v19 = vadd.f32 %v429_v10, %v397_v15  ;;  %v698_v15 = vstv %s695_s26 }
  0xc1   : > { %v439_v11 = vpop.xlane.xlu1 %438  ;;  %v402_v12 = vpop.xlane.xlu0 %401 }
  0xc2   : > { %v441_v20 = vadd.f32 %v439_v11, %v407_v16  ;;  %v406_v26 = vadd.f32 %v402_v12, %v368_v9  ;;  %v700_v16 = vstv %s810_s29 }
  0xc5   : > { %v463_v13 = vpop.xlane.xlu1 %462  ;;  %v426_v14 = vpop.xlane.xlu0 %425 }
  0xc6   : > { %v465_v22 = vadd.f32 %v463_v13, %v431_v19  ;;  %v430_v27 = vadd.f32 %v426_v14, %v396_v21 }
  0xc9   : > { %v473_v17 = vpop.xlane.xlu1 %472  ;;  %v436_v18 = vpop.xlane.xlu0 %435 }
  0xca   : > { %v475_v23 = vadd.f32 %v473_v17, %v441_v20  ;;  %v440_v30 = vadd.f32 %v436_v18, %v406_v26 }
  0xcd   : > { %v460_v24 = vpop.xlane.xlu1 %459  ;;  %v339_v25 = vpop.xlane.xlu0 %338 }
  0xce   : > { %v478_v28 = vsel %vm476_vm2, %v339_v25, %v465_v22  ;;  %v464_v31 = vadd.f32 %v460_v24, %v430_v27 }
  0xcf   : > { %v481_v29 = vsel %vm479_vm3, %v478_v28, %v475_v23 }
  0xd0   : > { %830 = vmatpush3.msra.mxu0 %v481_v29 }
  0xd1   : > { %v470_v32 = vpop.xlane.xlu0 %469  ;;  %v336_v33 = vpop.xlane.xlu1 %335  ;;  %831 = vmatprep.subr.mxu0 %v905_v0 }
  0xd2   : > { %v474_v34 = vadd.f32 %v470_v32, %v440_v30  ;;  %v477_v35 = vsel %vm476_vm2, %v336_v33, %v464_v31 }
  0xd4   : > { %v480_v37 = vsel %vm479_vm3, %v477_v35, %v474_v34 }
  0xd5   : > { %832 = vmatpush3.msra.mxu0 %v480_v37 }
  0xd6   : > { %834 = vmatmul.mubr.msk.f32.vlgmr.msra.gmra.mxu0 %vm483_vm4, %v482_v36 }
 0x196   : > { %v553_v39 = vpop.f32.mrf.mxu0 }
 0x197   : > { %v557_v40 = vmax.f32 %v553_v39, 0.0 }
 0x198   : > { %v835_v41 = vpop.f32.mrf.mxu0 }
 0x199   : > { %836 = vmatprep.subr.msk.mxu1 %vm566_vm5, %v557_v40 }
 0x19a   : > { %837 = vmatpush3.msk.msra.mxu1 %vm566_vm5, %v557_v40 }
 0x19b   : > { %839 = vmatmul.mubr.msk.f32.vlgmr.msra.gmra.mxu1 %vm476_vm2, %v559_v42 }
 0x25b   : > { %v840_v44 = vpop.f32.mrf.mxu1 }
 0x25c   : > { %v649_v45 = vsel %vm645_vm6, %v840_v44, 0.0 }
 0x25d   : > { %650 = vadd.xlane.f32.xlu1 %v649_v45  ;;  %v636_v46 = vpop.f32.mrf.mxu1 }
 0x25e   : > { %v646_v47 = vsel %vm645_vm6, %v636_v46, 0.0 }
 0x25f   : > { %647 = vadd.xlane.f32.xlu0 %v646_v47 }
 0x26e   : > { %675 = vperm.xlu1 %864, %v667_v48  }
 0x275   : > { %670 = vperm.xlu0 %863, %v666_v49  }
 0x2e6   : > { %v651_v50 = vpop.xlane.xlu1 %650 }
 0x2e7   : > { %v808_v51 = vmul.f32 -1.442695, %v651_v50 }
 0x2e8   : > { %v648_v52 = vpop.xlane.xlu0 %647 }
 0x2e9   : > { %865 = vpow2.f32 %v808_v51  ;;  %v807_v53 = vmul.f32 -1.442695, %v648_v52 }
 0x2ea   : > { %v676_v59 = vpop.permute.xlu1 %675 }
 0x2eb   : > { %867 = vpow2.f32 %v807_v53 }
 0x2f0   : > { %v671_v62 = vpop.permute.xlu0 %670 }
 0x2f6   : > { %v866_v54 = vpop.eup %865 }
 0x2f7   : > { %v659_v55 = vadd.f32 1.0, %v866_v54 }
 0x2f8   : > { %v868_v56 = vpop.eup %867 }
 0x2f9   : > { %869 = vrcp.f32 %v659_v55  ;;  %v658_v57 = vadd.f32 1.0, %v868_v56 }
 0x2fb   : > { %871 = vrcp.f32 %v658_v57 }
 0x306   : > { %v870_v58 = vpop.eup %869 }
 0x307   : > { %v665_v60 = vmul.f32 %v870_v58, %v995_v5 }
 0x308   : > { %v872_v61 = vpop.eup %871 }
 0x309   : > { %v679_v63 = vmul.f32 %v676_v59, %v665_v60  ;;  %v664_v0 = vmul.f32 %v872_v61, %v997_v6 }
 0x30b   : > { %v678_v1 = vmul.f32 %v671_v62, %v664_v0  ;;  %v681_v2 = vsel %vm333_vm0, %v679_v63, 0.0 }
 0x30d   : > { %v680_v3 = vsel %vm333_vm0, %v678_v1, 0.0 }
 0x30e   : > { %v682_v4 = vadd.f32 %v681_v2, %v680_v3 }
 0x310   : > { %v683_v7 = vrot.slane %v682_v4, 4 }
 0x312   : > { %v684_v8 = vadd.f32 %v683_v7, %v682_v4 }
 0x314   : > { %v685_v9 = vrot.slane %v684_v8, 2 }
 0x316   : > { %v686_v10 = vadd.f32 %v685_v9, %v684_v8 }
 0x318   : > { %v687_v11 = vrot.slane %v686_v10, 1 }
 0x31a   : > { %v688_v12 = vadd.f32 %v687_v11, %v686_v10 }
 0x31c   : > { %v809_v13 = vmul.f32 -1.442695, %v688_v12 }
 0x31e   : > { %873 = vpow2.f32 %v809_v13 }
 0x32b   : > { %v874_v5 = vpop.eup %873 }
 0x32c   : > { %v692_v14 = vadd.f32 1.0, %v874_v5 }
 0x32e   : > { %875 = vrcp.f32 %v692_v14 }
 0x33b   : > { %v876_v6 = vpop.eup %875 }
 0x33c   : > { %v697_v17 = vsub.f32 1.0, %v876_v6  ;;  %v701_v19 = vmul.f32 %v876_v6, %v700_v16 }
 0x33e   : > { %v699_v18 = vmul.f32 %v698_v15, %v697_v17 }
 0x340   : > { %v702_v20 = vadd.f32 %v701_v19, %v699_v18 }
 0x342   : > { %v703_v21 = vmul.f32 %v702_v20, %v664_v0  ;;  %v704_v22 = vmul.f32 %v702_v20, %v665_v60 }
 0x344   : > { %v817_v23 = vpack.c.bf16 %v703_v21, %v703_v21  ;;  %v818_v24 = vpack.c.bf16 %v704_v22, %v704_v22 }
 0x346   : > { %714 = vst.msk [vmem:[%s319_s10] sm:$0xf] %vm713_vm7, %v817_v23  ;;  %715 = vst.msk [vmem:[%s319_s10 + $0x4] sm:$0xf] %vm713_vm7, %v818_v24 }
 0x347 PF: > { %s19_s27 = sadd.s32 1, %s902_s27  }
 0x348   : > { %p16_p1 = scmp.ge.s32.totalorder %s19_s27, 4  }
 0x34a   :  { %18 = sbr.rel (!%p16_p1) target bundleno = 1 (0x1), region = 87 }
 0x34f   :  { %737 = vsyncpa [#allocation3], 1 }
 0x350   :  { %739 = vsyncpa [#allocation3 + $0x1], 1 }

// kernel: mfms_attention_block.10
= control target key start
LH: loop header
LB: loop body
LE: loop exit
PB: predicated region body
PF: predicated region fallthrough
CT: control target
= control target key end

     0   :  { %s1291_s24 = smov 0   ;;  %s1444_s0 = inlined_call_operand.vmem [shape: bf16[2,32,64], index: 0, kind: input, shape index: {}]   ;;  %s1445_s1 = inlined_call_operand.vmem [shape: bf16[32,288], index: 1, kind: input, shape index: {}]   ;;  %s1446_s2 = inlined_call_operand.vmem [shape: f32[32,1], index: 2, kind: input, shape index: {}]   ;;  %s1447_s3 = inlined_call_operand.vmem [shape: f32[32,1], index: 3, kind: input, shape index: {}]   ;;  %s1448_s4 = inlined_call_operand.vmem [shape: bf16[16,32], index: 4, kind: input, shape index: {}]   ;;  %s1449_s5 = inlined_call_operand.vmem [shape: f32[16,1], index: 5, kind: input, shape index: {}]   ;;  %s1450_s6 = inlined_call_operand.vmem [shape: f32[16,1], index: 6, kind: input, shape index: {}]   ;;  %s1451_s7 = inlined_call_operand.vmem [shape: bf16[2,16,64], index: 7, kind: output, shape index: {}]  }
   0x1 LB: > { %s1076_s25 = sadd.s32 4294967295, %s1232_s24   ;;  %p1080_p0 = scmp.ge.s32.totalorder %s1232_s24, 1  ;;  %s1232_s24 = sphi %s1291_s24, %s17_s24  }
   0x2   : > { %p237_p1 = scmp.lt.s32.totalorder %s1232_s24, 3 }
   0x4   : > { %p238_p2 = pnand %p1080_p0, %p237_p1 }
   0x5   : > { %p269_p3 = scmp.lt.s32.totalorder (!%p238_p2), %s1076_s25, 1  ;;  %s1235_s30 = smov (!%p238_p2), 18  }
   0x6   : > { %241 = sbr.rel (%p238_p2) target bundleno = 754 (0x2f2), region = 48  ;;  %s1236_s8 = smov (!%p238_p2), 16  }
   0x7   : > { %s1237_s9 = smov (!%p238_p2), 32   ;;  %s1238_s10 = smov (!%p238_p2), 4  }
   0x8   : > { %s1239_s11 = smov (!%p238_p2), 20   ;;  %s1240_s12 = smov (!%p238_p2), 36  }
   0x9   : > { %s1241_s13 = smov (!%p238_p2), 94   ;;  %s1242_s14 = smov (!%p238_p2), 126  }
   0xa   : > { %s1243_s15 = smov (!%p238_p2), 112   ;;  %s1244_s16 = smov (!%p238_p2), 96  }
   0xb   : > { %v317_v0 = vlaneseq  ;;  %vm286_vm0 = vcmask 142336   ;;  %vm291_vm1 = vcmask 814736   ;;  %v1234_v1 = vmov 0   ;;  %s1455_s25 = smov (!%p269_p3, %s1076_s25), 1  ;;  %s1245_s17 = smov 124  }
   0xc   : > { %289 = vst.msk [vmem:[#allocation2 + $0x8] sm:$0xf] %vm286_vm0, %v1234_v1  ;;  %287 = vst.msk [vmem:[#allocation2] sm:$0xf] %vm286_vm0, %v1234_v1  ;;  %1197 = vset.pattern.permute.xlu1 %v1234_v1  ;;  %1198 = vset.pattern.permute.xlu0 %v1234_v1  ;;  %s1117_s26 = sshll.u32 %s1455_s25, 4  ;;  %vm312_vm6 = vcmask 666768  }
   0xd   : > { %288 = vst.msk [vmem:[#allocation2 + $0x4] sm:$0xf] %vm286_vm0, %v1234_v1  ;;  %290 = vst.msk [vmem:[#allocation2 + $0xc] sm:$0xf] %vm286_vm0, %v1234_v1  ;;  %v318_v2 = vand.u32 127, %v317_v0  ;;  %s273_s29 = scalar_lea.vmem %s1444_s0, %s1117_s26  ;;  %vm344_vm7 = vcmask 519168  }
   0xe   : > { %294 = vst.msk [vmem:[#allocation2 + $0x8] sm:$0xf] %vm291_vm1, %v1234_v1  ;;  %292 = vst.msk [vmem:[#allocation2] sm:$0xf] %vm291_vm1, %v1234_v1  ;;  %v284_v4 = vld [vmem:[%s273_s29 + $0x8] sm:$0xf] }
   0xf   : > { %293 = vst.msk [vmem:[#allocation2 + $0x4] sm:$0xf] %vm291_vm1, %v1234_v1  ;;  %295 = vst.msk [vmem:[#allocation2 + $0xc] sm:$0xf] %vm291_vm1, %v1234_v1  ;;  %v323_v3 = vand.u32 7, %v318_v2  ;;  %304 = vrot.lane.b32.xlu0 %v284_v4, %s1235_s30  ;;  %s1246_s18 = smov 108  }
  0x10   : > { %v282_v5 = vld [vmem:[%s273_s29] sm:$0xf]  ;;  %v285_v6 = vld [vmem:[%s273_s29 + $0xc] sm:$0xf]  ;;  %v283_v7 = vld [vmem:[%s273_s29 + $0x4] sm:$0xf] }
  0x11   : > { %300 = vrot.lane.b32.xlu1 %v282_v5, %s1235_s30  ;;  %vm331_vm2 = vcmp.ge.s32.totalorder %v323_v3, 2  ;;  %vm332_vm4 = vcmp.lt.s32.totalorder %v323_v3, 6  ;;  %s1247_s19 = smov 110   ;;  %s1248_s22 = smov 92   ;;  %vm763_vm13 = vcmask 261120   ;;  %vm1250_vm14 = vmmov 0  }
  0x12   : > { %vm1305_vm3 = vmpackc.low %vm331_vm2, %vm331_vm2 }
  0x13   : > { %306 = vrot.lane.b32.xlu0 %v285_v6, %s1235_s30  ;;  %v412_v9 = vsel %vm1305_vm3, 65537, %v1234_v1  ;;  %vm379_vm5 = vmpackc.low %vm332_vm4, %vm332_vm4 }
  0x14   : > { %v380_v10 = vsel %vm379_vm5, 65537, %v1234_v1 }
  0x15   : > { %302 = vrot.lane.b32.xlu1 %v283_v7, %s1235_s30  ;;  %v1217_v7 = vld [vmem:[%s1445_s1 + $0x4] ss:$12 sps:$4 sm:$0xff]  }
  0x16   : > { %802 = vmatprep.mubr.bf16.mxu0 %v1217_v7 }
  0x17   : > { %413 = vrot.lane.b32.xlu0 %v412_v9, %s1236_s8 }
  0x19   : > { %499 = vrot.lane.b32.xlu1 %v412_v9, %s1237_s9 }
  0x1b   : > { %381 = vrot.lane.b32.xlu0 %v380_v10, %s1238_s10 }
  0x1d   : > { %468 = vrot.lane.b32.xlu1 %v380_v10, %s1239_s11 }
  0x1f   : > { %554 = vrot.lane.b32.xlu0 %v380_v10, %s1240_s12 }
  0x81   : > { %v305_v11 = vpop.permute.xlu0 %304 }
  0x82   : > { %315 = vst.msk [vmem:[#allocation2 + $0x8] sm:$0xf] %vm312_vm6, %v305_v11 }
  0x83   : > { %v301_v12 = vpop.permute.xlu1 %300 }
  0x84   : > { %313 = vst.msk [vmem:[#allocation2] sm:$0xf] %vm312_vm6, %v301_v12 }
  0x85   : > { %v307_v13 = vpop.permute.xlu0 %306 }
  0x86   : > { %316 = vst.msk [vmem:[#allocation2 + $0xc] sm:$0xf] %vm312_vm6, %v307_v13 }
  0x87   : > { %v303_v14 = vpop.permute.xlu1 %302 }
  0x88   : > { %314 = vst.msk [vmem:[#allocation2 + $0x4] sm:$0xf] %vm312_vm6, %v303_v14 }
  0x89   : > { %v335_v15 = vld [vmem:[#allocation2 + $0x8] sm:$0xf]  ;;  %v414_v28 = vpop.permute.xlu0 %413 }
  0x8a   : > { %v528_v17 = vld [vmem:[#allocation2 + $0x8] sm:$0xf]  ;;  %v342_v18 = vsel %vm1305_vm3, %v335_v15, 0  ;;  %vm415_vm8 = vcmp.ne.s16.totalorder %v414_v28, 0 }
  0x8b   : > { %v333_v16 = vld [vmem:[#allocation2] sm:$0xf]  ;;  %538 = vrot.lane.b32.xlu1 %v528_v17, %s1241_s13  ;;  %347 = vst.msk [vmem:[#allocation3 + $0x8] sm:$0xf] %vm344_vm7, %v342_v18  ;;  %v351_v27 = vld [vmem:[#allocation2 + $0x8] sm:$0xf]  ;;  %v500_v36 = vpop.permute.xlu1 %499 }
  0x8c   : > { %v340_v19 = vsel %vm1305_vm3, %v333_v16, 0  ;;  %v526_v20 = vld [vmem:[#allocation2] sm:$0xf]  ;;  %v410_v31 = vld [vmem:[#allocation2 + $0x8] sm:$0xf]  ;;  %vm501_vm9 = vcmp.ne.s16.totalorder %v500_v36, 0 }
  0x8d   : > { %345 = vst.msk [vmem:[#allocation3] sm:$0xf] %vm344_vm7, %v340_v19  ;;  %v336_v21 = vld [vmem:[#allocation2 + $0xc] sm:$0xf]  ;;  %v349_v29 = vld [vmem:[#allocation2] sm:$0xf]  ;;  %v382_v41 = vpop.permute.xlu0 %381 }
  0x8e   : > { %v529_v23 = vld [vmem:[#allocation2 + $0xc] sm:$0xf]  ;;  %v343_v24 = vsel %vm1305_vm3, %v336_v21, 0  ;;  %v418_v32 = vsel %vm415_vm8, %v410_v31, 0  ;;  %v408_v34 = vld [vmem:[#allocation2] sm:$0xf] }
  0x8f   : > { %v334_v22 = vld [vmem:[#allocation2 + $0x4] sm:$0xf]  ;;  %540 = vrot.lane.b32.xlu0 %v529_v23, %s1241_s13  ;;  %534 = vrot.lane.b32.xlu1 %v526_v20, %s1241_s13  ;;  %348 = vst.msk [vmem:[#allocation3 + $0xc] sm:$0xf] %vm344_vm7, %v343_v24  ;;  %v352_v30 = vld [vmem:[#allocation2 + $0xc] sm:$0xf]  ;;  %v469_v54 = vpop.permute.xlu1 %468 }
  0x90   : > { %v341_v25 = vsel %vm1305_vm3, %v334_v22, 0  ;;  %v527_v26 = vld [vmem:[#allocation2 + $0x4] sm:$0xf]  ;;  %v411_v35 = vld [vmem:[#allocation2 + $0xc] sm:$0xf]  ;;  %v416_v37 = vsel %vm415_vm8, %v408_v34, 0 }
  0x91   : > { %346 = vst.msk [vmem:[#allocation3 + $0x4] sm:$0xf] %vm344_vm7, %v341_v25  ;;  %v350_v33 = vld [vmem:[#allocation2 + $0x4] sm:$0xf]  ;;  %v419_v38 = vsel %vm415_vm8, %v411_v35, 0  ;;  %vm383_vm10 = vcmp.ne.s16.totalorder %v382_v41, 0  ;;  %v555_v4 = vpop.permute.xlu0 %554 }
  0x92   : > { %v409_v39 = vld [vmem:[#allocation2 + $0x4] sm:$0xf]  ;;  %v497_v40 = vld [vmem:[#allocation2 + $0x8] sm:$0xf]  ;;  %v498_v44 = vld [vmem:[#allocation2 + $0xc] sm:$0xf] }
  0x93   : > { %361 = vrot.lane.b32.xlu1 %v351_v27, %s1242_s14  ;;  %536 = vrot.lane.b32.xlu0 %v527_v26, %s1241_s13  ;;  %v417_v42 = vsel %vm415_vm8, %v409_v39, 0  ;;  %v504_v43 = vsel %vm501_vm9, %v497_v40, 0  ;;  %v375_v45 = vld [vmem:[#allocation2 + $0x8] sm:$0xf]  ;;  %v505_v46 = vsel %vm501_vm9, %v498_v44, 0  ;;  %vm470_vm11 = vcmp.ne.s16.totalorder %v469_v54, 0 }
  0x94   : > { %v386_v47 = vsel %vm383_vm10, %v375_v45, 0  ;;  %v376_v48 = vld [vmem:[#allocation2 + $0xc] sm:$0xf]  ;;  %v495_v49 = vld [vmem:[#allocation2] sm:$0xf]  ;;  %vm556_vm12 = vcmp.ne.s16.totalorder %v555_v4, 0 }
  0x95   : > { %v387_v50 = vsel %vm383_vm10, %v376_v48, 0  ;;  %v502_v51 = vsel %vm501_vm9, %v495_v49, 0  ;;  %v496_v52 = vld [vmem:[#allocation2 + $0x4] sm:$0xf]  ;;  %v373_v53 = vld [vmem:[#allocation2] sm:$0xf] }
  0x96   : > { %v503_v55 = vsel %vm501_vm9, %v496_v52, 0  ;;  %v384_v56 = vsel %vm383_vm10, %v373_v53, 0  ;;  %v374_v57 = vld [vmem:[#allocation2 + $0x4] sm:$0xf]  ;;  %v466_v58 = vld [vmem:[#allocation2 + $0x8] sm:$0xf] }
  0x97   : > { %357 = vrot.lane.b32.xlu1 %v349_v29, %s1242_s14  ;;  %363 = vrot.lane.b32.xlu0 %v352_v30, %s1242_s14  ;;  %v385_v59 = vsel %vm383_vm10, %v374_v57, 0  ;;  %v473_v60 = vsel %vm470_vm11, %v466_v58, 0  ;;  %v467_v61 = vld [vmem:[#allocation2 + $0xc] sm:$0xf]  ;;  %v464_v62 = vld [vmem:[#allocation2] sm:$0xf] }
  0x98   : > { %v474_v63 = vsel %vm470_vm11, %v467_v61, 0  ;;  %v471_v0 = vsel %vm470_vm11, %v464_v62, 0  ;;  %v465_v1 = vld [vmem:[#allocation2 + $0x4] sm:$0xf]  ;;  %v442_v3 = vld [vmem:[#allocation2 + $0x8] sm:$0xf] }
  0x99   : > { %v472_v2 = vsel %vm470_vm11, %v465_v1, 0  ;;  %v443_v5 = vld [vmem:[#allocation2 + $0xc] sm:$0xf]  ;;  %v440_v6 = vld [vmem:[#allocation2] sm:$0xf]  ;;  %v870_v18 = vld [vmem:[%s1446_s2 + $0x10] sm:$0xff] }
  0x9a   : > { %v552_v8 = vld [vmem:[#allocation2 + $0x8] sm:$0xf]  ;;  %v441_v9 = vld [vmem:[#allocation2 + $0x4] sm:$0xf]  ;;  %v553_v11 = vld [vmem:[#allocation2 + $0xc] sm:$0xf] }
  0x9b   : > { %428 = vrot.lane.b32.xlu1 %v418_v32, %s1243_s15  ;;  %359 = vrot.lane.b32.xlu0 %v350_v33, %s1242_s14  ;;  %v559_v10 = vsel %vm556_vm12, %v552_v8, 0  ;;  %v550_v12 = vld [vmem:[#allocation2] sm:$0xf]  ;;  %v560_v13 = vsel %vm556_vm12, %v553_v11, 0  ;;  %v551_v15 = vld [vmem:[#allocation2 + $0x4] sm:$0xf] }
  0x9c   : > { %v557_v14 = vsel %vm556_vm12, %v550_v12, 0  ;;  %v1222_v16 = vld [vmem:[%s1445_s1 + $0x8] ss:$12 sps:$4 sm:$0xff]   ;;  %v558_v17 = vsel %vm556_vm12, %v551_v15, 0  ;;  %v871_v19 = vld [vmem:[%s1446_s2 + $0x18] sm:$0xff]  ;;  %v868_v21 = vld [vmem:[%s1446_s2] sm:$0xff] }
  0x9d   : > { %1160 = vmatprep.mubr.msk.bf16.mxu1 %vm763_vm13, %v1222_v16  ;;  %v898_v20 = vld [vmem:[%s1447_s3 + $0x10] sm:$0xff]  ;;  %v899_v22 = vld [vmem:[%s1447_s3 + $0x18] sm:$0xff]  ;;  %v896_v23 = vld [vmem:[%s1447_s3] sm:$0xff] }
  0x9e   : > { %v869_v24 = vld [vmem:[%s1446_s2 + $0x8] sm:$0xff]  ;;  %v981_v25 = vld [vmem:[%s1449_s5] sm:$0xff] }
  0x9f   : > { %424 = vrot.lane.b32.xlu1 %v416_v37, %s1243_s15  ;;  %430 = vrot.lane.b32.xlu0 %v419_v38, %s1243_s15  ;;  %v897_v26 = vld [vmem:[%s1447_s3 + $0x8] sm:$0xff]  ;;  %v995_v27 = vld [vmem:[%s1450_s6] sm:$0xff] }
  0xa0   : > { %v982_v28 = vld [vmem:[%s1449_s5 + $0x8] sm:$0xff] }
  0xa1   : > { %v996_v29 = vld [vmem:[%s1450_s6 + $0x8] sm:$0xff] }
  0xa2   : > { %v1220_v15 = vld [vmem:[%s1445_s1 + $0x1c] ss:$12 sps:$4 sm:$0xff]  }
  0xa3   : > { %426 = vrot.lane.b32.xlu0 %v417_v42, %s1243_s15  ;;  %514 = vrot.lane.b32.xlu1 %v504_v43, %s1244_s16 }
  0xa7   : > { %516 = vrot.lane.b32.xlu0 %v505_v46, %s1244_s16  ;;  %396 = vrot.lane.b32.xlu1 %v386_v47, %s1245_s17 }
  0xab   : > { %398 = vrot.lane.b32.xlu0 %v387_v50, %s1245_s17  ;;  %510 = vrot.lane.b32.xlu1 %v502_v51, %s1244_s16 }
  0xaf   : > { %512 = vrot.lane.b32.xlu0 %v503_v55, %s1244_s16  ;;  %392 = vrot.lane.b32.xlu1 %v384_v56, %s1245_s17 }
  0xb3   : > { %394 = vrot.lane.b32.xlu0 %v385_v59, %s1245_s17  ;;  %483 = vrot.lane.b32.xlu1 %v473_v60, %s1246_s18  ;;  %s1118_s17 = sshll.u32 %s1455_s25, 3 }
  0xb4   : > { %s278_s20 = scalar_lea.vmem %s1451_s7, %s1118_s17 }
  0xb7   : > { %485 = vrot.lane.b32.xlu0 %v474_v63, %s1246_s18  ;;  %479 = vrot.lane.b32.xlu1 %v471_v0, %s1246_s18 }
  0xbb   : > { %481 = vrot.lane.b32.xlu0 %v472_v2, %s1246_s18  ;;  %452 = vrot.lane.b32.xlu1 %v442_v3, %s1247_s19 }
  0xbf   : > { %454 = vrot.lane.b32.xlu0 %v443_v5, %s1247_s19  ;;  %448 = vrot.lane.b32.xlu1 %v440_v6, %s1247_s19 }
  0xc3   : > { %450 = vrot.lane.b32.xlu0 %v441_v9, %s1247_s19  ;;  %569 = vrot.lane.b32.xlu1 %v559_v10, %s1248_s22  ;;  %v1212_v10 = vld [vmem:[#allocation3 + $0x8] sm:$0xff]  }
  0xc7   : > { %571 = vrot.lane.b32.xlu0 %v560_v13, %s1248_s22  ;;  %565 = vrot.lane.b32.xlu1 %v557_v14, %s1248_s22  ;;  %v1214_v13 = vld [vmem:[#allocation3] sm:$0xff]   ;;  %v1215_v14 = vld [vmem:[%s1445_s1] ss:$12 sps:$4 sm:$0xff]  }
  0xcb   : > { %567 = vrot.lane.b32.xlu0 %v558_v17, %s1248_s22  ;;  %884 = vperm.xlu1 %1197, %v870_v18   ;;  %v1223_v18 = vld [vmem:[%s1445_s1 + $0x18] ss:$12 sps:$4 sm:$0xff]  }
  0xcf   : > { %889 = vperm.xlu0 %1198, %v871_v19   ;;  %912 = vperm.xlu1 %1197, %v898_v20   ;;  %v1224_v19 = vld [vmem:[%s1445_s1 + $0x20] ss:$12 sps:$4 sm:$0xff]   ;;  %v1249_v20 = vmov 0.0  }
  0xd3   : > { %874 = vperm.xlu0 %1198, %v868_v21   ;;  %917 = vperm.xlu1 %1197, %v899_v22  }
  0xd7   : > { %902 = vperm.xlu0 %1198, %v896_v23   ;;  %879 = vperm.xlu1 %1197, %v869_v24  }
  0xdb   : > { %985 = vperm.xlu0 %1198, %v981_v25   ;;  %907 = vperm.xlu1 %1197, %v897_v26  }
  0xdf   : > { %999 = vperm.xlu0 %1198, %v995_v27   ;;  %990 = vperm.xlu1 %1197, %v982_v28  }
  0xe3   : > { %1004 = vperm.xlu1 %1197, %v996_v29  }
  0xfd   : > { %v539_v30 = vpop.permute.xlu1 %538 }
  0xfe   : > { %548 = vst.msk [vmem:[#allocation3 + $0x78] sm:$0xf] %vm344_vm7, %v539_v30 }
 0x101   : > { %v541_v31 = vpop.permute.xlu0 %540  ;;  %v535_v32 = vpop.permute.xlu1 %534 }
 0x102   : > { %549 = vst.msk [vmem:[#allocation3 + $0x7c] sm:$0xf] %vm344_vm7, %v541_v31  ;;  %546 = vst.msk [vmem:[#allocation3 + $0x70] sm:$0xf] %vm344_vm7, %v535_v32 }
 0x105   : > { %v537_v33 = vpop.permute.xlu0 %536  ;;  %v362_v34 = vpop.permute.xlu1 %361 }
 0x106   : > { %547 = vst.msk [vmem:[#allocation3 + $0x74] sm:$0xf] %vm344_vm7, %v537_v33  ;;  %371 = vst.msk [vmem:[#allocation3 + $0x18] sm:$0xf] %vm344_vm7, %v362_v34 }
 0x109   : > { %v364_v35 = vpop.permute.xlu0 %363  ;;  %v358_v36 = vpop.permute.xlu1 %357  ;;  %v1199_v37 = vld [vmem:[#allocation3 + $0x78] sm:$0xff]  }
 0x10a   : > { %372 = vst.msk [vmem:[#allocation3 + $0x1c] sm:$0xf] %vm344_vm7, %v364_v35  ;;  %369 = vst.msk [vmem:[#allocation3 + $0x10] sm:$0xf] %vm344_vm7, %v358_v36  ;;  %1121 = vmatprep.subr.bf16.mxu0 %v1199_v37 }
 0x10d   : > { %v360_v38 = vpop.permute.xlu0 %359  ;;  %v429_v39 = vpop.permute.xlu1 %428  ;;  %v1201_v47 = vld [vmem:[#allocation3 + $0x70] sm:$0xff]  }
 0x10e   : > { %370 = vst.msk [vmem:[#allocation3 + $0x14] sm:$0xf] %vm344_vm7, %v360_v38  ;;  %438 = vst.msk [vmem:[#allocation3 + $0x38] sm:$0xf] %vm344_vm7, %v429_v39 }
 0x111   : > { %v431_v40 = vpop.permute.xlu0 %430  ;;  %v425_v41 = vpop.permute.xlu1 %424  ;;  %v1208_v2 = vld [vmem:[#allocation3 + $0x18] sm:$0xff]  }
 0x112   : > { %439 = vst.msk [vmem:[#allocation3 + $0x3c] sm:$0xf] %vm344_vm7, %v431_v40  ;;  %436 = vst.msk [vmem:[#allocation3 + $0x30] sm:$0xf] %vm344_vm7, %v425_v41 }
 0x115   : > { %v427_v42 = vpop.permute.xlu0 %426  ;;  %v515_v43 = vpop.permute.xlu1 %514  ;;  %v1210_v6 = vld [vmem:[#allocation3 + $0x10] sm:$0xff]  }
 0x116   : > { %437 = vst.msk [vmem:[#allocation3 + $0x34] sm:$0xf] %vm344_vm7, %v427_v42  ;;  %524 = vst.msk [vmem:[#allocation3 + $0x68] sm:$0xf] %vm344_vm7, %v515_v43 }
 0x119   : > { %v517_v44 = vpop.permute.xlu0 %516  ;;  %v397_v45 = vpop.permute.xlu1 %396  ;;  %v1200_v46 = vld [vmem:[#allocation3 + $0x38] sm:$0xff]  }
 0x11a   : > { %525 = vst.msk [vmem:[#allocation3 + $0x6c] sm:$0xf] %vm344_vm7, %v517_v44  ;;  %406 = vst.msk [vmem:[#allocation3 + $0x28] sm:$0xf] %vm344_vm7, %v397_v45  ;;  %1122 = vmatpush3.bf16.msra.mxu0 %v1200_v46 }
 0x11b   : > { %1123 = vmatprep.subr.bf16.mxu0 %v1201_v47 }
 0x11d   : > { %v399_v48 = vpop.permute.xlu0 %398  ;;  %v511_v49 = vpop.permute.xlu1 %510  ;;  %v1202_v50 = vld [vmem:[#allocation3 + $0x30] sm:$0xff]  }
 0x11e   : > { %407 = vst.msk [vmem:[#allocation3 + $0x2c] sm:$0xf] %vm344_vm7, %v399_v48  ;;  %522 = vst.msk [vmem:[#allocation3 + $0x60] sm:$0xf] %vm344_vm7, %v511_v49  ;;  %1124 = vmatpush3.bf16.msra.mxu0 %v1202_v50 }
 0x121   : > { %v513_v51 = vpop.permute.xlu0 %512  ;;  %v393_v52 = vpop.permute.xlu1 %392  ;;  %v1203_v53 = vld [vmem:[#allocation3 + $0x68] sm:$0xff]  }
 0x122   : > { %523 = vst.msk [vmem:[#allocation3 + $0x64] sm:$0xf] %vm344_vm7, %v513_v51  ;;  %404 = vst.msk [vmem:[#allocation3 + $0x20] sm:$0xf] %vm344_vm7, %v393_v52  ;;  %1125 = vmatprep.subr.bf16.mxu0 %v1203_v53 }
 0x125   : > { %v395_v54 = vpop.permute.xlu0 %394  ;;  %v484_v55 = vpop.permute.xlu1 %483  ;;  %v1204_v56 = vld [vmem:[#allocation3 + $0x28] sm:$0xff]  }
 0x126   : > { %405 = vst.msk [vmem:[#allocation3 + $0x24] sm:$0xf] %vm344_vm7, %v395_v54  ;;  %493 = vst.msk [vmem:[#allocation3 + $0x58] sm:$0xf] %vm344_vm7, %v484_v55  ;;  %1126 = vmatpush3.bf16.msra.mxu0 %v1204_v56 }
 0x129   : > { %v486_v57 = vpop.permute.xlu0 %485  ;;  %v480_v58 = vpop.permute.xlu1 %479  ;;  %v1205_v59 = vld [vmem:[#allocation3 + $0x60] sm:$0xff]  }
 0x12a   : > { %494 = vst.msk [vmem:[#allocation3 + $0x5c] sm:$0xf] %vm344_vm7, %v486_v57  ;;  %491 = vst.msk [vmem:[#allocation3 + $0x50] sm:$0xf] %vm344_vm7, %v480_v58  ;;  %1127 = vmatprep.subr.bf16.mxu0 %v1205_v59 }
 0x12d   : > { %v482_v60 = vpop.permute.xlu0 %481  ;;  %v453_v61 = vpop.permute.xlu1 %452  ;;  %v1206_v62 = vld [vmem:[#allocation3 + $0x20] sm:$0xff]  }
 0x12e   : > { %492 = vst.msk [vmem:[#allocation3 + $0x54] sm:$0xf] %vm344_vm7, %v482_v60  ;;  %462 = vst.msk [vmem:[#allocation3 + $0x48] sm:$0xf] %vm344_vm7, %v453_v61  ;;  %1128 = vmatpush3.bf16.msra.mxu0 %v1206_v62 }
 0x131   : > { %v455_v63 = vpop.permute.xlu0 %454  ;;  %v449_v0 = vpop.permute.xlu1 %448  ;;  %v1207_v1 = vld [vmem:[#allocation3 + $0x58] sm:$0xff]  }
 0x132   : > { %463 = vst.msk [vmem:[#allocation3 + $0x4c] sm:$0xf] %vm344_vm7, %v455_v63  ;;  %460 = vst.msk [vmem:[#allocation3 + $0x40] sm:$0xf] %vm344_vm7, %v449_v0  ;;  %1129 = vmatprep.subr.bf16.mxu0 %v1207_v1  ;;  %v1225_v63 = vld [vmem:[%s1448_s4] sm:$0xff]  }
 0x133   : > { %1130 = vmatpush3.bf16.msra.mxu0 %v1208_v2 }
 0x135   : > { %v451_v3 = vpop.permute.xlu0 %450  ;;  %v570_v4 = vpop.permute.xlu1 %569  ;;  %v1209_v5 = vld [vmem:[#allocation3 + $0x50] sm:$0xff]  }
 0x136   : > { %461 = vst.msk [vmem:[#allocation3 + $0x44] sm:$0xf] %vm344_vm7, %v451_v3  ;;  %579 = vst.msk [vmem:[#allocation3 + $0x88] sm:$0xf] %vm344_vm7, %v570_v4  ;;  %1131 = vmatprep.subr.bf16.mxu0 %v1209_v5 }
 0x137   : > { %1132 = vmatpush3.bf16.msra.mxu0 %v1210_v6 }
 0x139   : > { %v572_v7 = vpop.permute.xlu0 %571  ;;  %v566_v8 = vpop.permute.xlu1 %565  ;;  %v1211_v9 = vld [vmem:[#allocation3 + $0x48] sm:$0xff]  }
 0x13a   : > { %580 = vst.msk [vmem:[#allocation3 + $0x8c] sm:$0xf] %vm344_vm7, %v572_v7  ;;  %577 = vst.msk [vmem:[#allocation3 + $0x80] sm:$0xf] %vm344_vm7, %v566_v8  ;;  %1133 = vmatprep.subr.bf16.mxu0 %v1211_v9 }
 0x13b   : > { %1134 = vmatpush3.bf16.msra.mxu0 %v1212_v10 }
 0x13d   : > { %v568_v11 = vpop.permute.xlu0 %567  ;;  %v1213_v12 = vld [vmem:[#allocation3 + $0x40] sm:$0xff]  }
 0x13e   : > { %578 = vst.msk [vmem:[#allocation3 + $0x84] sm:$0xf] %vm344_vm7, %v568_v11  ;;  %1135 = vmatprep.subr.bf16.mxu0 %v1213_v12 }
 0x13f   : > { %1136 = vmatpush3.bf16.msra.mxu0 %v1214_v13 }
 0x141   : > { %v1218_v16 = vld [vmem:[#allocation3 + $0x88] sm:$0xff]  }
 0x142   : > { %803 = vmatmul.mubr.bf16.vlgmr.msra.gmra.mxu0 %v1215_v14  ;;  %1156 = vmatprep.subr.bf16.mxu1 %v1218_v16 }
 0x143   : > { %1157 = vmatpush3.bf16.msra.mxu1 %v1218_v16  ;;  %810 = vmatprep.mubr.bf16.mxu0 %v1220_v15 }
 0x145   : > { %v1219_v17 = vld [vmem:[#allocation3 + $0x80] sm:$0xff]  }
 0x146   : > { %1158 = vmatprep.subr.bf16.mxu1 %v1219_v17  ;;  %v885_v21 = vpop.permute.xlu1 %884 }
 0x147   : > { %1159 = vmatpush3.bf16.msra.mxu1 %v1219_v17 }
 0x148   : > { %1164 = vmatprep.subr.bf16.mxu1 %v1249_v20 }
 0x14a   : > { %811 = vmatmul.mubr.bf16.gmra.mxu0 %v1223_v18  ;;  %1161 = vmatmul.mubr.msk.bf16.vlgmr.msra.gmra.mxu1 %vm763_vm13, %v1224_v19  ;;  %v913_v23 = vpop.permute.xlu1 %912  ;;  %v890_v30 = vpop.permute.xlu0 %889 }
 0x14b   : > { %1168 = vmatprep.mubr.msk.bf16.mxu1 %vm1250_vm14, %v1249_v20 }
 0x14e   : > { %v918_v27 = vpop.permute.xlu1 %917  ;;  %v875_v46 = vpop.permute.xlu0 %874 }
 0x152   : > { %v880_v36 = vpop.permute.xlu1 %879  ;;  %v903_v55 = vpop.permute.xlu0 %902 }
 0x156   : > { %v908_v52 = vpop.permute.xlu1 %907  ;;  %v986_v0 = vpop.permute.xlu0 %985 }
 0x15a   : > { %v991_v1 = vpop.permute.xlu1 %990  ;;  %v1000_v4 = vpop.permute.xlu0 %999 }
 0x15e   : > { %v1005_v10 = vpop.permute.xlu1 %1004 }
 0x202   : > { %v1137_v22 = vpop.f32.mrf.mxu0 }
 0x204   : > { %v1138_v24 = vpop.f32.mrf.mxu0 }
 0x205   : > { %v1139_v37 = vadd.f32 %v1138_v24, %v1137_v22 }
 0x206   : > { %v1140_v25 = vpop.f32.mrf.mxu0 }
 0x208   : > { %v1141_v26 = vpop.f32.mrf.mxu0 }
 0x209   : > { %v1142_v38 = vadd.f32 %v1141_v26, %v1140_v25 }
 0x20a   : > { %v1143_v28 = vpop.f32.mrf.mxu0  ;;  %v1162_v29 = vpop.f32.mrf.mxu1 }
 0x20c   : > { %v1144_v31 = vpop.f32.mrf.mxu0  ;;  %v853_v32 = vpop.f32.mrf.mxu1 }
 0x20d   : > { %v1145_v33 = vadd.f32 %v1144_v31, %v1143_v28  ;;  %v854_v43 = vadd.f32 %v1139_v37, %v853_v32 }
 0x20e   : > { %v1146_v34 = vpop.f32.mrf.mxu0  ;;  %v1163_v35 = vpop.f32.mrf.mxu1 }
 0x20f   : > { %v862_v39 = vadd.f32 %v1162_v29, %v1145_v33  ;;  %v892_v50 = vmul.f32 %v875_v46, %v854_v43 }
 0x210   : > { %v1147_v40 = vpop.f32.mrf.mxu0  ;;  %v856_v41 = vpop.f32.mrf.mxu1 }
 0x211   : > { %v894_v42 = vmul.f32 %v885_v21, %v862_v39  ;;  %v1148_v44 = vadd.f32 %v1147_v40, %v1146_v34  ;;  %v857_v45 = vadd.f32 %v1142_v38, %v856_v41  ;;  %v920_v57 = vadd.f32 %v903_v55, %v892_v50 }
 0x213   : > { %v865_v47 = vadd.f32 %v1163_v35, %v1148_v44  ;;  %v893_v48 = vmul.f32 %v880_v36, %v857_v45  ;;  %v922_v49 = vadd.f32 %v913_v23, %v894_v42  ;;  %v924_v61 = vmax.f32 %v920_v57, 0.0 }
 0x215   : > { %v895_v51 = vmul.f32 %v890_v30, %v865_v47  ;;  %v921_v54 = vadd.f32 %v908_v52, %v893_v48  ;;  %v926_v56 = vmax.f32 %v922_v49, 0.0 }
 0x217   : > { %v923_v53 = vadd.f32 %v918_v27, %v895_v51  ;;  %v925_v59 = vmax.f32 %v921_v54, 0.0 }
 0x219   : > { %v927_v58 = vmax.f32 %v923_v53, 0.0  ;;  %v930_v62 = vpack.c.bf16 %v925_v59, %v924_v61 }
 0x21b   : > { %v931_v60 = vpack.c.bf16 %v927_v58, %v926_v56 }
 0x21d   : > { %1165 = vmatpush3.bf16.msra.mxu1 %v931_v60 }
 0x21e   : > { %1166 = vmatprep.subr.bf16.mxu1 %v1249_v20 }
 0x221   : > { %1167 = vmatpush3.bf16.msra.mxu1 %v930_v62 }
 0x224   : > { %1169 = vmatmul.mubr.msk.bf16.vlgmr.msra.gmra.mxu1 %vm763_vm13, %v1225_v63 }
 0x2e4   : > { %v974_v2 = vpop.f32.mrf.mxu1 }
 0x2e5   : > { %v993_v3 = vmul.f32 %v986_v0, %v974_v2 }
 0x2e6   : > { %v1170_v5 = vpop.f32.mrf.mxu1 }
 0x2e7   : > { %v1007_v6 = vadd.f32 %v1000_v4, %v993_v3 }
 0x2e8   : > { %v977_v7 = vpop.f32.mrf.mxu1 }
 0x2e9   : > { %v1009_v8 = vmax.f32 %v1007_v6, 0.0  ;;  %v994_v9 = vmul.f32 %v991_v1, %v977_v7 }
 0x2ea   : > { %v1171_v11 = vpop.f32.mrf.mxu1 }
 0x2eb   : > { %v1119_v12 = vpack.c.bf16 %v1009_v8, %v1009_v8  ;;  %v1008_v13 = vadd.f32 %v1005_v10, %v994_v9 }
 0x2ed   : > { %1019 = vst.msk [vmem:[%s278_s20] sm:$0xf] %vm344_vm7, %v1119_v12  ;;  %v1010_v14 = vmax.f32 %v1008_v13, 0.0 }
 0x2ef   : > { %v1120_v15 = vpack.c.bf16 %v1010_v14, %v1010_v14 }
 0x2f1   : > { %1020 = vst.msk [vmem:[%s278_s20 + $0x4] sm:$0xf] %vm344_vm7, %v1120_v15 }
 0x2f2 PF: > { %s17_s24 = sadd.s32 1, %s1232_s24  }
 0x2f3   : > { %p14_p4 = scmp.ge.s32.totalorder %s17_s24, 4  }
 0x2f5   :  { %16 = sbr.rel (!%p14_p4) target bundleno = 1 (0x1), region = 78 }

// kernel: mfms_attention_block.12
= control target key start
LH: loop header
LB: loop body
LE: loop exit
PB: predicated region body
PF: predicated region fallthrough
CT: control target
= control target key end

     0   :  { %s799_s15 = smov 0   ;;  %s916_s0 = inlined_call_operand.vmem [shape: bf16[2,16,64], index: 0, kind: input, shape index: {}]   ;;  %s917_s1 = inlined_call_operand.vmem [shape: bf16[32,144], index: 1, kind: input, shape index: {}]   ;;  %s918_s2 = inlined_call_operand.vmem [shape: f32[32,1], index: 2, kind: input, shape index: {}]   ;;  %s919_s3 = inlined_call_operand.vmem [shape: f32[32,1], index: 3, kind: input, shape index: {}]   ;;  %s920_s4 = inlined_call_operand.vmem [shape: bf16[2,32,64], index: 4, kind: output, shape index: {}]  }
   0x1 LB: > { %s657_s16 = sadd.s32 4294967295, %s757_s15   ;;  %p661_p0 = scmp.ge.s32.totalorder %s757_s15, 1  ;;  %s757_s15 = sphi %s799_s15, %s14_s15  }
   0x2   : > { %p162_p1 = scmp.lt.s32.totalorder %s757_s15, 3 }
   0x4   : > { %p163_p2 = pnand %p661_p0, %p162_p1 }
   0x5   : > { %p188_p3 = scmp.lt.s32.totalorder (!%p163_p2), %s657_s16, 1  ;;  %s760_s21 = smov (!%p163_p2), 9  }
   0x6   : > { %166 = sbr.rel (%p163_p2) target bundleno = 507 (0x1fb), region = 36  ;;  %s761_s22 = smov (!%p163_p2), 16  }
   0x7   : > { %s762_s23 = smov (!%p163_p2), 10   ;;  %s763_s24 = smov (!%p163_p2), 8  }
   0x8   : > { %s764_s25 = smov (!%p163_p2), 2   ;;  %s765_s26 = smov (!%p163_p2), 18  }
   0x9   : > { %s766_s27 = smov (!%p163_p2), 111   ;;  %s767_s28 = smov (!%p163_p2), 112  }
   0xa   : > { %s768_s29 = smov (!%p163_p2), 118   ;;  %s769_s30 = smov (!%p163_p2), 119  }
   0xb   : > { %v220_v0 = vlaneseq  ;;  %vm203_vm0 = vcmask 68608   ;;  %vm206_vm1 = vcmask 667208   ;;  %v759_v1 = vmov 0   ;;  %s924_s16 = smov (!%p188_p3, %s657_s16), 1  ;;  %s770_s5 = smov 120   ;;  %v522_v48 = vld [vmem:[%s918_s2] sm:$0xff] }
   0xc   : > { %204 = vst.msk [vmem:[#allocation2] sm:$0xf] %vm203_vm0, %v759_v1  ;;  %205 = vst.msk [vmem:[#allocation2 + $0x4] sm:$0xf] %vm203_vm0, %v759_v1  ;;  %473 = vmatprep.subr.bf16.mxu0 %v759_v1  ;;  %693 = vmatprep.subr.bf16.mxu1 %v759_v1  ;;  %s687_s17 = sshll.u32 %s924_s16, 3  ;;  %vm217_vm6 = vcmask 592968  }
   0xd   : > { %v221_v2 = vand.u32 127, %v220_v0  ;;  %207 = vst.msk [vmem:[#allocation2] sm:$0xf] %vm206_vm1, %v759_v1  ;;  %208 = vst.msk [vmem:[#allocation2 + $0x4] sm:$0xf] %vm206_vm1, %v759_v1  ;;  %734 = vset.pattern.permute.xlu1 %v759_v1  ;;  %735 = vset.pattern.permute.xlu0 %v759_v1  ;;  %s192_s20 = scalar_lea.vmem %s916_s0, %s687_s17  ;;  %vm243_vm7 = vcmask 519168  }
   0xe   : > { %v201_v4 = vld [vmem:[%s192_s20] sm:$0xf]  ;;  %v202_v7 = vld [vmem:[%s192_s20 + $0x4] sm:$0xf]  ;;  %s771_s6 = smov 126   ;;  %s772_s7 = smov 127  }
   0xf   : > { %v226_v3 = vand.u32 7, %v221_v2  ;;  %211 = vrot.lane.b32.xlu0 %v201_v4, %s760_s21  ;;  %s773_s8 = smov 110   ;;  %v747_v46 = vld [vmem:[%s917_s1 + $0x4] ss:$8 sps:$4 sm:$0xff]   ;;  %vm466_vm13 = vcmask 130048   ;;  %v524_v50 = vld [vmem:[%s918_s2 + $0x10] sm:$0xff] }
  0x10   : > { %v750_v47 = vld [vmem:[%s917_s1 + $0x14] ss:$8 sps:$4 sm:$0xff]   ;;  %679 = vmatprep.mubr.msk.bf16.mxu0 %vm466_vm13, %v747_v46  ;;  %v523_v49 = vld [vmem:[%s918_s2 + $0x8] sm:$0xff]  ;;  %v550_v51 = vld [vmem:[%s919_s3] sm:$0xff]  ;;  %s688_s9 = sshll.u32 %s924_s16, 4 }
  0x11   : > { %vm234_vm2 = vcmp.ge.s32.totalorder %v226_v3, 1  ;;  %vm235_vm3 = vcmp.lt.s32.totalorder %v226_v3, 7  ;;  %680 = vmatprep.mubr.msk.bf16.mxu1 %vm466_vm13, %v750_v47  ;;  %v525_v52 = vld [vmem:[%s918_s2 + $0x18] sm:$0xff]  ;;  %v552_v53 = vld [vmem:[%s919_s3 + $0x10] sm:$0xff]  ;;  %v551_v54 = vld [vmem:[%s919_s3 + $0x8] sm:$0xff]  ;;  %s197_s12 = scalar_lea.vmem %s920_s4, %s688_s9 }
  0x12   : > { %vm821_vm4 = vmpackc.low %vm234_vm2, %vm234_vm2  ;;  %v553_v55 = vld [vmem:[%s919_s3 + $0x18] sm:$0xff] }
  0x13   : > { %v281_v6 = vsel %vm821_vm4, 65537, %v759_v1  ;;  %vm262_vm5 = vmpackc.low %vm235_vm3, %vm235_vm3  ;;  %213 = vrot.lane.b32.xlu0 %v202_v7, %s760_s21 }
  0x14   : > { %328 = vrot.lane.b32.xlu1 %v281_v6, %s761_s22  ;;  %v263_v8 = vsel %vm262_vm5, 65537, %v759_v1 }
  0x17   : > { %282 = vrot.lane.b32.xlu0 %v281_v6, %s763_s24 }
  0x18   : > { %311 = vrot.lane.b32.xlu1 %v263_v8, %s762_s23 }
  0x1b   : > { %357 = vrot.lane.b32.xlu0 %v263_v8, %s765_s26 }
  0x1c   : > { %264 = vrot.lane.b32.xlu1 %v263_v8, %s764_s25 }
  0x81   : > { %v212_v9 = vpop.permute.xlu0 %211 }
  0x82   : > { %218 = vst.msk [vmem:[#allocation2] sm:$0xf] %vm217_vm6, %v212_v9 }
  0x85   : > { %v214_v10 = vpop.permute.xlu0 %213 }
  0x86   : > { %219 = vst.msk [vmem:[#allocation2 + $0x4] sm:$0xf] %vm217_vm6, %v214_v10  ;;  %v329_v11 = vpop.permute.xlu1 %328 }
  0x87   : > { %vm330_vm8 = vcmp.ne.s16.totalorder %v329_v11, 0 }
  0x89   : > { %v236_v12 = vld [vmem:[#allocation2] sm:$0xf]  ;;  %v283_v26 = vpop.permute.xlu0 %282 }
  0x8a   : > { %v241_v13 = vsel %vm821_vm4, %v236_v12, 0  ;;  %v343_v14 = vld [vmem:[#allocation2] sm:$0xf]  ;;  %v312_v17 = vpop.permute.xlu1 %311  ;;  %vm284_vm10 = vcmp.ne.s16.totalorder %v283_v26, 0 }
  0x8b   : > { %244 = vst.msk [vmem:[#allocation3] sm:$0xf] %vm243_vm7, %v241_v13  ;;  %v326_v15 = vld [vmem:[#allocation2] sm:$0xf]  ;;  %347 = vrot.lane.b32.xlu1 %v343_v14, %s766_s27  ;;  %vm313_vm9 = vcmp.ne.s16.totalorder %v312_v17, 0 }
  0x8c   : > { %v331_v19 = vsel %vm330_vm8, %v326_v15, 0  ;;  %v309_v21 = vld [vmem:[#allocation2] sm:$0xf] }
  0x8d   : > { %v237_v16 = vld [vmem:[#allocation2 + $0x4] sm:$0xf]  ;;  %v314_v23 = vsel %vm313_vm9, %v309_v21, 0  ;;  %v297_v28 = vld [vmem:[#allocation2] sm:$0xf]  ;;  %v358_v38 = vpop.permute.xlu0 %357 }
  0x8e   : > { %v242_v18 = vsel %vm821_vm4, %v237_v16, 0  ;;  %v344_v20 = vld [vmem:[#allocation2 + $0x4] sm:$0xf]  ;;  %v279_v29 = vld [vmem:[#allocation2] sm:$0xf]  ;;  %v265_v30 = vpop.permute.xlu1 %264  ;;  %vm359_vm12 = vcmp.ne.s16.totalorder %v358_v38, 0 }
  0x8f   : > { %245 = vst.msk [vmem:[#allocation3 + $0x4] sm:$0xf] %vm243_vm7, %v242_v18  ;;  %335 = vrot.lane.b32.xlu1 %v331_v19, %s767_s28  ;;  %349 = vrot.lane.b32.xlu0 %v344_v20, %s766_s27  ;;  %v327_v22 = vld [vmem:[#allocation2 + $0x4] sm:$0xf]  ;;  %v285_v31 = vsel %vm284_vm10, %v279_v29, 0  ;;  %vm266_vm11 = vcmp.ne.s16.totalorder %v265_v30, 0 }
  0x90   : > { %v332_v24 = vsel %vm330_vm8, %v327_v22, 0  ;;  %v310_v25 = vld [vmem:[#allocation2 + $0x4] sm:$0xf]  ;;  %v258_v34 = vld [vmem:[#allocation2] sm:$0xf] }
  0x91   : > { %v315_v27 = vsel %vm313_vm9, %v310_v25, 0  ;;  %v298_v32 = vld [vmem:[#allocation2 + $0x4] sm:$0xf]  ;;  %v267_v36 = vsel %vm266_vm11, %v258_v34, 0  ;;  %v246_v40 = vld [vmem:[#allocation2] sm:$0xf] }
  0x92   : > { %v280_v33 = vld [vmem:[#allocation2 + $0x4] sm:$0xf]  ;;  %v355_v41 = vld [vmem:[#allocation2] sm:$0xf]  ;;  %v748_v19 = vld [vmem:[%s917_s1 + $0x10] ss:$8 sps:$4 sm:$0xff]  }
  0x93   : > { %318 = vrot.lane.b32.xlu1 %v314_v23, %s768_s29  ;;  %337 = vrot.lane.b32.xlu0 %v332_v24, %s767_s28  ;;  %v286_v35 = vsel %vm284_vm10, %v280_v33, 0  ;;  %v259_v37 = vld [vmem:[#allocation2 + $0x4] sm:$0xf]  ;;  %v360_v42 = vsel %vm359_vm12, %v355_v41, 0  ;;  %v745_v18 = vld [vmem:[%s917_s1] ss:$8 sps:$4 sm:$0xff]  }
  0x94   : > { %v268_v39 = vsel %vm266_vm11, %v259_v37, 0  ;;  %v247_v43 = vld [vmem:[#allocation2 + $0x4] sm:$0xf] }
  0x95   : > { %v356_v44 = vld [vmem:[#allocation2 + $0x4] sm:$0xf] }
  0x96   : > { %v361_v45 = vsel %vm359_vm12, %v356_v44, 0  ;;  %v743_v16 = vld [vmem:[#allocation3] sm:$0xff]  }
  0x97   : > { %301 = vrot.lane.b32.xlu1 %v297_v28, %s769_s30  ;;  %320 = vrot.lane.b32.xlu0 %v315_v27, %s768_s29 }
  0x9b   : > { %303 = vrot.lane.b32.xlu0 %v298_v32, %s769_s30  ;;  %289 = vrot.lane.b32.xlu1 %v285_v31, %s770_s5 }
  0x9f   : > { %291 = vrot.lane.b32.xlu0 %v286_v35, %s770_s5  ;;  %271 = vrot.lane.b32.xlu1 %v267_v36, %s771_s6 }
  0xa3   : > { %273 = vrot.lane.b32.xlu0 %v268_v39, %s771_s6  ;;  %250 = vrot.lane.b32.xlu1 %v246_v40, %s772_s7 }
  0xa7   : > { %252 = vrot.lane.b32.xlu0 %v247_v43, %s772_s7  ;;  %364 = vrot.lane.b32.xlu1 %v360_v42, %s773_s8 }
  0xab   : > { %366 = vrot.lane.b32.xlu0 %v361_v45, %s773_s8  ;;  %528 = vperm.xlu1 %734, %v522_v48  }
  0xaf   : > { %533 = vperm.xlu0 %735, %v523_v49   ;;  %538 = vperm.xlu1 %734, %v524_v50  }
  0xb3   : > { %556 = vperm.xlu0 %735, %v550_v51   ;;  %543 = vperm.xlu1 %734, %v525_v52  }
  0xb7   : > { %566 = vperm.xlu0 %735, %v552_v53   ;;  %561 = vperm.xlu1 %734, %v551_v54  }
  0xbb   : > { %571 = vperm.xlu1 %734, %v553_v55  }
  0xfd   : > { %v348_v56 = vpop.permute.xlu1 %347 }
  0xfe   : > { %353 = vst.msk [vmem:[#allocation3 + $0x38] sm:$0xf] %vm243_vm7, %v348_v56 }
 0x101   : > { %v336_v57 = vpop.permute.xlu1 %335  ;;  %v350_v58 = vpop.permute.xlu0 %349 }
 0x102   : > { %341 = vst.msk [vmem:[#allocation3 + $0x30] sm:$0xf] %vm243_vm7, %v336_v57  ;;  %354 = vst.msk [vmem:[#allocation3 + $0x3c] sm:$0xf] %vm243_vm7, %v350_v58 }
 0x105   : > { %v319_v59 = vpop.permute.xlu1 %318  ;;  %v338_v60 = vpop.permute.xlu0 %337 }
 0x106   : > { %324 = vst.msk [vmem:[#allocation3 + $0x28] sm:$0xf] %vm243_vm7, %v319_v59  ;;  %342 = vst.msk [vmem:[#allocation3 + $0x34] sm:$0xf] %vm243_vm7, %v338_v60 }
 0x109   : > { %v302_v61 = vpop.permute.xlu1 %301  ;;  %v321_v62 = vpop.permute.xlu0 %320  ;;  %v736_v63 = vld [vmem:[#allocation3 + $0x38] sm:$0xff]  }
 0x10a   : > { %307 = vst.msk [vmem:[#allocation3 + $0x20] sm:$0xf] %vm243_vm7, %v302_v61  ;;  %325 = vst.msk [vmem:[#allocation3 + $0x2c] sm:$0xf] %vm243_vm7, %v321_v62  ;;  %474 = vmatpush1.bf16.msra.mxu0 %v736_v63  ;;  %702 = vmatpush1.bf16.msra.mxu1 %v736_v63 }
 0x10b   : > { %475 = vmatprep.subr.bf16.mxu0 %v759_v1  ;;  %694 = vmatprep.subr.bf16.mxu1 %v759_v1 }
 0x10d   : > { %v290_v0 = vpop.permute.xlu1 %289  ;;  %v304_v2 = vpop.permute.xlu0 %303  ;;  %v737_v3 = vld [vmem:[#allocation3 + $0x30] sm:$0xff]  }
 0x10e   : > { %295 = vst.msk [vmem:[#allocation3 + $0x18] sm:$0xf] %vm243_vm7, %v290_v0  ;;  %308 = vst.msk [vmem:[#allocation3 + $0x24] sm:$0xf] %vm243_vm7, %v304_v2  ;;  %476 = vmatpush1.bf16.msra.mxu0 %v737_v3  ;;  %703 = vmatpush1.bf16.msra.mxu1 %v737_v3 }
 0x10f   : > { %477 = vmatprep.subr.bf16.mxu0 %v759_v1  ;;  %695 = vmatprep.subr.bf16.mxu1 %v759_v1 }
 0x111   : > { %v272_v4 = vpop.permute.xlu1 %271  ;;  %v292_v5 = vpop.permute.xlu0 %291  ;;  %v738_v6 = vld [vmem:[#allocation3 + $0x28] sm:$0xff]  }
 0x112   : > { %277 = vst.msk [vmem:[#allocation3 + $0x10] sm:$0xf] %vm243_vm7, %v272_v4  ;;  %296 = vst.msk [vmem:[#allocation3 + $0x1c] sm:$0xf] %vm243_vm7, %v292_v5  ;;  %478 = vmatpush1.bf16.msra.mxu0 %v738_v6  ;;  %704 = vmatpush1.bf16.msra.mxu1 %v738_v6 }
 0x113   : > { %479 = vmatprep.subr.bf16.mxu0 %v759_v1  ;;  %696 = vmatprep.subr.bf16.mxu1 %v759_v1 }
 0x115   : > { %v251_v7 = vpop.permute.xlu1 %250  ;;  %v274_v8 = vpop.permute.xlu0 %273  ;;  %v739_v9 = vld [vmem:[#allocation3 + $0x20] sm:$0xff]  }
 0x116   : > { %256 = vst.msk [vmem:[#allocation3 + $0x8] sm:$0xf] %vm243_vm7, %v251_v7  ;;  %278 = vst.msk [vmem:[#allocation3 + $0x14] sm:$0xf] %vm243_vm7, %v274_v8  ;;  %480 = vmatpush1.bf16.msra.mxu0 %v739_v9  ;;  %705 = vmatpush1.bf16.msra.mxu1 %v739_v9 }
 0x117   : > { %481 = vmatprep.subr.bf16.mxu0 %v759_v1  ;;  %697 = vmatprep.subr.bf16.mxu1 %v759_v1 }
 0x119   : > { %v365_v10 = vpop.permute.xlu1 %364  ;;  %v253_v11 = vpop.permute.xlu0 %252  ;;  %v740_v12 = vld [vmem:[#allocation3 + $0x18] sm:$0xff]  }
 0x11a   : > { %370 = vst.msk [vmem:[#allocation3 + $0x40] sm:$0xf] %vm243_vm7, %v365_v10  ;;  %257 = vst.msk [vmem:[#allocation3 + $0xc] sm:$0xf] %vm243_vm7, %v253_v11  ;;  %482 = vmatpush1.bf16.msra.mxu0 %v740_v12  ;;  %706 = vmatpush1.bf16.msra.mxu1 %v740_v12 }
 0x11b   : > { %483 = vmatprep.subr.bf16.mxu0 %v759_v1  ;;  %698 = vmatprep.subr.bf16.mxu1 %v759_v1 }
 0x11d   : > { %v367_v13 = vpop.permute.xlu0 %366  ;;  %v741_v14 = vld [vmem:[#allocation3 + $0x10] sm:$0xff]  }
 0x11e   : > { %371 = vst.msk [vmem:[#allocation3 + $0x44] sm:$0xf] %vm243_vm7, %v367_v13  ;;  %484 = vmatpush1.bf16.msra.mxu0 %v741_v14  ;;  %707 = vmatpush1.bf16.msra.mxu1 %v741_v14 }
 0x11f   : > { %485 = vmatprep.subr.bf16.mxu0 %v759_v1  ;;  %699 = vmatprep.subr.bf16.mxu1 %v759_v1 }
 0x121   : > { %v742_v15 = vld [vmem:[#allocation3 + $0x8] sm:$0xff]  }
 0x122   : > { %486 = vmatpush1.bf16.msra.mxu0 %v742_v15  ;;  %708 = vmatpush1.bf16.msra.mxu1 %v742_v15 }
 0x123   : > { %487 = vmatprep.subr.bf16.mxu0 %v759_v1  ;;  %700 = vmatprep.subr.bf16.mxu1 %v759_v1 }
 0x125   : > { %v744_v17 = vld [vmem:[#allocation3 + $0x40] sm:$0xff]  }
 0x126   : > { %488 = vmatpush1.bf16.msra.mxu0 %v743_v16  ;;  %709 = vmatpush1.bf16.msra.mxu1 %v743_v16  ;;  %v529_v20 = vpop.permute.xlu1 %528 }
 0x127   : > { %503 = vmatprep.subr.bf16.mxu0 %v759_v1  ;;  %701 = vmatprep.subr.bf16.mxu1 %v759_v1 }
 0x12a   : > { %504 = vmatpush2.bf16.msra.mxu0 %v744_v17  ;;  %710 = vmatpush2.bf16.msra.mxu1 %v744_v17  ;;  %v539_v21 = vpop.permute.xlu1 %538  ;;  %v534_v22 = vpop.permute.xlu0 %533 }
 0x12d   : > { %506 = vmatmul.mubr.bf16.vlgmr.msra.gmra.mxu0 %v745_v18  ;;  %514 = vmatmul.mubr.bf16.vlgmr.msra.gmra.mxu1 %v748_v19 }
 0x12e   : > { %v544_v23 = vpop.permute.xlu1 %543  ;;  %v557_v24 = vpop.permute.xlu0 %556 }
 0x132   : > { %v562_v1 = vpop.permute.xlu1 %561  ;;  %v567_v27 = vpop.permute.xlu0 %566 }
 0x136   : > { %v572_v36 = vpop.permute.xlu1 %571 }
 0x1ed   : > { %v507_v25 = vpop.f32.mrf.mxu0  ;;  %v515_v26 = vpop.f32.mrf.mxu1 }
 0x1ee   : > { %v546_v28 = vmul.f32 %v529_v20, %v507_v25  ;;  %v548_v29 = vmul.f32 %v539_v21, %v515_v26 }
 0x1ef   : > { %v509_v30 = vpop.f32.mrf.mxu0  ;;  %v517_v31 = vpop.f32.mrf.mxu1 }
 0x1f0   : > { %v574_v32 = vadd.f32 %v557_v24, %v546_v28  ;;  %v576_v33 = vadd.f32 %v567_v27, %v548_v29 }
 0x1f1   : > { %v510_v34 = vpop.f32.mrf.mxu0  ;;  %v518_v35 = vpop.f32.mrf.mxu1 }
 0x1f2   : > { %v578_v37 = vmax.f32 %v574_v32, 0.0  ;;  %v580_v38 = vmax.f32 %v576_v33, 0.0  ;;  %v547_v39 = vmul.f32 %v534_v22, %v510_v34  ;;  %v549_v40 = vmul.f32 %v544_v23, %v518_v35 }
 0x1f3   : > { %v512_v41 = vpop.f32.mrf.mxu0  ;;  %v520_v42 = vpop.f32.mrf.mxu1 }
 0x1f4   : > { %v689_v43 = vpack.c.bf16 %v578_v37, %v578_v37  ;;  %v691_v44 = vpack.c.bf16 %v580_v38, %v580_v38  ;;  %v575_v45 = vadd.f32 %v562_v1, %v547_v39  ;;  %v577_v46 = vadd.f32 %v572_v36, %v549_v40 }
 0x1f6   : > { %598 = vst.msk [vmem:[%s197_s12] sm:$0xf] %vm243_vm7, %v689_v43  ;;  %600 = vst.msk [vmem:[%s197_s12 + $0x8] sm:$0xf] %vm243_vm7, %v691_v44  ;;  %v579_v47 = vmax.f32 %v575_v45, 0.0  ;;  %v581_v48 = vmax.f32 %v577_v46, 0.0 }
 0x1f8   : > { %v690_v49 = vpack.c.bf16 %v579_v47, %v579_v47  ;;  %v692_v50 = vpack.c.bf16 %v581_v48, %v581_v48 }
 0x1fa   : > { %599 = vst.msk [vmem:[%s197_s12 + $0x4] sm:$0xf] %vm243_vm7, %v690_v49  ;;  %601 = vst.msk [vmem:[%s197_s12 + $0xc] sm:$0xf] %vm243_vm7, %v692_v50 }
 0x1fb PF: > { %s14_s15 = sadd.s32 1, %s757_s15  }
 0x1fc   : > { %p11_p4 = scmp.ge.s32.totalorder %s14_s15, 4  }
 0x1fe   :  { %13 = sbr.rel (!%p11_p4) target bundleno = 1 (0x1), region = 66 }

// kernel: mfms_attention_block.8
= control target key start
LH: loop header
LB: loop body
LE: loop exit
PB: predicated region body
PF: predicated region fallthrough
CT: control target
= control target key end

     0   :  { %13 = vsyncpa [#allocation3], 0  ;;  %s1330_s27 = smov 0   ;;  %s1699_s0 = inlined_call_operand.vmem [shape: bf16[2,32,256], index: 0, kind: input, shape index: {}]   ;;  %s1700_s1 = inlined_call_operand.vmem [shape: f32[1,256], index: 1, kind: input, shape index: {}]   ;;  %s1701_s2 = inlined_call_operand.vmem [shape: f32[4,256], index: 2, kind: input, shape index: {}]   ;;  %s1702_s3 = inlined_call_operand.vmem [shape: f32[4,256], index: 3, kind: input, shape index: {}]   ;;  %s1703_s4 = inlined_call_operand.vmem [shape: f32[2,32], index: 4, kind: input, shape index: {}]   ;;  %s1704_s5 = inlined_call_operand.vmem [shape: f32[32,2], index: 5, kind: input, shape index: {}]   ;;  %s1705_s6 = inlined_call_operand.vmem [shape: f32[32,1], index: 6, kind: input, shape index: {}]   ;;  %s1706_s7 = inlined_call_operand.vmem [shape: f32[2], index: 7, kind: input, shape index: {}]   ;;  %s1707_s8 = inlined_call_operand.vmem [shape: bf16[2,32,256], index: 8, kind: output, shape index: {}]  }
   0x1 LB: > { %s1135_s28 = sadd.s32 4294967295, %s1279_s27   ;;  %p1137_p0 = scmp.ge.s32.totalorder %s1279_s27, 1  ;;  %s1279_s27 = sphi %s1330_s27, %s19_s27  }
   0x2   : > { %p223_p1 = scmp.lt.s32.totalorder %s1279_s27, 3  ;;  %s254_s9 = sshll.u32 %s1706_s7, 4  ;;  %s255_s9 = int_to_ptr.vmem [resolvable:$true] %s254_s9 }
   0x3   : > { %p1214_p3 = scmp.eq.s32.totalorder %s1135_s28, 0  ;;  %s1254_s11 = scalar_lea.vmem %s255_s9, 16 }
   0x4   : > { %p1341_p2 = pnand %p1137_p0, %p223_p1  ;;  %p1255_p6 = scmp.ne.s32.totalorder %s255_s9, %s1254_s11 }
   0x5   : > { %p1262_p10 = scmp.lt.s32.totalorder %s255_s9, %s255_s9  ;;  %p1263_p11 = scmp.lt.s32.totalorder %s1254_s11, %s1254_s11 }
   0x6   : > { %p1210_p4 = pneg %p1341_p2 }
   0x7   : > { %p1264_p12 = por %p1263_p11, %p1262_p10 }
   0x8   : > { %p1211_p5 = pnand %p1214_p3, %p1210_p4 }
   0xa   : > { %p1256_p7 = pneg %p1211_p5 }
   0xc   : > { %p1257_p8 = pnand %p1256_p7, %p1255_p6 }
   0xe   : > { %p1258_p9 = pneg %p1257_p8 }
  0x10   : > { %p1265_p13 = pnand %p1264_p12, %p1258_p9 }
  0x12   : > { %1268 = shalt.err (!%p1265_p13)
}
  0x13   : > { %s1281_s12 = smov [#allocation2]   ;;  %275 = sbr.rel (%p1341_p2) target bundleno = 884 (0x374), region = 52 }
  0x14   : > { %1213 = dma.vmem_to_smem (!%p1211_p5), %s255_s9, 16, %s1281_s12, [#allocation3]  }
  0x18   : > { %1274 = dma.done.wait (%p1214_p3), [#allocation3], 16  }
  0x19   : > { %1276 = vsyncadd (%p1214_p3), [#allocation3], 4294967280 }
  0x1a   : > { %281 = sfence }
  0x1b   : > { %p310_p0 = scmp.lt.s32.totalorder %s1135_s28, 1  ;;  %v334_v0 = vlaneseq  ;;  %v364_v2 = vld [vmem:[%s1701_s2] ss:$4 sm:$0x3]  ;;  %vm1283_vm0 = vmmov 0   ;;  %vm722_vm1 = vcmask 7168  }
  0x1c   : > { %v384_v3 = vld [vmem:[%s1702_s3] ss:$4 sm:$0x3]  ;;  %v1146_v6 = vld [vmem:[%s1701_s2 + $0x1] ss:$4 sm:$0x3] }
  0x1d   : > { %s1710_s28 = smov (!%p310_p0, %s1135_s28), 1  ;;  %v335_v1 = vshrl.u32 %v334_v0, 7  ;;  %v1147_v7 = vld [vmem:[%s1702_s3 + $0x1] ss:$4 sm:$0x3]  ;;  %vm727_vm2 = vcmask 15360  }
  0x1e   : > { %s1171_s17 = sshll.u32 %s1710_s28, 5  ;;  %v1148_v43 = vld [vmem:[%s1701_s2 + $0x2] ss:$4 sm:$0x3]  ;;  %vm733_vm3 = vcmask 261120   ;;  %vm824_vm4 = vcmask 1041408  }
  0x1f   : > { %v1361_v4 = vsub.s32 0, %v335_v1  ;;  %v1363_v5 = vsub.s32 1, %v335_v1  ;;  %s1373_s22 = scalar_lea.vmem %s1699_s0, %s1171_s17  ;;  %v1149_v48 = vld [vmem:[%s1702_s3 + $0x2] ss:$4 sm:$0x3]  ;;  %vm913_vm5 = vcmask 23552   ;;  %s319_s19 = scalar_lea.vmem %s1707_s8, %s1171_s17 }
  0x20   : > { %v323_v8 = vld [vmem:[%s1373_s22 + $0x18] sm:$0xff]  ;;  %v322_v13 = vld [vmem:[%s1373_s22 + $0x10] sm:$0xff]  ;;  %v321_v38 = vld [vmem:[%s1373_s22 + $0x8] sm:$0xff]  ;;  %s1020_s14 = sld [smem:[#allocation2]] }
  0x21   : > { %v1380_v9 = vrot.slane %v364_v2, %v1361_v4  ;;  %v1383_v10 = vrot.slane %v364_v2, %v1363_v5  ;;  %v1386_v11 = vrot.slane %v384_v3, %v1361_v4  ;;  %v1389_v12 = vrot.slane %v384_v3, %v1363_v5  ;;  %s1164_s15 = sld [smem:[#allocation2 + $0x1]] }
  0x22   : > { %v1392_v14 = vunpack.c.l.bf16 %v323_v8  ;;  %v1394_v15 = vunpack.c.h.bf16 %v323_v8  ;;  %v1397_v16 = vrot.slane %v1146_v6, %v1361_v4  ;;  %v1400_v17 = vrot.slane %v1146_v6, %v1363_v5 }
  0x23   : > { %v1403_v18 = vrot.slane %v1147_v7, %v1361_v4  ;;  %v1406_v19 = vrot.slane %v1147_v7, %v1363_v5  ;;  %v1408_v20 = vunpack.c.l.bf16 %v322_v13  ;;  %v1410_v21 = vunpack.c.h.bf16 %v322_v13 }
  0x24   : > { %v382_v22 = vmul.f32 %v1380_v9, %v1392_v14  ;;  %v383_v23 = vmul.f32 %v1383_v10, %v1394_v15  ;;  %v402_v24 = vmul.f32 %v1386_v11, %v1392_v14  ;;  %v403_v25 = vmul.f32 %v1389_v12, %v1394_v15 }
  0x25   : > { %v471_v26 = vmul.f32 %v1397_v16, %v1392_v14  ;;  %v472_v27 = vmul.f32 %v1400_v17, %v1394_v15  ;;  %v492_v28 = vmul.f32 %v1403_v18, %v1392_v14  ;;  %v493_v29 = vmul.f32 %v1406_v19, %v1394_v15 }
  0x26   : > { %v434_v30 = vmin.f32 %v382_v22, %v402_v24  ;;  %v435_v31 = vmin.f32 %v383_v23, %v403_v25  ;;  %v410_v32 = vmax.f32 %v382_v22, %v402_v24  ;;  %v411_v33 = vmax.f32 %v383_v23, %v403_v25 }
  0x27   : > { %v524_v34 = vmin.f32 %v471_v26, %v492_v28  ;;  %v525_v35 = vmin.f32 %v472_v27, %v493_v29  ;;  %v500_v36 = vmax.f32 %v471_v26, %v492_v28  ;;  %v501_v37 = vmax.f32 %v472_v27, %v493_v29 }
  0x28   : > { %v445_v39 = vmin.f32 %v434_v30, %v435_v31  ;;  %v421_v40 = vmax.f32 %v410_v32, %v411_v33  ;;  %v469_v41 = vmul.f32 %v1397_v16, %v1408_v20  ;;  %v470_v42 = vmul.f32 %v1400_v17, %v1410_v21  ;;  %v1150_v30 = vld [vmem:[%s1701_s2 + $0x3] ss:$4 sm:$0x3] }
  0x29   : > { %v535_v44 = vmin.f32 %v524_v34, %v525_v35  ;;  %v511_v45 = vmax.f32 %v500_v36, %v501_v37  ;;  %v490_v46 = vmul.f32 %v1403_v18, %v1408_v20  ;;  %v491_v47 = vmul.f32 %v1406_v19, %v1410_v21  ;;  %v1151_v34 = vld [vmem:[%s1702_s3 + $0x3] ss:$4 sm:$0x3] }
  0x2a   : > { %446 = vmin.xlane.f32.xlu1 %v445_v39  ;;  %422 = vmax.xlane.f32.xlu0 %v421_v40  ;;  %v380_v49 = vmul.f32 %v1380_v9, %v1408_v20  ;;  %v381_v50 = vmul.f32 %v1383_v10, %v1410_v21  ;;  %v400_v51 = vmul.f32 %v1386_v11, %v1408_v20  ;;  %v1449_v52 = vunpack.c.l.bf16 %v321_v38 }
  0x2b   : > { %v498_v53 = vmax.f32 %v469_v41, %v490_v46  ;;  %v499_v54 = vmax.f32 %v470_v42, %v491_v47  ;;  %v401_v55 = vmul.f32 %v1389_v12, %v1410_v21  ;;  %v1454_v56 = vrot.slane %v1148_v43, %v1361_v4 }
  0x2c   : > { %v408_v57 = vmax.f32 %v380_v49, %v400_v51  ;;  %v432_v58 = vmin.f32 %v380_v49, %v400_v51  ;;  %v1457_v59 = vrot.slane %v1148_v43, %v1363_v5  ;;  %v1460_v60 = vrot.slane %v1149_v48, %v1361_v4 }
  0x2d   : > { %v508_v61 = vmax.f32 %v498_v53, %v499_v54  ;;  %v409_v62 = vmax.f32 %v381_v50, %v401_v55  ;;  %v433_v63 = vmin.f32 %v381_v50, %v401_v55  ;;  %v561_v0 = vmul.f32 %v1454_v56, %v1392_v14 }
  0x2e   : > { %536 = vmin.xlane.f32.xlu1 %v535_v44  ;;  %512 = vmax.xlane.f32.xlu0 %v511_v45  ;;  %v562_v1 = vmul.f32 %v1457_v59, %v1394_v15  ;;  %v1467_v2 = vrot.slane %v1149_v48, %v1363_v5  ;;  %v582_v3 = vmul.f32 %v1460_v60, %v1392_v14  ;;  %v1471_v6 = vunpack.c.h.bf16 %v321_v38 }
  0x2f   : > { %v418_v7 = vmax.f32 %v408_v57, %v409_v62  ;;  %v522_v8 = vmin.f32 %v469_v41, %v490_v46  ;;  %v523_v13 = vmin.f32 %v470_v42, %v491_v47  ;;  %v442_v22 = vmin.f32 %v432_v58, %v433_v63 }
  0x30   : > { %v583_v23 = vmul.f32 %v1467_v2, %v1394_v15  ;;  %v590_v24 = vmax.f32 %v561_v0, %v582_v3  ;;  %v1477_v25 = vmul.f32 %v1397_v16, %v1449_v52  ;;  %v614_v26 = vmin.f32 %v561_v0, %v582_v3  ;;  %v320_v0 = vld [vmem:[%s1373_s22] sm:$0xff] }
  0x31   : > { %v1481_v27 = vmul.f32 %v1400_v17, %v1471_v6  ;;  %v1485_v28 = vmul.f32 %v1403_v18, %v1449_v52  ;;  %v1489_v29 = vmul.f32 %v1406_v19, %v1471_v6  ;;  %v378_v33 = vmul.f32 %v1380_v9, %v1449_v52 }
  0x32   : > { %509 = vmax.xlane.f32.xlu1 %v508_v61  ;;  %419 = vmax.xlane.f32.xlu0 %v418_v7  ;;  %v591_v31 = vmax.f32 %v562_v1, %v583_v23  ;;  %v615_v32 = vmin.f32 %v562_v1, %v583_v23  ;;  %v532_v35 = vmin.f32 %v522_v8, %v523_v13  ;;  %v332_v8 = vld [vmem:[%s1700_s1] sm:$0x3]  ;;  %v1541_v13 = vunpack.c.l.bf16 %v320_v0 }
  0x33   : > { %v496_v36 = vmax.f32 %v1477_v25, %v1485_v28  ;;  %v379_v37 = vmul.f32 %v1383_v10, %v1471_v6  ;;  %v398_v38 = vmul.f32 %v1386_v11, %v1449_v52  ;;  %v497_v40 = vmax.f32 %v1481_v27, %v1489_v29 }
  0x34   : > { %v601_v39 = vmax.f32 %v590_v24, %v591_v31  ;;  %v399_v41 = vmul.f32 %v1389_v12, %v1471_v6  ;;  %v1510_v42 = vrot.slane %v1150_v30, %v1361_v4  ;;  %v625_v43 = vmin.f32 %v614_v26, %v615_v32 }
  0x35   : > { %v406_v44 = vmax.f32 %v378_v33, %v398_v38  ;;  %v1513_v45 = vrot.slane %v1150_v30, %v1363_v5  ;;  %v1516_v46 = vrot.slane %v1151_v34, %v1361_v4  ;;  %v1521_v49 = vrot.slane %v1151_v34, %v1363_v5 }
  0x36   : > { %443 = vmin.xlane.f32.xlu1 %v442_v22  ;;  %602 = vmax.xlane.f32.xlu0 %v601_v39  ;;  %v407_v47 = vmax.f32 %v379_v37, %v399_v41  ;;  %v651_v48 = vmul.f32 %v1510_v42, %v1392_v14  ;;  %v559_v53 = vmul.f32 %v1454_v56, %v1408_v20  ;;  %v1547_v26 = vunpack.c.h.bf16 %v320_v0 }
  0x37   : > { %v652_v50 = vmul.f32 %v1513_v45, %v1394_v15  ;;  %v672_v51 = vmul.f32 %v1516_v46, %v1392_v14  ;;  %v560_v54 = vmul.f32 %v1457_v59, %v1410_v21  ;;  %v673_v55 = vmul.f32 %v1521_v49, %v1394_v15 }
  0x38   : > { %v580_v57 = vmul.f32 %v1460_v60, %v1408_v20  ;;  %v581_v58 = vmul.f32 %v1467_v2, %v1410_v21  ;;  %v505_v61 = vmax.f32 %v496_v36, %v497_v40  ;;  %v415_v62 = vmax.f32 %v406_v44, %v407_v47 }
  0x39   : > { %v680_v63 = vmax.f32 %v651_v48, %v672_v51  ;;  %v681_v1 = vmax.f32 %v652_v50, %v673_v55  ;;  %v520_v22 = vmin.f32 %v1477_v25, %v1485_v28  ;;  %v521_v23 = vmin.f32 %v1481_v27, %v1489_v29 }
  0x3a   : > { %626 = vmin.xlane.f32.xlu1 %v625_v43  ;;  %533 = vmin.xlane.f32.xlu0 %v532_v35  ;;  %v588_v3 = vmax.f32 %v559_v53, %v580_v57  ;;  %v589_v7 = vmax.f32 %v560_v54, %v581_v58  ;;  %v430_v24 = vmin.f32 %v378_v33, %v398_v38 }
  0x3b   : > { %v691_v30 = vmax.f32 %v680_v63, %v681_v1  ;;  %v431_v32 = vmin.f32 %v379_v37, %v399_v41  ;;  %v704_v34 = vmin.f32 %v651_v48, %v672_v51  ;;  %v705_v35 = vmin.f32 %v652_v50, %v673_v55 }
  0x3c   : > { %v598_v31 = vmax.f32 %v588_v3, %v589_v7  ;;  %v1550_v36 = vrot.slane %v332_v8, %v1361_v4  ;;  %v1553_v39 = vrot.slane %v332_v8, %v1363_v5  ;;  %v612_v25 = vmin.f32 %v559_v53, %v580_v57 }
  0x3d   : > { %v613_v28 = vmin.f32 %v560_v54, %v581_v58  ;;  %v376_v27 = vmul.f32 %v1380_v9, %v1541_v13  ;;  %v377_v29 = vmul.f32 %v1383_v10, %v1547_v26  ;;  %v396_v33 = vmul.f32 %v1386_v11, %v1541_v13 }
  0x3e   : > { %506 = vmax.xlane.f32.xlu1 %v505_v61  ;;  %416 = vmax.xlane.f32.xlu0 %v415_v62  ;;  %v397_v37 = vmul.f32 %v1389_v12, %v1547_v26  ;;  %v529_v4 = vmin.f32 %v520_v22, %v521_v23  ;;  %v439_v38 = vmin.f32 %v430_v24, %v431_v32 }
  0x3f   : > { %v715_v5 = vmin.f32 %v704_v34, %v705_v35  ;;  %v350_v40 = vmul.f32 %v1550_v36, %v1392_v14  ;;  %v351_v9 = vmul.f32 %v1553_v39, %v1394_v15  ;;  %v465_v10 = vmul.f32 %v1397_v16, %v1541_v13 }
  0x40   : > { %v466_v11 = vmul.f32 %v1400_v17, %v1547_v26  ;;  %v486_v12 = vmul.f32 %v1403_v18, %v1541_v13  ;;  %v487_v41 = vmul.f32 %v1406_v19, %v1547_v26  ;;  %v622_v43 = vmin.f32 %v612_v25, %v613_v28 }
  0x41   : > { %v404_v44 = vmax.f32 %v376_v27, %v396_v33  ;;  %v405_v47 = vmax.f32 %v377_v29, %v397_v37  ;;  %v557_v48 = vmul.f32 %v1454_v56, %v1449_v52  ;;  %v558_v16 = vmul.f32 %v1457_v59, %v1471_v6 }
  0x42   : > { %692 = vmax.xlane.f32.xlu1 %v691_v30  ;;  %599 = vmax.xlane.f32.xlu0 %v598_v31  ;;  %v578_v17 = vmul.f32 %v1460_v60, %v1449_v52  ;;  %v579_v18 = vmul.f32 %v1467_v2, %v1471_v6  ;;  %v361_v50 = vadd.f32 %v351_v9, %v350_v40 }
  0x43   : > { %v494_v51 = vmax.f32 %v465_v10, %v486_v12  ;;  %v495_v19 = vmax.f32 %v466_v11, %v487_v41  ;;  %v412_v53 = vmax.f32 %v404_v44, %v405_v47  ;;  %v649_v54 = vmul.f32 %v1510_v42, %v1408_v20 }
  0x44   : > { %v650_v55 = vmul.f32 %v1513_v45, %v1410_v21  ;;  %v670_v57 = vmul.f32 %v1516_v46, %v1408_v20  ;;  %v586_v58 = vmax.f32 %v557_v48, %v578_v17  ;;  %v587_v61 = vmax.f32 %v558_v16, %v579_v18 }
  0x45   : > { %v671_v62 = vmul.f32 %v1521_v49, %v1410_v21  ;;  %v502_v63 = vmax.f32 %v494_v51, %v495_v19  ;;  %v428_v0 = vmin.f32 %v376_v27, %v396_v33  ;;  %v429_v1 = vmin.f32 %v377_v29, %v397_v37 }
  0x46   : > { %530 = vmin.xlane.f32.xlu1 %v529_v4  ;;  %440 = vmin.xlane.f32.xlu0 %v439_v38  ;;  %v595_v3 = vmax.f32 %v586_v58, %v587_v61  ;;  %v678_v7 = vmax.f32 %v649_v54, %v670_v57  ;;  %v518_v22 = vmin.f32 %v465_v10, %v486_v12 }
  0x47   : > { %v679_v8 = vmax.f32 %v650_v55, %v671_v62  ;;  %v519_v23 = vmin.f32 %v466_v11, %v487_v41  ;;  %v436_v24 = vmin.f32 %v428_v0, %v429_v1  ;;  %v610_v31 = vmin.f32 %v557_v48, %v578_v17 }
  0x48   : > { %v611_v32 = vmin.f32 %v558_v16, %v579_v18  ;;  %v702_v35 = vmin.f32 %v649_v54, %v670_v57  ;;  %v703_v25 = vmin.f32 %v650_v55, %v671_v62  ;;  %v555_v28 = vmul.f32 %v1454_v56, %v1541_v13 }
  0x49   : > { %v688_v30 = vmax.f32 %v678_v7, %v679_v8  ;;  %v526_v34 = vmin.f32 %v518_v22, %v519_v23  ;;  %v556_v27 = vmul.f32 %v1457_v59, %v1547_v26  ;;  %v576_v29 = vmul.f32 %v1460_v60, %v1541_v13 }
  0x4a   : > { %716 = vmin.xlane.f32.xlu1 %v715_v5  ;;  %623 = vmin.xlane.f32.xlu0 %v622_v43  ;;  %v577_v33 = vmul.f32 %v1467_v2, %v1547_v26  ;;  %v647_v37 = vmul.f32 %v1510_v42, %v1449_v52  ;;  %v648_v4 = vmul.f32 %v1513_v45, %v1471_v6  ;;  %v1282_v11 = vmov 0.0  }
  0x4b   : > { %v668_v38 = vmul.f32 %v1516_v46, %v1449_v52  ;;  %v669_v56 = vmul.f32 %v1521_v49, %v1471_v6  ;;  %v619_v59 = vmin.f32 %v610_v31, %v611_v32  ;;  %v348_v60 = vmul.f32 %v1550_v36, %v1408_v20  ;;  %1187 = vmatprep.subr.mxu0 %v1282_v11 }
  0x4c   : > { %v349_v2 = vmul.f32 %v1553_v39, %v1410_v21  ;;  %v584_v5 = vmax.f32 %v555_v28, %v576_v29  ;;  %v585_v40 = vmax.f32 %v556_v27, %v577_v33  ;;  %v712_v12 = vmin.f32 %v702_v35, %v703_v25  ;;  %1195 = vmatprep.mubr.msk.f32.mxu0 %vm1283_vm0, %v1282_v11 }
  0x4d   : > { %v676_v9 = vmax.f32 %v647_v37, %v668_v38  ;;  %v677_v10 = vmax.f32 %v648_v4, %v669_v56  ;;  %v608_v43 = vmin.f32 %v555_v28, %v576_v29  ;;  %v609_v44 = vmin.f32 %v556_v27, %v577_v33 }
  0x4e   : > { %362 = vadd.xlane.f32.xlu0 %v361_v50  ;;  %413 = vmax.xlane.f32.xlu1 %v412_v53  ;;  %v358_v41 = vadd.f32 %v349_v2, %v348_v60  ;;  %v700_v47 = vmin.f32 %v647_v37, %v668_v38  ;;  %v592_v48 = vmax.f32 %v584_v5, %v585_v40 }
  0x4f   : > { %v685_v16 = vmax.f32 %v676_v9, %v677_v10  ;;  %v701_v17 = vmin.f32 %v648_v4, %v669_v56  ;;  %v645_v18 = vmul.f32 %v1510_v42, %v1541_v13  ;;  %v646_v50 = vmul.f32 %v1513_v45, %v1547_v26 }
  0x50   : > { %v666_v51 = vmul.f32 %v1516_v46, %v1541_v13  ;;  %v667_v19 = vmul.f32 %v1521_v49, %v1547_v26  ;;  %v616_v53 = vmin.f32 %v608_v43, %v609_v44  ;;  %v346_v54 = vmul.f32 %v1550_v36, %v1449_v52 }
  0x51   : > { %v347_v55 = vmul.f32 %v1553_v39, %v1471_v6  ;;  %v709_v42 = vmin.f32 %v700_v47, %v701_v17  ;;  %v344_v46 = vmul.f32 %v1550_v36, %v1541_v13 }
  0x52   : > { %503 = vmax.xlane.f32.xlu0 %v502_v63  ;;  %596 = vmax.xlane.f32.xlu1 %v595_v3  ;;  %v674_v57 = vmax.f32 %v645_v18, %v666_v51  ;;  %v675_v58 = vmax.f32 %v646_v50, %v667_v19  ;;  %v698_v45 = vmin.f32 %v645_v18, %v666_v51 }
  0x53   : > { %v355_v61 = vadd.f32 %v347_v55, %v346_v54  ;;  %v699_v62 = vmin.f32 %v646_v50, %v667_v19  ;;  %v345_v63 = vmul.f32 %v1553_v39, %v1547_v26 }
  0x54   : > { %v682_v49 = vmax.f32 %v674_v57, %v675_v58 }
  0x55   : > { %v706_v0 = vmin.f32 %v698_v45, %v699_v62  ;;  %v352_v1 = vadd.f32 %v345_v63, %v344_v46 }
  0x56   : > { %689 = vmax.xlane.f32.xlu0 %v688_v30  ;;  %437 = vmin.xlane.f32.xlu1 %v436_v24 }
  0x5a   : > { %527 = vmin.xlane.f32.xlu0 %v526_v34  ;;  %620 = vmin.xlane.f32.xlu1 %v619_v59 }
  0x5e   : > { %713 = vmin.xlane.f32.xlu0 %v712_v12  ;;  %359 = vadd.xlane.f32.xlu1 %v358_v41 }
  0x62   : > { %593 = vmax.xlane.f32.xlu0 %v592_v48  ;;  %686 = vmax.xlane.f32.xlu1 %v685_v16 }
  0x66   : > { %617 = vmin.xlane.f32.xlu0 %v616_v53  ;;  %710 = vmin.xlane.f32.xlu1 %v709_v42 }
  0x6a   : > { %356 = vadd.xlane.f32.xlu0 %v355_v61  ;;  %683 = vmax.xlane.f32.xlu1 %v682_v49 }
  0x6e   : > { %707 = vmin.xlane.f32.xlu0 %v706_v0  ;;  %353 = vadd.xlane.f32.xlu1 %v352_v1 }
  0xb3   : > { %v447_v3 = vpop.xlane.xlu1 %446  ;;  %v423_v7 = vpop.xlane.xlu0 %422 }
  0xb7   : > { %v537_v8 = vpop.xlane.xlu1 %536  ;;  %v513_v36 = vpop.xlane.xlu0 %512 }
  0xb8   : > { %v517_v29 = vadd.f32 %v513_v36, %v423_v7  ;;  %v541_v33 = vadd.f32 %v537_v8, %v447_v3 }
  0xbb   : > { %v510_v22 = vpop.xlane.xlu1 %509  ;;  %v420_v23 = vpop.xlane.xlu0 %419 }
  0xbc   : > { %v516_v44 = vadd.f32 %v510_v22, %v420_v23 }
  0xbf   : > { %v444_v24 = vpop.xlane.xlu1 %443  ;;  %v603_v30 = vpop.xlane.xlu0 %602 }
  0xc0   : > { %v607_v38 = vadd.f32 %v603_v30, %v517_v29 }
  0xc3   : > { %v627_v31 = vpop.xlane.xlu1 %626  ;;  %v534_v32 = vpop.xlane.xlu0 %533 }
  0xc4   : > { %v631_v56 = vadd.f32 %v627_v31, %v541_v33  ;;  %v540_v16 = vadd.f32 %v534_v32, %v444_v24  ;;  %v809_v33 = vld [vmem:[%s1704_s5 + $0x8] sm:$0xff] }
  0xc7   : > { %v507_v39 = vpop.xlane.xlu1 %506  ;;  %v417_v34 = vpop.xlane.xlu0 %416 }
  0xc8   : > { %v515_v58 = vadd.f32 %v507_v39, %v417_v34 }
  0xcb   : > { %v693_v35 = vpop.xlane.xlu1 %692  ;;  %v600_v25 = vpop.xlane.xlu0 %599 }
  0xcc   : > { %v697_v59 = vadd.f32 %v693_v35, %v607_v38  ;;  %v606_v17 = vadd.f32 %v600_v25, %v516_v44  ;;  %v732_v35 = vld [vmem:[%s1703_s4] sm:$0x3]  ;;  %v1284_v38 = vmov 0   ;;  %v961_v44 = vld [vmem:[%s1705_s6 + $0x18] sm:$0xff] }
  0xcd   : > { %1229 = vset.pattern.permute.xlu1 %v1284_v38  ;;  %1228 = vset.pattern.permute.xlu0 %v1284_v38 }
  0xcf   : > { %v531_v28 = vpop.xlane.xlu1 %530  ;;  %v441_v27 = vpop.xlane.xlu0 %440 }
  0xd0   : > { %v539_v61 = vadd.f32 %v531_v28, %v441_v27  ;;  %v808_v28 = vld [vmem:[%s1704_s5] sm:$0xff] }
  0xd1   : > { %1200 = vmatprep.mubr.msk.f32.mxu1 %vm727_vm2, %v808_v28 }
  0xd3   : > { %v717_v37 = vpop.xlane.xlu1 %716  ;;  %v624_v4 = vpop.xlane.xlu0 %623 }
  0xd4   : > { %v721_v60 = vadd.f32 %v717_v37, %v631_v56  ;;  %v630_v18 = vadd.f32 %v624_v4, %v540_v16  ;;  %v810_v37 = vld [vmem:[%s1704_s5 + $0x10] sm:$0xff]  ;;  %v811_v4 = vld [vmem:[%s1704_s5 + $0x18] sm:$0xff] }
  0xd7   : > { %v363_v2 = vpop.xlane.xlu0 %362  ;;  %v414_v5 = vpop.xlane.xlu1 %413 }
  0xd8   : > { %v726_v40 = vsel %vm722_vm1, %v363_v2, %v697_v59 }
  0xd9   : > { %v731_v9 = vsel %vm727_vm2, %v726_v40, %v721_v60 }
  0xda   : > { %1188 = vmatpush3.msra.mxu0 %v731_v9 }
  0xdb   : > { %v504_v10 = vpop.xlane.xlu0 %503  ;;  %v597_v12 = vpop.xlane.xlu1 %596  ;;  %1189 = vmatprep.subr.mxu0 %v1282_v11 }
  0xdc   : > { %v605_v49 = vadd.f32 %v597_v12, %v515_v58  ;;  %v514_v63 = vadd.f32 %v504_v10, %v414_v5  ;;  %v959_v12 = vld [vmem:[%s1705_s6 + $0x8] sm:$0xff] }
  0xdf   : > { %v690_v41 = vpop.xlane.xlu0 %689  ;;  %v438_v43 = vpop.xlane.xlu1 %437 }
  0xe0   : > { %v696_v50 = vadd.f32 %v690_v41, %v606_v17  ;;  %v960_v41 = vld [vmem:[%s1705_s6 + $0x10] sm:$0xff] }
  0xe3   : > { %v528_v47 = vpop.xlane.xlu0 %527  ;;  %v621_v48 = vpop.xlane.xlu1 %620 }
  0xe4   : > { %v629_v62 = vadd.f32 %v621_v48, %v539_v61  ;;  %v538_v8 = vadd.f32 %v528_v47, %v438_v43  ;;  %v958_v43 = vld [vmem:[%s1705_s6] sm:$0xff] }
  0xe7   : > { %v714_v51 = vpop.xlane.xlu0 %713  ;;  %v360_v19 = vpop.xlane.xlu1 %359 }
  0xe8   : > { %v720_v53 = vadd.f32 %v714_v51, %v630_v18  ;;  %v725_v54 = vsel %vm722_vm1, %v360_v19, %v696_v50 }
  0xea   : > { %v730_v55 = vsel %vm727_vm2, %v725_v54, %v720_v53 }
  0xeb   : > { %v594_v42 = vpop.xlane.xlu0 %593  ;;  %1190 = vmatpush3.msra.mxu0 %v730_v55  ;;  %v687_v57 = vpop.xlane.xlu1 %686 }
  0xec   : > { %1191 = vmatprep.subr.mxu0 %v1282_v11  ;;  %v695_v0 = vadd.f32 %v687_v57, %v605_v49  ;;  %v604_v36 = vadd.f32 %v594_v42, %v514_v63 }
  0xef   : > { %v618_v45 = vpop.xlane.xlu0 %617  ;;  %v711_v46 = vpop.xlane.xlu1 %710 }
  0xf0   : > { %v719_v1 = vadd.f32 %v711_v46, %v629_v62  ;;  %v628_v24 = vadd.f32 %v618_v45, %v538_v8 }
  0xf3   : > { %v357_v3 = vpop.xlane.xlu0 %356  ;;  %v684_v7 = vpop.xlane.xlu1 %683 }
  0xf4   : > { %v724_v22 = vsel %vm722_vm1, %v357_v3, %v695_v0  ;;  %v694_v30 = vadd.f32 %v684_v7, %v604_v36 }
  0xf5   : > { %v729_v23 = vsel %vm727_vm2, %v724_v22, %v719_v1 }
  0xf6   : > { %1192 = vmatpush3.msra.mxu0 %v729_v23 }
  0xf7   : > { %v708_v31 = vpop.xlane.xlu0 %707  ;;  %v354_v32 = vpop.xlane.xlu1 %353  ;;  %1193 = vmatprep.subr.mxu0 %v1282_v11 }
  0xf8   : > { %v718_v39 = vadd.f32 %v708_v31, %v628_v24  ;;  %v723_v34 = vsel %vm722_vm1, %v354_v32, %v694_v30 }
  0xfa   : > { %v728_v25 = vsel %vm727_vm2, %v723_v34, %v718_v39 }
  0xfb   : > { %1194 = vmatpush3.msra.mxu0 %v728_v25 }
  0xfc   : > { %1196 = vmatmul.mubr.msk.f32.vlgmr.msra.gmra.mxu0 %vm733_vm3, %v732_v35 }
 0x1bc   : > { %v803_v27 = vpop.f32.mrf.mxu0 }
 0x1bd   : > { %v807_v11 = vmax.f32 %v803_v27, 0.0 }
 0x1be   : > { %v1197_v29 = vpop.f32.mrf.mxu0 }
 0x1bf   : > { %1198 = vmatprep.subr.msk.mxu1 %vm824_vm4, %v807_v11 }
 0x1c0   : > { %1199 = vmatpush3.msk.msra.mxu1 %vm824_vm4, %v807_v11 }
 0x1c1   : > { %1201 = vmatmul.mubr.msk.f32.vlgmr.msra.gmra.mxu1 %vm727_vm2, %v809_v33 }
 0x1c2   : > { %1203 = vmatprep.mubr.msk.f32.mxu1 %vm727_vm2, %v810_v37 }
 0x1c5   : > { %1204 = vmatmul.mubr.msk.f32.gmra.mxu1 %vm727_vm2, %v811_v4 }
 0x281   : > { %v1202_v56 = vpop.f32.mrf.mxu1 }
 0x282   : > { %v917_v59 = vsel %vm913_vm5, %v1202_v56, 0.0 }
 0x283   : > { %918 = vadd.xlane.f32.xlu1 %v917_v59  ;;  %v894_v60 = vpop.f32.mrf.mxu1 }
 0x284   : > { %v914_v2 = vsel %vm913_vm5, %v894_v60, 0.0 }
 0x285   : > { %915 = vadd.xlane.f32.xlu0 %v914_v2  ;;  %v1205_v5 = vpop.f32.mrf.mxu1 }
 0x286   : > { %v923_v40 = vsel %vm913_vm5, %v1205_v5, 0.0 }
 0x287   : > { %924 = vadd.xlane.f32.xlu1 %v923_v40  ;;  %v904_v9 = vpop.f32.mrf.mxu1 }
 0x288   : > { %v920_v10 = vsel %vm913_vm5, %v904_v9, 0.0 }
 0x289   : > { %921 = vadd.xlane.f32.xlu0 %v920_v10 }
 0x298   : > { %969 = vperm.xlu1 %1229, %v959_v12  }
 0x29c   : > { %974 = vperm.xlu1 %1229, %v960_v41  }
 0x29f   : > { %964 = vperm.xlu0 %1228, %v958_v43  }
 0x2a0   : > { %979 = vperm.xlu1 %1229, %v961_v44  }
 0x30c   : > { %v919_v47 = vpop.xlane.xlu1 %918 }
 0x30d   : > { %v1159_v48 = vmul.f32 -1.442695, %v919_v47 }
 0x30e   : > { %v916_v16 = vpop.xlane.xlu0 %915 }
 0x30f   : > { %1230 = vpow2.f32 %v1159_v48  ;;  %v1158_v17 = vmul.f32 -1.442695, %v916_v16  ;;  %v1024_v48 = vstv %s1020_s14  ;;  %v1027_v16 = vstv %s1164_s15 }
 0x310   : > { %v925_v18 = vpop.xlane.xlu1 %924 }
 0x311   : > { %1232 = vpow2.f32 %v1158_v17  ;;  %v1161_v50 = vmul.f32 -1.442695, %v925_v18 }
 0x312   : > { %v922_v51 = vpop.xlane.xlu0 %921 }
 0x313   : > { %1234 = vpow2.f32 %v1161_v50  ;;  %v1160_v19 = vmul.f32 -1.442695, %v922_v51 }
 0x314   : > { %v970_v46 = vpop.permute.xlu1 %969 }
 0x315   : > { %1236 = vpow2.f32 %v1160_v19 }
 0x318   : > { %v975_v36 = vpop.permute.xlu1 %974 }
 0x31a   : > { %v965_v1 = vpop.permute.xlu0 %964 }
 0x31c   : > { %v1231_v53 = vpop.eup %1230  ;;  %v980_v25 = vpop.permute.xlu1 %979 }
 0x31d   : > { %v939_v54 = vadd.f32 1.0, %v1231_v53 }
 0x31e   : > { %v1233_v55 = vpop.eup %1232 }
 0x31f   : > { %1238 = vrcp.f32 %v939_v54  ;;  %v938_v42 = vadd.f32 1.0, %v1233_v55 }
 0x320   : > { %v1235_v57 = vpop.eup %1234 }
 0x321   : > { %1240 = vrcp.f32 %v938_v42  ;;  %v941_v58 = vadd.f32 1.0, %v1235_v57 }
 0x322   : > { %v1237_v61 = vpop.eup %1236 }
 0x323   : > { %1242 = vrcp.f32 %v941_v58  ;;  %v940_v45 = vadd.f32 1.0, %v1237_v61 }
 0x325   : > { %1244 = vrcp.f32 %v940_v45 }
 0x32c   : > { %v1239_v49 = vpop.eup %1238 }
 0x32d   : > { %v1672_v63 = vmul.f32 %v1239_v49, %v1449_v52  ;;  %v1675_v0 = vmul.f32 %v1239_v49, %v1471_v6 }
 0x32e   : > { %v1241_v62 = vpop.eup %1240 }
 0x32f   : > { %v950_v3 = vmul.f32 %v1241_v62, %v1541_v13  ;;  %v1679_v7 = vmul.f32 %v1241_v62, %v1547_v26  ;;  %v984_v30 = vmul.f32 %v970_v46, %v1672_v63  ;;  %v985_v52 = vmul.f32 %v970_v46, %v1675_v0 }
 0x330   : > { %v1243_v8 = vpop.eup %1242 }
 0x331   : > { %v982_v22 = vmul.f32 %v965_v1, %v950_v3  ;;  %v983_v23 = vmul.f32 %v965_v1, %v1679_v7  ;;  %v956_v32 = vmul.f32 %v1243_v8, %v1392_v14  ;;  %v957_v13 = vmul.f32 %v1243_v8, %v1394_v15 }
 0x332   : > { %v1245_v24 = vpop.eup %1244 }
 0x333   : > { %v954_v31 = vmul.f32 %v1245_v24, %v1408_v20  ;;  %v955_v6 = vmul.f32 %v1245_v24, %v1410_v21  ;;  %v990_v34 = vadd.f32 %v984_v30, %v982_v22  ;;  %v999_v35 = vadd.f32 %v985_v52, %v983_v23 }
 0x334   : > { %v988_v28 = vmul.f32 %v980_v25, %v956_v32  ;;  %v989_v27 = vmul.f32 %v980_v25, %v957_v13 }
 0x335   : > { %v986_v26 = vmul.f32 %v975_v36, %v954_v31  ;;  %v987_v39 = vmul.f32 %v975_v36, %v955_v6 }
 0x337   : > { %v991_v11 = vadd.f32 %v990_v34, %v986_v26  ;;  %v1000_v29 = vadd.f32 %v999_v35, %v987_v39 }
 0x339   : > { %v992_v33 = vadd.f32 %v991_v11, %v988_v28  ;;  %v1001_v37 = vadd.f32 %v1000_v29, %v989_v27 }
 0x33b   : > { %v993_v4 = vrot.slane %v992_v33, 4  ;;  %v1002_v38 = vrot.slane %v1001_v37, 4 }
 0x33d   : > { %v994_v20 = vadd.f32 %v993_v4, %v992_v33  ;;  %v1003_v56 = vadd.f32 %v1002_v38, %v1001_v37 }
 0x33f   : > { %v995_v21 = vrot.slane %v994_v20, 2  ;;  %v1004_v59 = vrot.slane %v1003_v56, 2 }
 0x341   : > { %v996_v14 = vadd.f32 %v995_v21, %v994_v20  ;;  %v1005_v60 = vadd.f32 %v1004_v59, %v1003_v56 }
 0x343   : > { %v997_v15 = vrot.slane %v996_v14, 1  ;;  %v1006_v2 = vrot.slane %v1005_v60, 1 }
 0x345   : > { %v998_v5 = vadd.f32 %v997_v15, %v996_v14  ;;  %v1007_v40 = vadd.f32 %v1006_v2, %v1005_v60 }
 0x347   : > { %v1162_v9 = vmul.f32 -1.442695, %v998_v5  ;;  %v1163_v10 = vmul.f32 -1.442695, %v1007_v40 }
 0x349   : > { %1246 = vpow2.f32 %v1162_v9 }
 0x34a   : > { %1248 = vpow2.f32 %v1163_v10 }
 0x356   : > { %v1247_v12 = vpop.eup %1246 }
 0x357   : > { %v1249_v41 = vpop.eup %1248  ;;  %v1014_v43 = vadd.f32 1.0, %v1247_v12 }
 0x358   : > { %v1015_v44 = vadd.f32 1.0, %v1249_v41 }
 0x359   : > { %1250 = vrcp.f32 %v1014_v43 }
 0x35a   : > { %1252 = vrcp.f32 %v1015_v44 }
 0x366   : > { %v1251_v47 = vpop.eup %1250 }
 0x367   : > { %v1253_v17 = vpop.eup %1252  ;;  %v1022_v18 = vsub.f32 1.0, %v1251_v47  ;;  %v1028_v19 = vmul.f32 %v1251_v47, %v1027_v16 }
 0x368   : > { %v1023_v50 = vsub.f32 1.0, %v1253_v17  ;;  %v1029_v54 = vmul.f32 %v1253_v17, %v1027_v16 }
 0x369   : > { %v1025_v51 = vmul.f32 %v1024_v48, %v1022_v18 }
 0x36a   : > { %v1026_v53 = vmul.f32 %v1024_v48, %v1023_v50 }
 0x36b   : > { %v1030_v55 = vadd.f32 %v1028_v19, %v1025_v51 }
 0x36c   : > { %v1031_v42 = vadd.f32 %v1029_v54, %v1026_v53 }
 0x36d   : > { %v1032_v57 = vmul.f32 %v1030_v55, %v950_v3  ;;  %v1034_v58 = vmul.f32 %v1030_v55, %v1672_v63  ;;  %v1036_v61 = vmul.f32 %v1030_v55, %v954_v31  ;;  %v1038_v45 = vmul.f32 %v1030_v55, %v956_v32 }
 0x36e   : > { %v1033_v46 = vmul.f32 %v1031_v42, %v1679_v7  ;;  %v1035_v49 = vmul.f32 %v1031_v42, %v1675_v0  ;;  %v1037_v62 = vmul.f32 %v1031_v42, %v955_v6  ;;  %v1039_v1 = vmul.f32 %v1031_v42, %v957_v13 }
 0x370   : > { %v1173_v8 = vpack.c.bf16 %v1033_v46, %v1032_v57  ;;  %v1174_v36 = vpack.c.bf16 %v1035_v49, %v1034_v58  ;;  %v1175_v22 = vpack.c.bf16 %v1037_v62, %v1036_v61  ;;  %v1176_v23 = vpack.c.bf16 %v1039_v1, %v1038_v45 }
 0x372   : > { %1064 = vst [vmem:[%s319_s19] sm:$0xff] %v1173_v8  ;;  %1065 = vst [vmem:[%s319_s19 + $0x8] sm:$0xff] %v1174_v36 }
 0x373   : > { %1066 = vst [vmem:[%s319_s19 + $0x10] sm:$0xff] %v1175_v22  ;;  %1067 = vst [vmem:[%s319_s19 + $0x18] sm:$0xff] %v1176_v23 }
 0x374 PF: > { %s19_s27 = sadd.s32 1, %s1279_s27  }
 0x375   : > { %p16_p1 = scmp.ge.s32.totalorder %s19_s27, 4  }
 0x377   :  { %18 = sbr.rel (!%p16_p1) target bundleno = 1 (0x1), region = 93 }
 0x37c   :  { %1089 = vsyncpa [#allocation3], 1 }
 0x37d   :  { %1091 = vsyncpa [#allocation3 + $0x1], 1 }

// kernel: mfms_attention_block.7
= control target key start
LH: loop header
LB: loop body
LE: loop exit
PB: predicated region body
PF: predicated region fallthrough
CT: control target
= control target key end

     0   :  { %s1761_s24 = smov 0   ;;  %s2264_s0 = inlined_call_operand.vmem [shape: bf16[2,32,256], index: 0, kind: input, shape index: {}]   ;;  %s2265_s1 = inlined_call_operand.vmem [shape: bf16[32,288], index: 1, kind: input, shape index: {}]   ;;  %s2266_s2 = inlined_call_operand.vmem [shape: f32[32,1], index: 2, kind: input, shape index: {}]   ;;  %s2267_s3 = inlined_call_operand.vmem [shape: f32[32,1], index: 3, kind: input, shape index: {}]   ;;  %s2268_s4 = inlined_call_operand.vmem [shape: bf16[32,32], index: 4, kind: input, shape index: {}]   ;;  %s2269_s5 = inlined_call_operand.vmem [shape: f32[32,1], index: 5, kind: input, shape index: {}]   ;;  %s2270_s6 = inlined_call_operand.vmem [shape: f32[32,1], index: 6, kind: input, shape index: {}]   ;;  %s2271_s7 = inlined_call_operand.vmem [shape: bf16[2,32,256], index: 7, kind: output, shape index: {}]  }
   0x1 LB: > { %s1594_s25 = sadd.s32 4294967295, %s1704_s24   ;;  %p1598_p0 = scmp.ge.s32.totalorder %s1704_s24, 1  ;;  %s1704_s24 = sphi %s1761_s24, %s17_s24  }
   0x2   : > { %p237_p1 = scmp.lt.s32.totalorder %s1704_s24, 3 }
   0x4   : > { %p238_p2 = pnand %p1598_p0, %p237_p1 }
   0x5   : > { %p1769_p3 = scmp.lt.s32.totalorder (!%p238_p2), %s1594_s25, 1  ;;  %s1707_s8 = smov (!%p238_p2), 17  }
   0x6   : > { %241 = sbr.rel (%p238_p2) target bundleno = 831 (0x33f), region = 48  ;;  %s1708_s9 = smov (!%p238_p2), 16  }
   0x7   : > { %s1709_s10 = smov (!%p238_p2), 2   ;;  %s1710_s11 = smov (!%p238_p2), 32  }
   0x8   : > { %s1711_s12 = smov (!%p238_p2), 18   ;;  %s1712_s13 = smov (!%p238_p2), 34  }
   0x9   : > { %s1713_s14 = smov (!%p238_p2), 127   ;;  %s1714_s15 = smov (!%p238_p2), 95  }
   0xa   : > { %s1715_s16 = smov (!%p238_p2), 111   ;;  %s1716_s17 = smov (!%p238_p2), 112  }
   0xb   : > { %v336_v0 = vlaneseq  ;;  %vm286_vm0 = vcmask 134144   ;;  %vm291_vm1 = vcmask 273544   ;;  %v1706_v1 = vmov 0   ;;  %s2288_s25 = smov (!%p1769_p3, %s1594_s25), 1  ;;  %s1717_s18 = smov 126  }
   0xc   : > { %289 = vst.msk [vmem:[#allocation2 + $0x18] sm:$0xf] %vm286_vm0, %v1706_v1  ;;  %287 = vst.msk [vmem:[#allocation2] sm:$0xf] %vm286_vm0, %v1706_v1  ;;  %1269 = vmatprep.mubr.bf16.mxu1 %v1706_v1  ;;  %1686 = vset.pattern.permute.xlu1 %v1706_v1  ;;  %s1657_s27 = sshll.u32 %s2288_s25, 5  ;;  %vm325_vm8 = vcmask 1043592  }
   0xd   : > { %294 = vst.msk [vmem:[#allocation2 + $0x20] sm:$0xf] %vm291_vm1, %v1706_v1  ;;  %292 = vst.msk [vmem:[#allocation2 + $0x8] sm:$0xf] %vm291_vm1, %v1706_v1  ;;  %v337_v2 = vand.u32 127, %v336_v0  ;;  %1687 = vset.pattern.permute.xlu0 %v1706_v1  ;;  %s273_s30 = scalar_lea.vmem %s2264_s0, %s1657_s27  ;;  %vm326_vm9 = vcmask 1047556  }
   0xe   : > { %288 = vst.msk [vmem:[#allocation2 + $0xc] sm:$0xf] %vm286_vm0, %v1706_v1  ;;  %290 = vst.msk [vmem:[#allocation2 + $0x24] sm:$0xf] %vm286_vm0, %v1706_v1  ;;  %v284_v5 = vld [vmem:[%s273_s30 + $0x10] sm:$0xff]  ;;  %v282_v6 = vld [vmem:[%s273_s30] sm:$0xff] }
   0xf   : > { %293 = vst.msk [vmem:[#allocation2 + $0x14] sm:$0xf] %vm291_vm1, %v1706_v1  ;;  %295 = vst.msk [vmem:[#allocation2 + $0x2c] sm:$0xf] %vm291_vm1, %v1706_v1  ;;  %v338_v3 = vadd.s32 128, %v337_v2  ;;  %v343_v4 = vand.u32 15, %v337_v2  ;;  %304 = vrot.lane.b32.xlu0 %v284_v5, %s1707_s8  ;;  %300 = vrot.lane.b32.xlu1 %v282_v6, %s1707_s8 }
  0x10   : > { %v285_v7 = vld [vmem:[%s273_s30 + $0x18] sm:$0xff]  ;;  %v283_v9 = vld [vmem:[%s273_s30 + $0x8] sm:$0xff]  ;;  %vm312_vm10 = vcmask 138240   ;;  %vm1806_vm11 = vmor %vm326_vm9, %vm325_vm8  ;;  %vm532_vm12 = vcmask 130048   ;;  %vm459_vm15 = vcmask 15360   ;;  %s1718_s19 = smov 96  }
  0x11   : > { %v350_v8 = vand.u32 15, %v338_v3  ;;  %vm363_vm2 = vcmp.ge.s32.totalorder %v343_v4, 1  ;;  %vm365_vm3 = vcmp.lt.s32.totalorder %v343_v4, 15  ;;  %s1719_s20 = smov 110   ;;  %vm862_vm8 = vcmask 277504   ;;  %s1720_s21 = smov 94  }
  0x13   : > { %vm364_vm4 = vcmp.ge.s32.totalorder %v350_v8, 1  ;;  %vm366_vm5 = vcmp.lt.s32.totalorder %v350_v8, 15  ;;  %306 = vrot.lane.b32.xlu0 %v285_v7, %s1707_s8  ;;  %302 = vrot.lane.b32.xlu1 %v283_v9, %s1707_s8 }
  0x14   : > { %vm1798_vm6 = vmpackc.low %vm364_vm4, %vm363_vm2  ;;  %vm733_vm2 = vcmask 261120  }
  0x15   : > { %vm454_vm7 = vmpackc.low %vm366_vm5, %vm365_vm3  ;;  %v528_v11 = vsel %vm1798_vm6, 65537, %v1706_v1  ;;  %vm661_vm5 = vcmask 146432  }
  0x16   : > { %v455_v12 = vsel %vm454_vm7, 65537, %v1706_v1 }
  0x17   : > { %529 = vrot.lane.b32.xlu0 %v528_v11, %s1708_s9  ;;  %456 = vrot.lane.b32.xlu1 %v455_v12, %s1709_s10 }
  0x1b   : > { %730 = vrot.lane.b32.xlu0 %v528_v11, %s1710_s11  ;;  %658 = vrot.lane.b32.xlu1 %v455_v12, %s1711_s12  ;;  %s278_s12 = scalar_lea.vmem %s2271_s7, %s1657_s27 }
  0x1f   : > { %859 = vrot.lane.b32.xlu0 %v455_v12, %s1712_s13 }
  0x81   : > { %v305_v13 = vpop.permute.xlu0 %304  ;;  %v301_v14 = vpop.permute.xlu1 %300 }
  0x82   : > { %v310_v16 = vrot.slane %v305_v13, 4  ;;  %v308_v17 = vrot.slane %v301_v14, 4 }
  0x84   : > { %v315_v18 = vsel %vm312_vm10, %v310_v16, %v305_v13  ;;  %333 = vst.msk [vmem:[#allocation2 + $0x20] sm:$0xf] %vm286_vm0, %v310_v16  ;;  %v313_v19 = vsel %vm312_vm10, %v308_v17, %v301_v14  ;;  %329 = vst.msk [vmem:[#allocation2 + $0x8] sm:$0xf] %vm286_vm0, %v308_v17 }
  0x85   : > { %332 = vst.msk [vmem:[#allocation2 + $0x18] sm:$0xff] %vm1806_vm11, %v315_v18  ;;  %328 = vst.msk [vmem:[#allocation2] sm:$0xff] %vm1806_vm11, %v313_v19  ;;  %v307_v20 = vpop.permute.xlu0 %306  ;;  %v303_v21 = vpop.permute.xlu1 %302 }
  0x86   : > { %v311_v22 = vrot.slane %v307_v20, 4  ;;  %v309_v23 = vrot.slane %v303_v21, 4 }
  0x88   : > { %v316_v24 = vsel %vm312_vm10, %v311_v22, %v307_v20  ;;  %335 = vst.msk [vmem:[#allocation2 + $0x2c] sm:$0xf] %vm286_vm0, %v311_v22  ;;  %v314_v25 = vsel %vm312_vm10, %v309_v23, %v303_v21  ;;  %331 = vst.msk [vmem:[#allocation2 + $0x14] sm:$0xf] %vm286_vm0, %v309_v23 }
  0x89   : > { %334 = vst.msk [vmem:[#allocation2 + $0x24] sm:$0xff] %vm1806_vm11, %v316_v24  ;;  %330 = vst.msk [vmem:[#allocation2 + $0xc] sm:$0xff] %vm1806_vm11, %v314_v25  ;;  %v530_v47 = vpop.permute.xlu0 %529  ;;  %v457_v59 = vpop.permute.xlu1 %456  ;;  %vm424_vm11 = vcmask 1043456  }
  0x8a   : > { %v531_v49 = vrot.slane %v530_v47, 4  ;;  %v458_v61 = vrot.slane %v457_v59, 4 }
  0x8b   : > { %v389_v26 = vld [vmem:[#allocation2 + $0x20] sm:$0xf]  ;;  %v385_v30 = vld [vmem:[#allocation2 + $0x8] sm:$0xf] }
  0x8c   : > { %410 = vrot.lane.b32.xlu0 %v389_v26, %s1713_s14  ;;  %v1826_v27 = vld [vmem:[#allocation2 + $0x18] sm:$0xff]  ;;  %v1832_v31 = vld [vmem:[#allocation2] sm:$0xff]  ;;  %v795_v44 = vld [vmem:[#allocation2 + $0x8] sm:$0xf]  ;;  %vm1876_vm13 = vcmp.ne.s16.totalorder %v531_v49, 0  ;;  %v533_v53 = vsel %vm532_vm12, %v531_v49, %v530_v47  ;;  %vm1902_vm0 = vcmp.ne.s16.totalorder %v458_v61, 0  ;;  %v460_v5 = vsel %vm459_vm15, %v458_v61, %v457_v59 }
  0x8d   : > { %408 = vrot.lane.b32.xlu1 %v1826_v27, %s1713_s14  ;;  %v799_v34 = vld [vmem:[#allocation2 + $0x20] sm:$0xf]  ;;  %v1842_v36 = vsel %vm1798_vm6, %v1826_v27, 0  ;;  %v1852_v38 = vsel %vm1798_vm6, %v1832_v31, 0  ;;  %v594_v50 = vld [vmem:[#allocation2 + $0x8] sm:$0xf]  ;;  %v731_v12 = vpop.permute.xlu0 %730 }
  0x8e   : > { %v598_v46 = vld [vmem:[#allocation2 + $0x20] sm:$0xf]  ;;  %vm534_vm14 = vcmp.ne.s16.totalorder %v533_v53, 0  ;;  %v521_v58 = vld [vmem:[#allocation2 + $0x8] sm:$0xf]  ;;  %vm461_vm1 = vcmp.ne.s16.totalorder %v460_v5, 0 }
  0x8f   : > { %v391_v28 = vld [vmem:[#allocation2 + $0x2c] sm:$0xf]  ;;  %v387_v32 = vld [vmem:[#allocation2 + $0x14] sm:$0xf]  ;;  %v525_v52 = vld [vmem:[#allocation2 + $0x20] sm:$0xf] }
  0x90   : > { %414 = vrot.lane.b32.xlu0 %v391_v28, %s1713_s14  ;;  %v1829_v29 = vld [vmem:[#allocation2 + $0x24] sm:$0xff]  ;;  %v1835_v33 = vld [vmem:[#allocation2 + $0xc] sm:$0xff]  ;;  %v797_v45 = vld [vmem:[#allocation2 + $0x14] sm:$0xf]  ;;  %v541_v54 = vsel %vm1876_vm13, %v525_v52, 0  ;;  %v540_v57 = vsel %vm534_vm14, %v1826_v27, 0 }
  0x91   : > { %412 = vrot.lane.b32.xlu1 %v1829_v29, %s1713_s14  ;;  %v801_v35 = vld [vmem:[#allocation2 + $0x2c] sm:$0xf]  ;;  %v1847_v37 = vsel %vm1798_vm6, %v1829_v29, 0  ;;  %v1857_v39 = vsel %vm1798_vm6, %v1835_v33, 0  ;;  %v537_v60 = vsel %vm1876_vm13, %v521_v58, 0  ;;  %v542_v62 = vsel %vm534_vm14, %v1829_v29, 0 }
  0x92   : > { %v1612_v40 = vcombine.high %v1842_v36, %v1847_v37  ;;  %v1611_v41 = vcombine.low %v1842_v36, %v1847_v37  ;;  %v1610_v42 = vcombine.high %v1852_v38, %v1857_v39  ;;  %v1609_v43 = vcombine.low %v1852_v38, %v1857_v39  ;;  %v600_v48 = vld [vmem:[#allocation2 + $0x2c] sm:$0xf]  ;;  %v523_v63 = vld [vmem:[#allocation2 + $0x14] sm:$0xf]  ;;  %v447_v4 = vld [vmem:[#allocation2 + $0x20] sm:$0xf] }
  0x93   : > { %v527_v55 = vld [vmem:[#allocation2 + $0x2c] sm:$0xf]  ;;  %v539_v0 = vsel %vm1876_vm13, %v523_v63, 0  ;;  %v536_v3 = vsel %vm534_vm14, %v1832_v31, 0  ;;  %v468_v6 = vsel %vm1902_vm0, %v447_v4, 0  ;;  %v538_v7 = vsel %vm534_vm14, %v1835_v33, 0 }
  0x94   : > { %402 = vrot.lane.b32.xlu0 %v385_v30, %s1713_s14  ;;  %v543_v56 = vsel %vm1876_vm13, %v527_v55, 0  ;;  %v449_v8 = vld [vmem:[#allocation2 + $0x2c] sm:$0xf]  ;;  %v467_v10 = vsel %vm461_vm1, %v1826_v27, 0  ;;  %v443_v11 = vld [vmem:[#allocation2 + $0x8] sm:$0xf]  ;;  %v659_v30 = vpop.permute.xlu1 %658 }
  0x95   : > { %400 = vrot.lane.b32.xlu1 %v1832_v31, %s1713_s14  ;;  %v470_v9 = vsel %vm1902_vm0, %v449_v8, 0  ;;  %v464_v13 = vsel %vm1902_vm0, %v443_v11, 0  ;;  %v732_v14 = vrot.slane %v731_v12, 4  ;;  %v469_v15 = vsel %vm461_vm1, %v1829_v29, 0  ;;  %v445_v16 = vld [vmem:[#allocation2 + $0x14] sm:$0xf] }
  0x96   : > { %v466_v17 = vsel %vm1902_vm0, %v445_v16, 0  ;;  %v463_v19 = vsel %vm461_vm1, %v1832_v31, 0  ;;  %v727_v21 = vld [vmem:[#allocation2 + $0x20] sm:$0xf]  ;;  %v465_v23 = vsel %vm461_vm1, %v1835_v33, 0  ;;  %vm426_vm12 = vcmask 1039360  }
  0x97   : > { %vm1930_vm3 = vcmp.ne.s16.totalorder %v732_v14, 0  ;;  %v734_v20 = vsel %vm733_vm2, %v732_v14, %v731_v12  ;;  %v729_v24 = vld [vmem:[#allocation2 + $0x2c] sm:$0xf]  ;;  %v723_v28 = vld [vmem:[#allocation2 + $0x8] sm:$0xf]  ;;  %vm835_vm13 = vcmask 777216  }
  0x98   : > { %406 = vrot.lane.b32.xlu0 %v387_v32, %s1713_s14  ;;  %v742_v22 = vsel %vm1930_vm3, %v727_v21, 0  ;;  %vm735_vm4 = vcmp.ne.s16.totalorder %v734_v20, 0  ;;  %v744_v25 = vsel %vm1930_vm3, %v729_v24, 0  ;;  %v738_v32 = vsel %vm1930_vm3, %v723_v28, 0  ;;  %v655_v49 = vld [vmem:[#allocation2 + $0x20] sm:$0xf] }
  0x99   : > { %404 = vrot.lane.b32.xlu1 %v1835_v33, %s1713_s14  ;;  %v741_v26 = vsel %vm735_vm4, %v1826_v27, 0  ;;  %v737_v47 = vsel %vm735_vm4, %v1832_v31, 0  ;;  %v739_v51 = vsel %vm735_vm4, %v1835_v33, 0  ;;  %v657_v52 = vld [vmem:[#allocation2 + $0x2c] sm:$0xf]  ;;  %vm634_vm14 = vcmask 908288  }
  0x9a   : > { %v651_v55 = vld [vmem:[#allocation2 + $0x8] sm:$0xf]  ;;  %v856_v2 = vld [vmem:[#allocation2 + $0x20] sm:$0xf]  ;;  %v858_v5 = vld [vmem:[#allocation2 + $0x2c] sm:$0xf] }
  0x9b   : > { %v596_v11 = vld [vmem:[#allocation2 + $0x14] sm:$0xf]  ;;  %v852_v14 = vld [vmem:[#allocation2 + $0x8] sm:$0xf]  ;;  %v1690_v20 = vld [vmem:[%s2265_s1 + $0x4] ss:$12 sps:$4 sm:$0xff]  }
  0x9c   : > { %820 = vrot.lane.b32.xlu0 %v799_v34, %s1714_s15  ;;  %v660_v34 = vrot.slane %v659_v30, 4  ;;  %1216 = vmatprep.mubr.bf16.mxu0 %v1690_v20  ;;  %vm577_vm15 = vcmask 916480   ;;  %vm504_vm0 = vcmask 1031168   ;;  %vm778_vm1 = vcmask 785408  }
  0x9d   : > { %818 = vrot.lane.b32.xlu1 %v1826_v27, %s1714_s15 }
  0x9e   : > { %vm1959_vm6 = vcmp.ne.s16.totalorder %v660_v34, 0 }
  0x9f   : > { %v672_v53 = vsel %vm1959_vm6, %v657_v52, 0  ;;  %v1292_v52 = vld [vmem:[%s2266_s2 + $0x10] sm:$0xff] }
  0xa0   : > { %824 = vrot.lane.b32.xlu0 %v801_v35, %s1714_s15  ;;  %v743_v35 = vsel %vm735_vm4, %v1829_v29, 0  ;;  %vm907_vm4 = vcmask 769024  }
  0xa1   : > { %822 = vrot.lane.b32.xlu1 %v1829_v29, %s1714_s15 }
  0xa4   : > { %812 = vrot.lane.b32.xlu0 %v795_v44, %s1714_s15  ;;  %v725_v44 = vld [vmem:[#allocation2 + $0x14] sm:$0xf] }
  0xa5   : > { %810 = vrot.lane.b32.xlu1 %v1832_v31, %s1714_s15 }
  0xa8   : > { %816 = vrot.lane.b32.xlu0 %v797_v45, %s1714_s15  ;;  %v740_v45 = vsel %vm1930_vm3, %v725_v44, 0  ;;  %vm706_vm3 = vcmask 900096  }
  0xa9   : > { %814 = vrot.lane.b32.xlu1 %v1835_v33, %s1714_s15 }
  0xac   : > { %619 = vrot.lane.b32.xlu0 %v598_v46, %s1715_s16 }
  0xad   : > { %617 = vrot.lane.b32.xlu1 %v1826_v27, %s1715_s16 }
  0xb0   : > { %623 = vrot.lane.b32.xlu0 %v600_v48, %s1715_s16  ;;  %v662_v48 = vsel %vm661_vm5, %v660_v34, %v659_v30 }
  0xb1   : > { %621 = vrot.lane.b32.xlu1 %v1829_v29, %s1715_s16  ;;  %vm663_vm7 = vcmp.ne.s16.totalorder %v662_v48, 0 }
  0xb2   : > { %v671_v59 = vsel %vm663_vm7, %v1829_v29, 0  ;;  %v665_v63 = vsel %vm663_vm7, %v1832_v31, 0  ;;  %v667_v4 = vsel %vm663_vm7, %v1835_v33, 0 }
  0xb4   : > { %611 = vrot.lane.b32.xlu0 %v594_v50, %s1715_s16  ;;  %v670_v50 = vsel %vm1959_vm6, %v655_v49, 0 }
  0xb5   : > { %609 = vrot.lane.b32.xlu1 %v1832_v31, %s1715_s16 }
  0xb8   : > { %562 = vrot.lane.b32.xlu0 %v541_v54, %s1716_s17  ;;  %v669_v54 = vsel %vm663_vm7, %v1826_v27, 0 }
  0xb9   : > { %613 = vrot.lane.b32.xlu1 %v1835_v33, %s1715_s16 }
  0xbc   : > { %566 = vrot.lane.b32.xlu0 %v543_v56, %s1716_s17  ;;  %v860_v56 = vpop.permute.xlu0 %859 }
  0xbd   : > { %560 = vrot.lane.b32.xlu1 %v540_v57, %s1716_s17  ;;  %v666_v57 = vsel %vm1959_vm6, %v651_v55, 0  ;;  %v861_v58 = vrot.slane %v860_v56, 4  ;;  %v1293_v55 = vld [vmem:[%s2266_s2 + $0x18] sm:$0xff] }
  0xbf   : > { %vm1987_vm9 = vcmp.ne.s16.totalorder %v861_v58, 0 }
  0xc0   : > { %554 = vrot.lane.b32.xlu0 %v537_v60, %s1716_s17  ;;  %v653_v60 = vld [vmem:[#allocation2 + $0x14] sm:$0xf] }
  0xc1   : > { %564 = vrot.lane.b32.xlu1 %v542_v62, %s1716_s17  ;;  %v668_v61 = vsel %vm1959_vm6, %v653_v60, 0  ;;  %v1290_v60 = vld [vmem:[%s2266_s2] sm:$0xff] }
  0xc4   : > { %558 = vrot.lane.b32.xlu0 %v539_v0, %s1716_s17  ;;  %v863_v0 = vsel %vm862_vm8, %v861_v58, %v860_v56 }
  0xc5   : > { %552 = vrot.lane.b32.xlu1 %v536_v3, %s1716_s17  ;;  %v871_v3 = vsel %vm1987_vm9, %v856_v2, 0  ;;  %vm864_vm10 = vcmp.ne.s16.totalorder %v863_v0, 0 }
  0xc8   : > { %489 = vrot.lane.b32.xlu0 %v468_v6, %s1717_s18  ;;  %v873_v6 = vsel %vm1987_vm9, %v858_v5, 0  ;;  %v1322_v5 = vld [vmem:[%s2267_s3] sm:$0xff] }
  0xc9   : > { %556 = vrot.lane.b32.xlu1 %v538_v7, %s1716_s17  ;;  %v870_v7 = vsel %vm864_vm10, %v1826_v27, 0 }
  0xcc   : > { %493 = vrot.lane.b32.xlu0 %v470_v9, %s1717_s18 }
  0xcd   : > { %487 = vrot.lane.b32.xlu1 %v467_v10, %s1717_s18 }
  0xd0   : > { %481 = vrot.lane.b32.xlu0 %v464_v13, %s1717_s18  ;;  %v872_v13 = vsel %vm864_vm10, %v1829_v29, 0  ;;  %v866_v29 = vsel %vm864_vm10, %v1832_v31, 0 }
  0xd1   : > { %491 = vrot.lane.b32.xlu1 %v469_v15, %s1717_s18 }
  0xd4   : > { %485 = vrot.lane.b32.xlu0 %v466_v17, %s1717_s18 }
  0xd5   : > { %479 = vrot.lane.b32.xlu1 %v463_v19, %s1717_s18  ;;  %v867_v19 = vsel %vm1987_vm9, %v852_v14, 0  ;;  %v1291_v14 = vld [vmem:[%s2266_s2 + $0x8] sm:$0xff] }
  0xd8   : > { %763 = vrot.lane.b32.xlu0 %v742_v22, %s1718_s19  ;;  %v854_v22 = vld [vmem:[#allocation2 + $0x14] sm:$0xf] }
  0xd9   : > { %483 = vrot.lane.b32.xlu1 %v465_v23, %s1717_s18  ;;  %v869_v30 = vsel %vm1987_vm9, %v854_v22, 0  ;;  %v1441_v22 = vld [vmem:[%s2269_s5 + $0x10] sm:$0xff] }
  0xdc   : > { %767 = vrot.lane.b32.xlu0 %v744_v25, %s1718_s19 }
  0xdd   : > { %761 = vrot.lane.b32.xlu1 %v741_v26, %s1718_s19 }
  0xe0   : > { %755 = vrot.lane.b32.xlu0 %v738_v32, %s1718_s19 }
  0xe1   : > { %765 = vrot.lane.b32.xlu1 %v743_v35, %s1718_s19  ;;  %v868_v35 = vsel %vm864_vm10, %v1835_v33, 0 }
  0xe4   : > { %759 = vrot.lane.b32.xlu0 %v740_v45, %s1718_s19 }
  0xe5   : > { %753 = vrot.lane.b32.xlu1 %v737_v47, %s1718_s19 }
  0xe8   : > { %691 = vrot.lane.b32.xlu0 %v670_v50, %s1719_s20 }
  0xe9   : > { %757 = vrot.lane.b32.xlu1 %v739_v51, %s1718_s19 }
  0xec   : > { %695 = vrot.lane.b32.xlu0 %v672_v53, %s1719_s20 }
  0xed   : > { %689 = vrot.lane.b32.xlu1 %v669_v54, %s1719_s20 }
  0xf0   : > { %683 = vrot.lane.b32.xlu0 %v666_v57, %s1719_s20 }
  0xf1   : > { %693 = vrot.lane.b32.xlu1 %v671_v59, %s1719_s20  ;;  %v1324_v59 = vld [vmem:[%s2267_s3 + $0x10] sm:$0xff] }
  0xf4   : > { %687 = vrot.lane.b32.xlu0 %v668_v61, %s1719_s20 }
  0xf5   : > { %681 = vrot.lane.b32.xlu1 %v665_v63, %s1719_s20 }
  0xf8   : > { %892 = vrot.lane.b32.xlu0 %v871_v3, %s1720_s21 }
  0xf9   : > { %685 = vrot.lane.b32.xlu1 %v667_v4, %s1719_s20  ;;  %v1325_v4 = vld [vmem:[%s2267_s3 + $0x18] sm:$0xff] }
  0xfc   : > { %896 = vrot.lane.b32.xlu0 %v873_v6, %s1720_s21 }
  0xfd   : > { %890 = vrot.lane.b32.xlu1 %v870_v7, %s1720_s21 }
  0xfe   : > { %v411_v8 = vpop.permute.xlu0 %410 }
  0xff   : > { %v421_v9 = vrot.slane %v411_v8, 4  ;;  %v409_v10 = vpop.permute.xlu1 %408 }
 0x100   : > { %v420_v12 = vrot.slane %v409_v10, 4  ;;  %615 = vrot.lane.b32.xlu0 %v596_v11, %s1715_s16 }
 0x101   : > { %894 = vrot.lane.b32.xlu1 %v872_v13, %s1720_s21 }
 0x102   : > { %v430_v15 = vsel %vm424_vm11, %v420_v12, %v421_v9  ;;  %v415_v27 = vpop.permute.xlu0 %414 }
 0x103   : > { %v2013_v16 = vsel %vm426_vm12, %v409_v10, %v430_v15  ;;  %v423_v17 = vrot.slane %v415_v27, 4  ;;  %v413_v18 = vpop.permute.xlu1 %412  ;;  %v1439_v15 = vld [vmem:[%s2269_s5] sm:$0xff] }
 0x104   : > { %v422_v21 = vrot.slane %v413_v18, 4  ;;  %884 = vrot.lane.b32.xlu0 %v867_v19, %s1720_s21 }
 0x105   : > { %882 = vrot.lane.b32.xlu1 %v866_v29, %s1720_s21  ;;  %v1323_v29 = vld [vmem:[%s2267_s3 + $0x8] sm:$0xff] }
 0x106   : > { %v432_v23 = vsel %vm424_vm11, %v422_v21, %v423_v17  ;;  %v403_v24 = vpop.permute.xlu0 %402 }
 0x107   : > { %v2026_v25 = vsel %vm426_vm12, %v413_v18, %v432_v23  ;;  %v417_v26 = vrot.slane %v403_v24, 4  ;;  %v401_v28 = vpop.permute.xlu1 %400 }
 0x108   : > { %v1615_v32 = vcombine.low %v2013_v16, %v2026_v25  ;;  %v1616_v31 = vcombine.high %v2013_v16, %v2026_v25  ;;  %v416_v34 = vrot.slane %v401_v28, 4  ;;  %888 = vrot.lane.b32.xlu0 %v869_v30, %s1720_s21 }
 0x109   : > { %886 = vrot.lane.b32.xlu1 %v868_v35, %s1720_s21 }
 0x10a   : > { %v425_v44 = vsel %vm424_vm11, %v416_v34, %v417_v26  ;;  %v407_v45 = vpop.permute.xlu0 %406 }
 0x10b   : > { %v2040_v46 = vsel %vm426_vm12, %v401_v28, %v425_v44  ;;  %v419_v47 = vrot.slane %v407_v45, 4  ;;  %v405_v48 = vpop.permute.xlu1 %404  ;;  %v1440_v45 = vld [vmem:[%s2269_s5 + $0x8] sm:$0xff] }
 0x10c   : > { %v418_v49 = vrot.slane %v405_v48, 4  ;;  %1311 = vperm.xlu0 %1687, %v1293_v55   ;;  %v1473_v55 = vld [vmem:[%s2270_s6 + $0x10] sm:$0xff] }
 0x10d   : > { %1306 = vperm.xlu1 %1686, %v1292_v52  }
 0x10e   : > { %v428_v50 = vsel %vm424_vm11, %v418_v49, %v419_v47  ;;  %v821_v51 = vpop.permute.xlu0 %820  ;;  %v1471_v47 = vld [vmem:[%s2270_s6] sm:$0xff] }
 0x10f   : > { %v2047_v33 = vsel %vm426_vm12, %v405_v48, %v428_v50  ;;  %v831_v53 = vrot.slane %v821_v51, 4  ;;  %v819_v54 = vpop.permute.xlu1 %818 }
 0x110   : > { %v1613_v56 = vcombine.low %v2040_v46, %v2047_v33  ;;  %v1614_v57 = vcombine.high %v2040_v46, %v2047_v33  ;;  %v830_v58 = vrot.slane %v819_v54, 4  ;;  %1296 = vperm.xlu0 %1687, %v1290_v60  }
 0x111   : > { %1338 = vperm.xlu1 %1686, %v1324_v59  }
 0x112   : > { %v839_v61 = vsel %vm424_vm11, %v830_v58, %v831_v53  ;;  %v825_v62 = vpop.permute.xlu0 %824 }
 0x113   : > { %v2064_v63 = vsel %vm835_vm13, %v819_v54, %v839_v61  ;;  %v833_v0 = vrot.slane %v825_v62, 4  ;;  %v823_v2 = vpop.permute.xlu1 %822  ;;  %v1442_v54 = vld [vmem:[%s2269_s5 + $0x18] sm:$0xff] }
 0x114   : > { %v832_v3 = vrot.slane %v823_v2, 4  ;;  %1328 = vperm.xlu0 %1687, %v1322_v5  }
 0x115   : > { %1343 = vperm.xlu1 %1686, %v1325_v4   ;;  %v1472_v4 = vld [vmem:[%s2270_s6 + $0x8] sm:$0xff] }
 0x116   : > { %v841_v6 = vsel %vm424_vm11, %v832_v3, %v833_v0  ;;  %v813_v7 = vpop.permute.xlu0 %812 }
 0x117   : > { %v2074_v8 = vsel %vm835_vm13, %v823_v2, %v841_v6  ;;  %v827_v9 = vrot.slane %v813_v7, 4  ;;  %v811_v10 = vpop.permute.xlu1 %810 }
 0x118   : > { %v1639_v11 = vcombine.low %v2064_v63, %v2074_v8  ;;  %v1640_v12 = vcombine.high %v2064_v63, %v2074_v8  ;;  %v826_v13 = vrot.slane %v811_v10, 4  ;;  %1445 = vperm.xlu0 %1687, %v1439_v15  }
 0x119   : > { %1301 = vperm.xlu1 %1686, %v1291_v14  }
 0x11a   : > { %v834_v27 = vsel %vm424_vm11, %v826_v13, %v827_v9  ;;  %v817_v17 = vpop.permute.xlu0 %816 }
 0x11b   : > { %v2088_v18 = vsel %vm835_vm13, %v811_v10, %v834_v27  ;;  %v829_v19 = vrot.slane %v817_v17, 4  ;;  %v815_v20 = vpop.permute.xlu1 %814  ;;  %v1474_v10 = vld [vmem:[%s2270_s6 + $0x18] sm:$0xff] }
 0x11c   : > { %v828_v21 = vrot.slane %v815_v20, 4  ;;  %1455 = vperm.xlu0 %1687, %v1441_v22  }
 0x11d   : > { %1333 = vperm.xlu1 %1686, %v1323_v29  }
 0x11e   : > { %v837_v23 = vsel %vm424_vm11, %v828_v21, %v829_v19  ;;  %v620_v24 = vpop.permute.xlu0 %619 }
 0x11f   : > { %v2098_v26 = vsel %vm835_vm13, %v815_v20, %v837_v23  ;;  %v630_v28 = vrot.slane %v620_v24, 4  ;;  %v618_v30 = vpop.permute.xlu1 %617 }
 0x120   : > { %v1637_v34 = vcombine.low %v2088_v18, %v2098_v26  ;;  %v1638_v35 = vcombine.high %v2088_v18, %v2098_v26  ;;  %v629_v44 = vrot.slane %v618_v30, 4  ;;  %1477 = vperm.xlu0 %1687, %v1471_v47  }
 0x121   : > { %1450 = vperm.xlu1 %1686, %v1440_v45  }
 0x122   : > { %v638_v48 = vsel %vm424_vm11, %v629_v44, %v630_v28  ;;  %v624_v49 = vpop.permute.xlu0 %623 }
 0x123   : > { %v2112_v50 = vsel %vm634_vm14, %v618_v30, %v638_v48  ;;  %v632_v51 = vrot.slane %v624_v49, 4  ;;  %v622_v52 = vpop.permute.xlu1 %621 }
 0x124   : > { %v631_v53 = vrot.slane %v622_v52, 4  ;;  %1487 = vperm.xlu0 %1687, %v1473_v55  }
 0x125   : > { %1460 = vperm.xlu1 %1686, %v1442_v54  }
 0x126   : > { %v640_v58 = vsel %vm424_vm11, %v631_v53, %v632_v51  ;;  %v612_v59 = vpop.permute.xlu0 %611 }
 0x127   : > { %v2122_v60 = vsel %vm634_vm14, %v622_v52, %v640_v58  ;;  %v626_v61 = vrot.slane %v612_v59, 4  ;;  %v610_v62 = vpop.permute.xlu1 %609 }
 0x128   : > { %v1627_v0 = vcombine.low %v2112_v50, %v2122_v60  ;;  %v1628_v2 = vcombine.high %v2112_v50, %v2122_v60  ;;  %v625_v3 = vrot.slane %v610_v62, 4  ;;  %v1692_v50 = vld [vmem:[%s2265_s1 + $0x1c] ss:$12 sps:$4 sm:$0xff]   ;;  %v1694_v60 = vld [vmem:[%s2265_s1 + $0x18] ss:$12 sps:$4 sm:$0xff]  }
 0x129   : > { %1482 = vperm.xlu1 %1686, %v1472_v4  }
 0x12a   : > { %v633_v5 = vsel %vm424_vm11, %v625_v3, %v626_v61  ;;  %v563_v6 = vpop.permute.xlu0 %562 }
 0x12b   : > { %v2133_v7 = vsel %vm634_vm14, %v610_v62, %v633_v5  ;;  %v2135_v9 = vpop.permute.xlu1 %613  ;;  %v573_v27 = vrot.slane %v563_v6, 4 }
 0x12d   : > { %1492 = vperm.xlu1 %1686, %v1474_v10  }
 0x12e   : > { %v567_v13 = vpop.permute.xlu0 %566 }
 0x12f   : > { %v561_v14 = vpop.permute.xlu1 %560  ;;  %v575_v20 = vrot.slane %v567_v13, 4 }
 0x130   : > { %v572_v15 = vrot.slane %v561_v14, 4 }
 0x132   : > { %v555_v17 = vpop.permute.xlu0 %554  ;;  %v581_v29 = vsel %vm424_vm11, %v572_v15, %v573_v27 }
 0x133   : > { %v565_v19 = vpop.permute.xlu1 %564  ;;  %v582_v28 = vsel %vm577_vm15, %v561_v14, %v581_v29  ;;  %v569_v48 = vrot.slane %v555_v17, 4 }
 0x134   : > { %v574_v21 = vrot.slane %v565_v19, 4 }
 0x136   : > { %v559_v22 = vpop.permute.xlu0 %558  ;;  %v583_v23 = vsel %vm424_vm11, %v574_v21, %v575_v20 }
 0x137   : > { %v553_v24 = vpop.permute.xlu1 %552  ;;  %v584_v30 = vsel %vm577_vm15, %v565_v19, %v583_v23  ;;  %v571_v52 = vrot.slane %v559_v22, 4 }
 0x138   : > { %v568_v44 = vrot.slane %v553_v24, 4  ;;  %v1624_v45 = vcombine.high %v582_v28, %v584_v30  ;;  %v1623_v47 = vcombine.low %v582_v28, %v584_v30 }
 0x13a   : > { %v490_v49 = vpop.permute.xlu0 %489  ;;  %1184 = vmatprep.subr.bf16.mxu0 %v1624_v45  ;;  %v576_v53 = vsel %vm424_vm11, %v568_v44, %v569_v48 }
 0x13b   : > { %1185 = vmatpush1.bf16.msra.mxu0 %v1623_v47  ;;  %v557_v51 = vpop.permute.xlu1 %556  ;;  %v578_v59 = vsel %vm577_vm15, %v553_v24, %v576_v53  ;;  %v500_v6 = vrot.slane %v490_v49, 4 }
 0x13c   : > { %v570_v54 = vrot.slane %v557_v51, 4 }
 0x13e   : > { %v579_v55 = vsel %vm424_vm11, %v570_v54, %v571_v52  ;;  %v494_v58 = vpop.permute.xlu0 %493 }
 0x13f   : > { %v580_v61 = vsel %vm577_vm15, %v557_v51, %v579_v55  ;;  %v488_v62 = vpop.permute.xlu1 %487  ;;  %v502_v14 = vrot.slane %v494_v58, 4 }
 0x140   : > { %v1621_v3 = vcombine.low %v578_v59, %v580_v61  ;;  %v1622_v4 = vcombine.high %v578_v59, %v580_v61  ;;  %v499_v5 = vrot.slane %v488_v62, 4 }
 0x142   : > { %v482_v10 = vpop.permute.xlu0 %481  ;;  %1186 = vmatprep.subr.bf16.mxu0 %v1622_v4  ;;  %v508_v15 = vsel %vm424_vm11, %v499_v5, %v500_v6 }
 0x143   : > { %1187 = vmatpush1.bf16.msra.mxu0 %v1621_v3  ;;  %v492_v13 = vpop.permute.xlu1 %491  ;;  %v509_v20 = vsel %vm504_vm0, %v488_v62, %v508_v15  ;;  %v496_v28 = vrot.slane %v482_v10, 4 }
 0x144   : > { %v501_v27 = vrot.slane %v492_v13, 4 }
 0x146   : > { %v510_v17 = vsel %vm424_vm11, %v501_v27, %v502_v14  ;;  %v486_v19 = vpop.permute.xlu0 %485 }
 0x147   : > { %v511_v21 = vsel %vm504_vm0, %v492_v13, %v510_v17  ;;  %v480_v29 = vpop.permute.xlu1 %479  ;;  %v498_v45 = vrot.slane %v486_v19, 4 }
 0x148   : > { %v1619_v22 = vcombine.low %v509_v20, %v511_v21  ;;  %v1620_v23 = vcombine.high %v509_v20, %v511_v21  ;;  %v495_v24 = vrot.slane %v480_v29, 4 }
 0x14a   : > { %v764_v30 = vpop.permute.xlu0 %763  ;;  %1188 = vmatprep.subr.bf16.mxu0 %v1620_v23  ;;  %v503_v47 = vsel %vm424_vm11, %v495_v24, %v496_v28 }
 0x14b   : > { %1189 = vmatpush1.bf16.msra.mxu0 %v1619_v22  ;;  %v484_v44 = vpop.permute.xlu1 %483  ;;  %v505_v52 = vsel %vm504_vm0, %v480_v29, %v503_v47 }
 0x14c   : > { %v497_v48 = vrot.slane %v484_v44, 4 }
 0x14e   : > { %v506_v49 = vsel %vm424_vm11, %v497_v48, %v498_v45  ;;  %v768_v51 = vpop.permute.xlu0 %767 }
 0x14f   : > { %v507_v53 = vsel %vm504_vm0, %v484_v44, %v506_v49  ;;  %v762_v54 = vpop.permute.xlu1 %761 }
 0x150   : > { %v1617_v55 = vcombine.low %v505_v52, %v507_v53  ;;  %v1618_v58 = vcombine.high %v505_v52, %v507_v53 }
 0x152   : > { %v756_v59 = vpop.permute.xlu0 %755  ;;  %1190 = vmatprep.subr.bf16.mxu0 %v1618_v58 }
 0x153   : > { %1191 = vmatpush1.bf16.msra.mxu0 %v1617_v55  ;;  %v766_v61 = vpop.permute.xlu1 %765  ;;  %v770_v39 = vrot.slane %v756_v59, 4 }
 0x154   : > { %1192 = vmatprep.subr.bf16.mxu0 %v1616_v31  ;;  %v775_v25 = vrot.slane %v766_v61, 4 }
 0x156   : > { %v760_v62 = vpop.permute.xlu0 %759 }
 0x157   : > { %1193 = vmatpush1.bf16.msra.mxu0 %v1615_v32  ;;  %v754_v3 = vpop.permute.xlu1 %753  ;;  %v776_v32 = vrot.slane %v768_v51, 4  ;;  %v772_v37 = vrot.slane %v760_v62, 4 }
 0x158   : > { %1194 = vmatprep.subr.bf16.mxu0 %v1614_v57  ;;  %v773_v57 = vrot.slane %v762_v54, 4 }
 0x15a   : > { %v692_v4 = vpop.permute.xlu0 %691 }
 0x15b   : > { %1195 = vmatpush1.bf16.msra.mxu0 %v1613_v56  ;;  %v758_v5 = vpop.permute.xlu1 %757  ;;  %v784_v56 = vsel %vm424_vm11, %v775_v25, %v776_v32 }
 0x15c   : > { %1196 = vmatprep.subr.bf16.mxu0 %v1612_v40  ;;  %v774_v40 = vrot.slane %v764_v30, 4  ;;  %v771_v6 = vrot.slane %v758_v5, 4  ;;  %v785_v10 = vsel %vm778_vm1, %v766_v61, %v784_v56 }
 0x15e   : > { %v696_v31 = vpop.permute.xlu0 %695  ;;  %v782_v36 = vsel %vm424_vm11, %v773_v57, %v774_v40 }
 0x15f   : > { %1197 = vmatpush1.bf16.msra.mxu0 %v1611_v41  ;;  %v690_v16 = vpop.permute.xlu1 %689  ;;  %v769_v41 = vrot.slane %v754_v3, 4  ;;  %v704_v27 = vrot.slane %v696_v31, 4 }
 0x160   : > { %1198 = vmatprep.subr.bf16.mxu0 %v1610_v42  ;;  %v701_v17 = vrot.slane %v690_v16, 4 }
 0x161   : > { %v777_v15 = vsel %vm424_vm11, %v769_v41, %v770_v39 }
 0x162   : > { %v684_v46 = vpop.permute.xlu0 %683  ;;  %v779_v29 = vsel %vm778_vm1, %v754_v3, %v777_v15  ;;  %v627_v3 = vrot.slane %v2135_v9, 4 }
 0x163   : > { %1199 = vmatpush1.bf16.msra.mxu0 %v1609_v43  ;;  %v694_v33 = vpop.permute.xlu1 %693  ;;  %v780_v43 = vsel %vm424_vm11, %v771_v6, %v772_v37  ;;  %v698_v26 = vrot.slane %v684_v46, 4 }
 0x164   : > { %1200 = vmatprep.subr.bf16.mxu0 %v1640_v12  ;;  %v703_v13 = vrot.slane %v694_v33, 4  ;;  %v783_v12 = vsel %vm778_vm1, %v762_v54, %v782_v36  ;;  %v781_v63 = vsel %vm778_vm1, %v758_v5, %v780_v43 }
 0x165   : > { %v1636_v14 = vcombine.high %v783_v12, %v785_v10  ;;  %v1634_v22 = vcombine.high %v779_v29, %v781_v63  ;;  %v1633_v47 = vcombine.low %v779_v29, %v781_v63 }
 0x166   : > { %v688_v42 = vpop.permute.xlu0 %687  ;;  %v712_v20 = vsel %vm424_vm11, %v703_v13, %v704_v27 }
 0x167   : > { %1201 = vmatpush2.bf16.msra.mxu0 %v1639_v11  ;;  %v682_v38 = vpop.permute.xlu1 %681  ;;  %v702_v11 = vrot.slane %v692_v4, 4  ;;  %v700_v24 = vrot.slane %v688_v42, 4  ;;  %v713_v44 = vsel %vm706_vm3, %v694_v33, %v712_v20 }
 0x168   : > { %1202 = vmatprep.subr.bf16.mxu0 %v1638_v35  ;;  %v1635_v35 = vcombine.low %v783_v12, %v785_v10  ;;  %v697_v28 = vrot.slane %v682_v38, 4 }
 0x169   : > { %v710_v23 = vsel %vm424_vm11, %v701_v17, %v702_v11 }
 0x16a   : > { %v893_v19 = vpop.permute.xlu0 %892  ;;  %v711_v48 = vsel %vm706_vm3, %v690_v16, %v710_v23  ;;  %v705_v51 = vsel %vm424_vm11, %v697_v28, %v698_v26 }
 0x16b   : > { %1203 = vmatpush2.bf16.msra.mxu0 %v1637_v34  ;;  %v686_v8 = vpop.permute.xlu1 %685  ;;  %v1632_v49 = vcombine.high %v711_v48, %v713_v44  ;;  %v903_v52 = vrot.slane %v893_v19, 4  ;;  %v1631_v4 = vcombine.low %v711_v48, %v713_v44  ;;  %v707_v5 = vsel %vm706_vm3, %v682_v38, %v705_v51  ;;  %v1691_v19 = vld [vmem:[%s2265_s1 + $0x8] ss:$12 sps:$4 sm:$0xff]  }
 0x16c   : > { %v699_v21 = vrot.slane %v686_v8, 4  ;;  %1204 = vmatprep.subr.bf16.mxu0 %v1636_v14 }
 0x16e   : > { %v897_v30 = vpop.permute.xlu0 %896  ;;  %v708_v34 = vsel %vm424_vm11, %v699_v21, %v700_v24 }
 0x16f   : > { %1205 = vmatpush2.bf16.msra.mxu0 %v1635_v35  ;;  %v891_v18 = vpop.permute.xlu1 %890  ;;  %v709_v54 = vsel %vm706_vm3, %v686_v8, %v708_v34  ;;  %v905_v59 = vrot.slane %v897_v30, 4 }
 0x170   : > { %v902_v45 = vrot.slane %v891_v18, 4  ;;  %1206 = vmatprep.subr.bf16.mxu0 %v1634_v22  ;;  %v1630_v31 = vcombine.high %v707_v5, %v709_v54  ;;  %v1629_v37 = vcombine.low %v707_v5, %v709_v54 }
 0x172   : > { %v616_v53 = vpop.permute.xlu0 %615  ;;  %v911_v62 = vsel %vm424_vm11, %v902_v45, %v903_v52 }
 0x173   : > { %v628_v55 = vrot.slane %v616_v53, 4  ;;  %1207 = vmatpush2.bf16.msra.mxu0 %v1633_v47  ;;  %v895_v58 = vpop.permute.xlu1 %894  ;;  %v912_v46 = vsel %vm907_vm4, %v891_v18, %v911_v62 }
 0x174   : > { %v904_v61 = vrot.slane %v895_v58, 4  ;;  %1208 = vmatprep.subr.bf16.mxu0 %v1632_v49 }
 0x175   : > { %v636_v32 = vsel %vm424_vm11, %v627_v3, %v628_v55 }
 0x176   : > { %v885_v16 = vpop.permute.xlu0 %884  ;;  %v913_v25 = vsel %vm424_vm11, %v904_v61, %v905_v59  ;;  %v637_v38 = vsel %vm634_vm14, %v2135_v9, %v636_v32 }
 0x177   : > { %1209 = vmatpush2.bf16.msra.mxu0 %v1631_v4  ;;  %v883_v57 = vpop.permute.xlu1 %882  ;;  %v914_v33 = vsel %vm907_vm4, %v895_v58, %v913_v25  ;;  %v899_v40 = vrot.slane %v885_v16, 4  ;;  %v1626_v12 = vcombine.high %v2133_v7, %v637_v38  ;;  %v1625_v17 = vcombine.low %v2133_v7, %v637_v38 }
 0x178   : > { %v898_v56 = vrot.slane %v883_v57, 4  ;;  %1210 = vmatprep.subr.bf16.mxu0 %v1630_v31  ;;  %v1644_v6 = vcombine.high %v912_v46, %v914_v33  ;;  %v1643_v36 = vcombine.low %v912_v46, %v914_v33 }
 0x17a   : > { %v889_v41 = vpop.permute.xlu0 %888  ;;  %1249 = vmatprep.subr.bf16.mxu1 %v1644_v6  ;;  %v906_v39 = vsel %vm424_vm11, %v898_v56, %v899_v40 }
 0x17b   : > { %v901_v42 = vrot.slane %v889_v41, 4  ;;  %1211 = vmatpush2.bf16.msra.mxu0 %v1629_v37  ;;  %1250 = vmatpush1.bf16.msra.mxu1 %v1643_v36  ;;  %v887_v10 = vpop.permute.xlu1 %886  ;;  %v908_v14 = vsel %vm907_vm4, %v883_v57, %v906_v39 }
 0x17c   : > { %v900_v43 = vrot.slane %v887_v10, 4  ;;  %1212 = vmatprep.subr.bf16.mxu0 %v1628_v2  ;;  %v1688_v2 = vld [vmem:[%s2265_s1] ss:$12 sps:$4 sm:$0xff]  }
 0x17e   : > { %v909_v13 = vsel %vm424_vm11, %v900_v43, %v901_v42 }
 0x17f   : > { %v910_v15 = vsel %vm907_vm4, %v887_v10, %v909_v13  ;;  %1213 = vmatpush2.bf16.msra.mxu0 %v1627_v0  ;;  %v1695_v0 = vld [vmem:[%s2265_s1 + $0x20] ss:$12 sps:$4 sm:$0xff]  }
 0x180   : > { %v1641_v9 = vcombine.low %v908_v14, %v910_v15  ;;  %v1642_v27 = vcombine.high %v908_v14, %v910_v15  ;;  %1214 = vmatprep.subr.bf16.mxu0 %v1626_v12 }
 0x182   : > { %1251 = vmatprep.subr.bf16.mxu1 %v1642_v27 }
 0x183   : > { %1215 = vmatpush2.bf16.msra.mxu0 %v1625_v17  ;;  %1252 = vmatpush1.bf16.msra.mxu1 %v1641_v9 }
 0x186   : > { %1217 = vmatmul.mubr.bf16.vlgmr.msra.gmra.mxu0 %v1688_v2  ;;  %1645 = vmatmul.mubr.msk.bf16.vlgmr.msra.gmra.mxu1 %vm733_vm2, %v1691_v19 }
 0x187   : > { %1226 = vmatprep.mubr.bf16.mxu0 %v1692_v50  ;;  %1279 = vmatprep.mubr.bf16.mxu1 %v1706_v1  ;;  %v1312_v23 = vpop.permute.xlu0 %1311  ;;  %v1696_v50 = vld [vmem:[%s2268_s4] sm:$0xff]  }
 0x188   : > { %v1307_v7 = vpop.permute.xlu1 %1306 }
 0x18b   : > { %v1297_v48 = vpop.permute.xlu0 %1296 }
 0x18c   : > { %v1339_v63 = vpop.permute.xlu1 %1338 }
 0x18e   : > { %1227 = vmatmul.mubr.bf16.gmra.mxu0 %v1694_v60  ;;  %1646 = vmatmul.mubr.msk.bf16.gmra.mxu1 %vm733_vm2, %v1695_v0  ;;  %v1697_v60 = vld [vmem:[%s2268_s4 + $0x8] sm:$0xff]  }
 0x18f   : > { %1418 = vmatprep.mubr.bf16.mxu1 %v1706_v1  ;;  %v1329_v40 = vpop.permute.xlu0 %1328 }
 0x190   : > { %v1344_v35 = vpop.permute.xlu1 %1343 }
 0x193   : > { %v1446_v0 = vpop.permute.xlu0 %1445 }
 0x194   : > { %v1302_v18 = vpop.permute.xlu1 %1301 }
 0x198   : > { %v1334_v16 = vpop.permute.xlu1 %1333 }
 0x246   : > { %v1218_v8 = vpop.f32.mrf.mxu0  ;;  %v1271_v11 = vpop.f32.mrf.mxu1 }
 0x247   : > { %v1272_v59 = vadd.f32 %v1271_v11, %v1218_v8 }
 0x248   : > { %v1220_v20 = vpop.f32.mrf.mxu0  ;;  %v1273_v21 = vpop.f32.mrf.mxu1 }
 0x249   : > { %v1274_v49 = vadd.f32 %v1273_v21, %v1220_v20  ;;  %v1314_v56 = vmul.f32 %v1297_v48, %v1272_v59 }
 0x24a   : > { %v1222_v29 = vpop.f32.mrf.mxu0  ;;  %v1275_v22 = vpop.f32.mrf.mxu1 }
 0x24b   : > { %v1276_v52 = vadd.f32 %v1275_v22, %v1222_v29  ;;  %v1315_v5 = vmul.f32 %v1297_v48, %v1274_v49  ;;  %v1346_v13 = vadd.f32 %v1329_v40, %v1314_v56 }
 0x24c   : > { %v1224_v24 = vpop.f32.mrf.mxu0  ;;  %v1277_v28 = vpop.f32.mrf.mxu1 }
 0x24d   : > { %v1278_v26 = vadd.f32 %v1277_v28, %v1224_v24  ;;  %v1316_v25 = vmul.f32 %v1302_v18, %v1276_v52  ;;  %v1347_v37 = vadd.f32 %v1329_v40, %v1315_v5  ;;  %v1354_v2 = vmax.f32 %v1346_v13, 0.0 }
 0x24e   : > { %v1228_v30 = vpop.f32.mrf.mxu0  ;;  %v1281_v44 = vpop.f32.mrf.mxu1 }
 0x24f   : > { %v1282_v34 = vadd.f32 %v1281_v44, %v1228_v30  ;;  %v1317_v55 = vmul.f32 %v1302_v18, %v1278_v26  ;;  %v1348_v42 = vadd.f32 %v1334_v16, %v1316_v25  ;;  %v1355_v14 = vmax.f32 %v1347_v37, 0.0 }
 0x250   : > { %v1230_v45 = vpop.f32.mrf.mxu0  ;;  %v1283_v47 = vpop.f32.mrf.mxu1 }
 0x251   : > { %v1284_v51 = vadd.f32 %v1283_v47, %v1230_v45  ;;  %v1318_v61 = vmul.f32 %v1307_v7, %v1282_v34  ;;  %v1349_v57 = vadd.f32 %v1334_v16, %v1317_v55  ;;  %v1356_v9 = vmax.f32 %v1348_v42, 0.0 }
 0x252   : > { %v1232_v53 = vpop.f32.mrf.mxu0  ;;  %v1285_v54 = vpop.f32.mrf.mxu1 }
 0x253   : > { %v1319_v58 = vmul.f32 %v1307_v7, %v1284_v51  ;;  %v1286_v62 = vadd.f32 %v1285_v54, %v1232_v53  ;;  %v1350_v6 = vadd.f32 %v1339_v63, %v1318_v61  ;;  %v1357_v38 = vmax.f32 %v1349_v57, 0.0  ;;  %v1451_v7 = vpop.permute.xlu1 %1450 }
 0x254   : > { %v1234_v3 = vpop.f32.mrf.mxu0  ;;  %v1287_v4 = vpop.f32.mrf.mxu1  ;;  %v1366_v19 = vpack.c.bf16 %v1356_v9, %v1354_v2 }
 0x255   : > { %v1288_v31 = vadd.f32 %v1287_v4, %v1234_v3  ;;  %v1320_v32 = vmul.f32 %v1312_v23, %v1286_v62  ;;  %v1351_v46 = vadd.f32 %v1339_v63, %v1319_v58  ;;  %v1358_v12 = vmax.f32 %v1350_v6, 0.0  ;;  %v1456_v63 = vpop.permute.xlu0 %1455 }
 0x256   : > { %v1367_v17 = vpack.c.bf16 %v1357_v38, %v1355_v14 }
 0x257   : > { %v1321_v33 = vmul.f32 %v1312_v23, %v1288_v31  ;;  %v1352_v36 = vadd.f32 %v1344_v35, %v1320_v32  ;;  %v1359_v39 = vmax.f32 %v1351_v46, 0.0  ;;  %v1461_v8 = vpop.permute.xlu1 %1460 }
 0x259   : > { %v1353_v41 = vadd.f32 %v1344_v35, %v1321_v33  ;;  %v1360_v10 = vmax.f32 %v1352_v36, 0.0  ;;  %v1478_v21 = vpop.permute.xlu0 %1477 }
 0x25b   : > { %v1361_v43 = vmax.f32 %v1353_v41, 0.0  ;;  %v1368_v27 = vpack.c.bf16 %v1360_v10, %v1358_v12  ;;  %v1483_v28 = vpop.permute.xlu1 %1482 }
 0x25d   : > { %v1369_v15 = vpack.c.bf16 %v1361_v43, %v1359_v39  ;;  %v1488_v51 = vpop.permute.xlu0 %1487 }
 0x25f   : > { %1398 = vmatprep.subr.bf16.mxu1 %v1369_v15  ;;  %v1493_v4 = vpop.permute.xlu1 %1492 }
 0x260   : > { %1399 = vmatpush1.bf16.msra.mxu1 %v1368_v27 }
 0x261   : > { %1400 = vmatprep.subr.bf16.mxu1 %v1367_v17 }
 0x264   : > { %1401 = vmatpush1.bf16.msra.mxu1 %v1366_v19 }
 0x267   : > { %1649 = vmatmul.mubr.msk.bf16.vlgmr.msra.gmra.mxu1 %vm733_vm2, %v1696_v50 }
 0x268   : > { %1428 = vmatprep.mubr.bf16.mxu1 %v1706_v1 }
 0x26f   : > { %1650 = vmatmul.mubr.msk.bf16.gmra.mxu1 %vm733_vm2, %v1697_v60 }
 0x327   : > { %v1420_v11 = vpop.f32.mrf.mxu1 }
 0x328   : > { %v1463_v20 = vmul.f32 %v1446_v0, %v1420_v11 }
 0x329   : > { %v1422_v35 = vpop.f32.mrf.mxu1 }
 0x32a   : > { %v1495_v29 = vadd.f32 %v1478_v21, %v1463_v20  ;;  %v1464_v22 = vmul.f32 %v1446_v0, %v1422_v35 }
 0x32b   : > { %v1424_v23 = vpop.f32.mrf.mxu1 }
 0x32c   : > { %v1496_v24 = vadd.f32 %v1478_v21, %v1464_v22  ;;  %v1465_v1 = vmul.f32 %v1451_v7, %v1424_v23  ;;  %v1503_v44 = vmax.f32 %v1495_v29, 0.0 }
 0x32d   : > { %v1426_v30 = vpop.f32.mrf.mxu1 }
 0x32e   : > { %v1504_v18 = vmax.f32 %v1496_v24, 0.0  ;;  %v1497_v26 = vadd.f32 %v1483_v28, %v1465_v1  ;;  %v1466_v34 = vmul.f32 %v1451_v7, %v1426_v30 }
 0x32f   : > { %v1430_v45 = vpop.f32.mrf.mxu1 }
 0x330   : > { %v1659_v47 = vpack.c.bf16 %v1504_v18, %v1503_v44  ;;  %v1498_v48 = vadd.f32 %v1483_v28, %v1466_v34  ;;  %v1467_v49 = vmul.f32 %v1456_v63, %v1430_v45  ;;  %v1505_v53 = vmax.f32 %v1497_v26, 0.0 }
 0x331   : > { %v1432_v52 = vpop.f32.mrf.mxu1 }
 0x332   : > { %1535 = vst [vmem:[%s278_s12] sm:$0xff] %v1659_v47  ;;  %v1506_v54 = vmax.f32 %v1498_v48, 0.0  ;;  %v1499_v55 = vadd.f32 %v1488_v51, %v1467_v49  ;;  %v1468_v58 = vmul.f32 %v1456_v63, %v1432_v52 }
 0x333   : > { %v1434_v59 = vpop.f32.mrf.mxu1 }
 0x334   : > { %v1660_v61 = vpack.c.bf16 %v1506_v54, %v1505_v53  ;;  %v1500_v62 = vadd.f32 %v1488_v51, %v1468_v58  ;;  %v1469_v3 = vmul.f32 %v1461_v8, %v1434_v59  ;;  %v1507_v31 = vmax.f32 %v1499_v55, 0.0 }
 0x335   : > { %v1436_v5 = vpop.f32.mrf.mxu1 }
 0x336   : > { %1536 = vst [vmem:[%s278_s12 + $0x8] sm:$0xff] %v1660_v61  ;;  %v1508_v16 = vmax.f32 %v1500_v62, 0.0  ;;  %v1501_v25 = vadd.f32 %v1493_v4, %v1469_v3  ;;  %v1470_v32 = vmul.f32 %v1461_v8, %v1436_v5 }
 0x338   : > { %v1661_v57 = vpack.c.bf16 %v1508_v16, %v1507_v31  ;;  %v1502_v46 = vadd.f32 %v1493_v4, %v1470_v32  ;;  %v1509_v33 = vmax.f32 %v1501_v25, 0.0 }
 0x33a   : > { %1537 = vst [vmem:[%s278_s12 + $0x10] sm:$0xff] %v1661_v57  ;;  %v1510_v40 = vmax.f32 %v1502_v46, 0.0 }
 0x33c   : > { %v1662_v56 = vpack.c.bf16 %v1510_v40, %v1509_v33 }
 0x33e   : > { %1538 = vst [vmem:[%s278_s12 + $0x18] sm:$0xff] %v1662_v56 }
 0x33f PF: > { %s17_s24 = sadd.s32 1, %s1704_s24  }
 0x340   : > { %p14_p4 = scmp.ge.s32.totalorder %s17_s24, 4  }
 0x342   :  { %16 = sbr.rel (!%p14_p4) target bundleno = 1 (0x1), region = 78 }

// kernel: mfms_attention_block.9
= control target key start
LH: loop header
LB: loop body
LE: loop exit
PB: predicated region body
PF: predicated region fallthrough
CT: control target
= control target key end

     0   :  { %s1510_s15 = smov 0   ;;  %s1985_s0 = inlined_call_operand.vmem [shape: bf16[2,32,256], index: 0, kind: input, shape index: {}]   ;;  %s1986_s1 = inlined_call_operand.vmem [shape: bf16[32,288], index: 1, kind: input, shape index: {}]   ;;  %s1987_s2 = inlined_call_operand.vmem [shape: f32[32,1], index: 2, kind: input, shape index: {}]   ;;  %s1988_s3 = inlined_call_operand.vmem [shape: f32[32,1], index: 3, kind: input, shape index: {}]   ;;  %s1989_s4 = inlined_call_operand.vmem [shape: bf16[2,32,256], index: 4, kind: output, shape index: {}]  }
   0x1 LB: > { %s1364_s16 = sadd.s32 4294967295, %s1468_s15   ;;  %p1368_p0 = scmp.ge.s32.totalorder %s1468_s15, 1  ;;  %s1468_s15 = sphi %s1510_s15, %s14_s15  }
   0x2   : > { %p162_p1 = scmp.lt.s32.totalorder %s1468_s15, 3 }
   0x4   : > { %p163_p2 = pnand %p1368_p0, %p162_p1 }
   0x5   : > { %p1518_p3 = scmp.lt.s32.totalorder (!%p163_p2), %s1364_s16, 1  ;;  %s1471_s22 = smov (!%p163_p2), 17  }
   0x6   : > { %166 = sbr.rel (%p163_p2) target bundleno = 608 (0x260), region = 36  ;;  %s1472_s23 = smov (!%p163_p2), 16  }
   0x7   : > { %s1473_s24 = smov (!%p163_p2), 2   ;;  %s1474_s25 = smov (!%p163_p2), 32  }
   0x8   : > { %s1475_s26 = smov (!%p163_p2), 18   ;;  %s1476_s27 = smov (!%p163_p2), 34  }
   0x9   : > { %s1477_s28 = smov (!%p163_p2), 127   ;;  %s1478_s29 = smov (!%p163_p2), 95  }
   0xa   : > { %s1479_s30 = smov (!%p163_p2), 111   ;;  %s1480_s5 = smov (!%p163_p2), 112  }
   0xb   : > { %v255_v0 = vlaneseq  ;;  %vm205_vm0 = vcmask 134144   ;;  %vm210_vm1 = vcmask 273544   ;;  %v1470_v1 = vmov 0   ;;  %s2006_s16 = smov (!%p1518_p3, %s1364_s16), 1  ;;  %s1481_s6 = smov 126  }
   0xc   : > { %208 = vst.msk [vmem:[#allocation2 + $0x18] sm:$0xf] %vm205_vm0, %v1470_v1  ;;  %206 = vst.msk [vmem:[#allocation2] sm:$0xf] %vm205_vm0, %v1470_v1  ;;  %1188 = vmatprep.mubr.bf16.mxu1 %v1470_v1  ;;  %1452 = vset.pattern.permute.xlu1 %v1470_v1  ;;  %s1423_s18 = sshll.u32 %s2006_s16, 5  ;;  %vm244_vm8 = vcmask 1043592  }
   0xd   : > { %213 = vst.msk [vmem:[#allocation2 + $0x20] sm:$0xf] %vm210_vm1, %v1470_v1  ;;  %211 = vst.msk [vmem:[#allocation2 + $0x8] sm:$0xf] %vm210_vm1, %v1470_v1  ;;  %v256_v2 = vand.u32 127, %v255_v0  ;;  %1453 = vset.pattern.permute.xlu0 %v1470_v1  ;;  %s192_s21 = scalar_lea.vmem %s1985_s0, %s1423_s18  ;;  %vm245_vm9 = vcmask 1047556   ;;  %s1976_s20 = scalar_lea.vmem %s1989_s4, %s1423_s18 }
   0xe   : > { %207 = vst.msk [vmem:[#allocation2 + $0xc] sm:$0xf] %vm205_vm0, %v1470_v1  ;;  %209 = vst.msk [vmem:[#allocation2 + $0x24] sm:$0xf] %vm205_vm0, %v1470_v1  ;;  %v203_v5 = vld [vmem:[%s192_s21 + $0x10] sm:$0xff]  ;;  %v201_v6 = vld [vmem:[%s192_s21] sm:$0xff] }
   0xf   : > { %212 = vst.msk [vmem:[#allocation2 + $0x14] sm:$0xf] %vm210_vm1, %v1470_v1  ;;  %214 = vst.msk [vmem:[#allocation2 + $0x2c] sm:$0xf] %vm210_vm1, %v1470_v1  ;;  %v257_v3 = vadd.s32 128, %v256_v2  ;;  %v262_v4 = vand.u32 15, %v256_v2  ;;  %223 = vrot.lane.b32.xlu0 %v203_v5, %s1471_s22  ;;  %219 = vrot.lane.b32.xlu1 %v201_v6, %s1471_s22 }
  0x10   : > { %v204_v8 = vld [vmem:[%s192_s21 + $0x18] sm:$0xff]  ;;  %v202_v9 = vld [vmem:[%s192_s21 + $0x8] sm:$0xff]  ;;  %vm231_vm10 = vcmask 138240   ;;  %vm1555_vm11 = vmor %vm245_vm9, %vm244_vm8  ;;  %vm451_vm12 = vcmask 130048   ;;  %vm378_vm15 = vcmask 15360   ;;  %s1482_s7 = smov 96  }
  0x11   : > { %v269_v7 = vand.u32 15, %v257_v3  ;;  %vm282_vm2 = vcmp.ge.s32.totalorder %v262_v4, 1  ;;  %vm284_vm3 = vcmp.lt.s32.totalorder %v262_v4, 15  ;;  %s1483_s8 = smov 110   ;;  %vm781_vm8 = vcmask 277504   ;;  %s1484_s9 = smov 94  }
  0x13   : > { %vm283_vm4 = vcmp.ge.s32.totalorder %v269_v7, 1  ;;  %vm285_vm5 = vcmp.lt.s32.totalorder %v269_v7, 15  ;;  %225 = vrot.lane.b32.xlu0 %v204_v8, %s1471_s22  ;;  %221 = vrot.lane.b32.xlu1 %v202_v9, %s1471_s22 }
  0x14   : > { %vm1547_vm6 = vmpackc.low %vm283_vm4, %vm282_vm2  ;;  %vm652_vm2 = vcmask 261120  }
  0x15   : > { %vm373_vm7 = vmpackc.low %vm285_vm5, %vm284_vm3  ;;  %v447_v11 = vsel %vm1547_vm6, 65537, %v1470_v1  ;;  %vm580_vm5 = vcmask 146432  }
  0x16   : > { %v374_v12 = vsel %vm373_vm7, 65537, %v1470_v1 }
  0x17   : > { %448 = vrot.lane.b32.xlu0 %v447_v11, %s1472_s23  ;;  %375 = vrot.lane.b32.xlu1 %v374_v12, %s1473_s24 }
  0x1b   : > { %649 = vrot.lane.b32.xlu0 %v447_v11, %s1474_s25  ;;  %577 = vrot.lane.b32.xlu1 %v374_v12, %s1475_s26 }
  0x1f   : > { %778 = vrot.lane.b32.xlu0 %v374_v12, %s1476_s27 }
  0x81   : > { %v224_v13 = vpop.permute.xlu0 %223  ;;  %v220_v14 = vpop.permute.xlu1 %219 }
  0x82   : > { %v229_v16 = vrot.slane %v224_v13, 4  ;;  %v227_v17 = vrot.slane %v220_v14, 4 }
  0x84   : > { %v234_v18 = vsel %vm231_vm10, %v229_v16, %v224_v13  ;;  %252 = vst.msk [vmem:[#allocation2 + $0x20] sm:$0xf] %vm205_vm0, %v229_v16  ;;  %v232_v19 = vsel %vm231_vm10, %v227_v17, %v220_v14  ;;  %248 = vst.msk [vmem:[#allocation2 + $0x8] sm:$0xf] %vm205_vm0, %v227_v17 }
  0x85   : > { %251 = vst.msk [vmem:[#allocation2 + $0x18] sm:$0xff] %vm1555_vm11, %v234_v18  ;;  %247 = vst.msk [vmem:[#allocation2] sm:$0xff] %vm1555_vm11, %v232_v19  ;;  %v226_v20 = vpop.permute.xlu0 %225  ;;  %v222_v21 = vpop.permute.xlu1 %221 }
  0x86   : > { %v230_v22 = vrot.slane %v226_v20, 4  ;;  %v228_v23 = vrot.slane %v222_v21, 4 }
  0x88   : > { %v235_v24 = vsel %vm231_vm10, %v230_v22, %v226_v20  ;;  %254 = vst.msk [vmem:[#allocation2 + $0x2c] sm:$0xf] %vm205_vm0, %v230_v22  ;;  %v233_v25 = vsel %vm231_vm10, %v228_v23, %v222_v21  ;;  %250 = vst.msk [vmem:[#allocation2 + $0x14] sm:$0xf] %vm205_vm0, %v228_v23 }
  0x89   : > { %253 = vst.msk [vmem:[#allocation2 + $0x24] sm:$0xff] %vm1555_vm11, %v235_v24  ;;  %249 = vst.msk [vmem:[#allocation2 + $0xc] sm:$0xff] %vm1555_vm11, %v233_v25  ;;  %v449_v47 = vpop.permute.xlu0 %448  ;;  %v376_v59 = vpop.permute.xlu1 %375  ;;  %vm343_vm11 = vcmask 1043456  }
  0x8a   : > { %v450_v49 = vrot.slane %v449_v47, 4  ;;  %v377_v61 = vrot.slane %v376_v59, 4 }
  0x8b   : > { %v308_v26 = vld [vmem:[#allocation2 + $0x20] sm:$0xf]  ;;  %v304_v30 = vld [vmem:[#allocation2 + $0x8] sm:$0xf] }
  0x8c   : > { %329 = vrot.lane.b32.xlu0 %v308_v26, %s1477_s28  ;;  %v1575_v27 = vld [vmem:[#allocation2 + $0x18] sm:$0xff]  ;;  %v1581_v31 = vld [vmem:[#allocation2] sm:$0xff]  ;;  %v714_v44 = vld [vmem:[#allocation2 + $0x8] sm:$0xf]  ;;  %vm1625_vm13 = vcmp.ne.s16.totalorder %v450_v49, 0  ;;  %v452_v53 = vsel %vm451_vm12, %v450_v49, %v449_v47  ;;  %vm1651_vm0 = vcmp.ne.s16.totalorder %v377_v61, 0  ;;  %v379_v5 = vsel %vm378_vm15, %v377_v61, %v376_v59 }
  0x8d   : > { %327 = vrot.lane.b32.xlu1 %v1575_v27, %s1477_s28  ;;  %v718_v34 = vld [vmem:[#allocation2 + $0x20] sm:$0xf]  ;;  %v1591_v36 = vsel %vm1547_vm6, %v1575_v27, 0  ;;  %v1601_v38 = vsel %vm1547_vm6, %v1581_v31, 0  ;;  %v513_v50 = vld [vmem:[#allocation2 + $0x8] sm:$0xf]  ;;  %v650_v12 = vpop.permute.xlu0 %649 }
  0x8e   : > { %v517_v46 = vld [vmem:[#allocation2 + $0x20] sm:$0xf]  ;;  %vm453_vm14 = vcmp.ne.s16.totalorder %v452_v53, 0  ;;  %v440_v58 = vld [vmem:[#allocation2 + $0x8] sm:$0xf]  ;;  %vm380_vm1 = vcmp.ne.s16.totalorder %v379_v5, 0 }
  0x8f   : > { %v310_v28 = vld [vmem:[#allocation2 + $0x2c] sm:$0xf]  ;;  %v306_v32 = vld [vmem:[#allocation2 + $0x14] sm:$0xf]  ;;  %v444_v52 = vld [vmem:[#allocation2 + $0x20] sm:$0xf] }
  0x90   : > { %333 = vrot.lane.b32.xlu0 %v310_v28, %s1477_s28  ;;  %v1578_v29 = vld [vmem:[#allocation2 + $0x24] sm:$0xff]  ;;  %v1584_v33 = vld [vmem:[#allocation2 + $0xc] sm:$0xff]  ;;  %v716_v45 = vld [vmem:[#allocation2 + $0x14] sm:$0xf]  ;;  %v460_v54 = vsel %vm1625_vm13, %v444_v52, 0  ;;  %v459_v57 = vsel %vm453_vm14, %v1575_v27, 0 }
  0x91   : > { %331 = vrot.lane.b32.xlu1 %v1578_v29, %s1477_s28  ;;  %v720_v35 = vld [vmem:[#allocation2 + $0x2c] sm:$0xf]  ;;  %v1596_v37 = vsel %vm1547_vm6, %v1578_v29, 0  ;;  %v1606_v39 = vsel %vm1547_vm6, %v1584_v33, 0  ;;  %v456_v60 = vsel %vm1625_vm13, %v440_v58, 0  ;;  %v461_v62 = vsel %vm453_vm14, %v1578_v29, 0 }
  0x92   : > { %v1382_v40 = vcombine.high %v1591_v36, %v1596_v37  ;;  %v1381_v41 = vcombine.low %v1591_v36, %v1596_v37  ;;  %v1380_v42 = vcombine.high %v1601_v38, %v1606_v39  ;;  %v1379_v43 = vcombine.low %v1601_v38, %v1606_v39  ;;  %v519_v48 = vld [vmem:[#allocation2 + $0x2c] sm:$0xf]  ;;  %v442_v63 = vld [vmem:[#allocation2 + $0x14] sm:$0xf]  ;;  %v366_v4 = vld [vmem:[#allocation2 + $0x20] sm:$0xf] }
  0x93   : > { %v446_v55 = vld [vmem:[#allocation2 + $0x2c] sm:$0xf]  ;;  %v458_v0 = vsel %vm1625_vm13, %v442_v63, 0  ;;  %v455_v3 = vsel %vm453_vm14, %v1581_v31, 0  ;;  %v387_v6 = vsel %vm1651_vm0, %v366_v4, 0  ;;  %v457_v7 = vsel %vm453_vm14, %v1584_v33, 0 }
  0x94   : > { %321 = vrot.lane.b32.xlu0 %v304_v30, %s1477_s28  ;;  %v462_v56 = vsel %vm1625_vm13, %v446_v55, 0  ;;  %v368_v8 = vld [vmem:[#allocation2 + $0x2c] sm:$0xf]  ;;  %v386_v10 = vsel %vm380_vm1, %v1575_v27, 0  ;;  %v362_v11 = vld [vmem:[#allocation2 + $0x8] sm:$0xf]  ;;  %v578_v30 = vpop.permute.xlu1 %577 }
  0x95   : > { %319 = vrot.lane.b32.xlu1 %v1581_v31, %s1477_s28  ;;  %v389_v9 = vsel %vm1651_vm0, %v368_v8, 0  ;;  %v383_v13 = vsel %vm1651_vm0, %v362_v11, 0  ;;  %v651_v14 = vrot.slane %v650_v12, 4  ;;  %v388_v15 = vsel %vm380_vm1, %v1578_v29, 0  ;;  %v364_v16 = vld [vmem:[#allocation2 + $0x14] sm:$0xf] }
  0x96   : > { %v385_v17 = vsel %vm1651_vm0, %v364_v16, 0  ;;  %v382_v19 = vsel %vm380_vm1, %v1581_v31, 0  ;;  %v646_v21 = vld [vmem:[#allocation2 + $0x20] sm:$0xf]  ;;  %v384_v23 = vsel %vm380_vm1, %v1584_v33, 0  ;;  %vm345_vm12 = vcmask 1039360  }
  0x97   : > { %vm1679_vm3 = vcmp.ne.s16.totalorder %v651_v14, 0  ;;  %v653_v20 = vsel %vm652_vm2, %v651_v14, %v650_v12  ;;  %v648_v24 = vld [vmem:[#allocation2 + $0x2c] sm:$0xf]  ;;  %v642_v28 = vld [vmem:[#allocation2 + $0x8] sm:$0xf]  ;;  %vm754_vm13 = vcmask 777216  }
  0x98   : > { %325 = vrot.lane.b32.xlu0 %v306_v32, %s1477_s28  ;;  %v661_v22 = vsel %vm1679_vm3, %v646_v21, 0  ;;  %vm654_vm4 = vcmp.ne.s16.totalorder %v653_v20, 0  ;;  %v663_v25 = vsel %vm1679_vm3, %v648_v24, 0  ;;  %v657_v32 = vsel %vm1679_vm3, %v642_v28, 0  ;;  %v574_v49 = vld [vmem:[#allocation2 + $0x20] sm:$0xf] }
  0x99   : > { %323 = vrot.lane.b32.xlu1 %v1584_v33, %s1477_s28  ;;  %v660_v26 = vsel %vm654_vm4, %v1575_v27, 0  ;;  %v656_v47 = vsel %vm654_vm4, %v1581_v31, 0  ;;  %v658_v51 = vsel %vm654_vm4, %v1584_v33, 0  ;;  %v576_v52 = vld [vmem:[#allocation2 + $0x2c] sm:$0xf]  ;;  %vm553_vm14 = vcmask 908288  }
  0x9a   : > { %v570_v55 = vld [vmem:[#allocation2 + $0x8] sm:$0xf]  ;;  %v775_v2 = vld [vmem:[#allocation2 + $0x20] sm:$0xf]  ;;  %v777_v5 = vld [vmem:[#allocation2 + $0x2c] sm:$0xf] }
  0x9b   : > { %v515_v11 = vld [vmem:[#allocation2 + $0x14] sm:$0xf]  ;;  %v771_v14 = vld [vmem:[#allocation2 + $0x8] sm:$0xf]  ;;  %v1456_v20 = vld [vmem:[%s1986_s1 + $0x4] ss:$12 sps:$4 sm:$0xff]  }
  0x9c   : > { %739 = vrot.lane.b32.xlu0 %v718_v34, %s1478_s29  ;;  %v579_v34 = vrot.slane %v578_v30, 4  ;;  %1135 = vmatprep.mubr.bf16.mxu0 %v1456_v20  ;;  %vm496_vm15 = vcmask 916480   ;;  %vm423_vm0 = vcmask 1031168   ;;  %vm697_vm1 = vcmask 785408  }
  0x9d   : > { %737 = vrot.lane.b32.xlu1 %v1575_v27, %s1478_s29 }
  0x9e   : > { %vm1708_vm6 = vcmp.ne.s16.totalorder %v579_v34, 0 }
  0x9f   : > { %v591_v53 = vsel %vm1708_vm6, %v576_v52, 0  ;;  %v1209_v52 = vld [vmem:[%s1987_s2] sm:$0xff] }
  0xa0   : > { %743 = vrot.lane.b32.xlu0 %v720_v35, %s1478_s29  ;;  %v662_v35 = vsel %vm654_vm4, %v1578_v29, 0  ;;  %vm826_vm4 = vcmask 769024  }
  0xa1   : > { %741 = vrot.lane.b32.xlu1 %v1578_v29, %s1478_s29 }
  0xa4   : > { %731 = vrot.lane.b32.xlu0 %v714_v44, %s1478_s29  ;;  %v644_v44 = vld [vmem:[#allocation2 + $0x14] sm:$0xf] }
  0xa5   : > { %729 = vrot.lane.b32.xlu1 %v1581_v31, %s1478_s29 }
  0xa8   : > { %735 = vrot.lane.b32.xlu0 %v716_v45, %s1478_s29  ;;  %v659_v45 = vsel %vm1679_vm3, %v644_v44, 0  ;;  %vm625_vm3 = vcmask 900096  }
  0xa9   : > { %733 = vrot.lane.b32.xlu1 %v1584_v33, %s1478_s29 }
  0xac   : > { %538 = vrot.lane.b32.xlu0 %v517_v46, %s1479_s30 }
  0xad   : > { %536 = vrot.lane.b32.xlu1 %v1575_v27, %s1479_s30 }
  0xb0   : > { %542 = vrot.lane.b32.xlu0 %v519_v48, %s1479_s30  ;;  %v581_v48 = vsel %vm580_vm5, %v579_v34, %v578_v30 }
  0xb1   : > { %540 = vrot.lane.b32.xlu1 %v1578_v29, %s1479_s30  ;;  %vm582_vm7 = vcmp.ne.s16.totalorder %v581_v48, 0 }
  0xb2   : > { %v590_v59 = vsel %vm582_vm7, %v1578_v29, 0  ;;  %v584_v63 = vsel %vm582_vm7, %v1581_v31, 0  ;;  %v586_v4 = vsel %vm582_vm7, %v1584_v33, 0 }
  0xb4   : > { %530 = vrot.lane.b32.xlu0 %v513_v50, %s1479_s30  ;;  %v589_v50 = vsel %vm1708_vm6, %v574_v49, 0 }
  0xb5   : > { %528 = vrot.lane.b32.xlu1 %v1581_v31, %s1479_s30 }
  0xb8   : > { %481 = vrot.lane.b32.xlu0 %v460_v54, %s1480_s5  ;;  %v588_v54 = vsel %vm582_vm7, %v1575_v27, 0 }
  0xb9   : > { %532 = vrot.lane.b32.xlu1 %v1584_v33, %s1479_s30 }
  0xbc   : > { %485 = vrot.lane.b32.xlu0 %v462_v56, %s1480_s5  ;;  %v779_v56 = vpop.permute.xlu0 %778 }
  0xbd   : > { %479 = vrot.lane.b32.xlu1 %v459_v57, %s1480_s5  ;;  %v585_v57 = vsel %vm1708_vm6, %v570_v55, 0  ;;  %v780_v58 = vrot.slane %v779_v56, 4  ;;  %v1210_v55 = vld [vmem:[%s1987_s2 + $0x8] sm:$0xff] }
  0xbf   : > { %vm1736_vm9 = vcmp.ne.s16.totalorder %v780_v58, 0 }
  0xc0   : > { %473 = vrot.lane.b32.xlu0 %v456_v60, %s1480_s5  ;;  %v572_v60 = vld [vmem:[#allocation2 + $0x14] sm:$0xf] }
  0xc1   : > { %483 = vrot.lane.b32.xlu1 %v461_v62, %s1480_s5  ;;  %v587_v61 = vsel %vm1708_vm6, %v572_v60, 0  ;;  %v1241_v60 = vld [vmem:[%s1988_s3] sm:$0xff] }
  0xc4   : > { %477 = vrot.lane.b32.xlu0 %v458_v0, %s1480_s5  ;;  %v782_v0 = vsel %vm781_vm8, %v780_v58, %v779_v56 }
  0xc5   : > { %471 = vrot.lane.b32.xlu1 %v455_v3, %s1480_s5  ;;  %v790_v3 = vsel %vm1736_vm9, %v775_v2, 0  ;;  %vm783_vm10 = vcmp.ne.s16.totalorder %v782_v0, 0 }
  0xc8   : > { %408 = vrot.lane.b32.xlu0 %v387_v6, %s1481_s6  ;;  %v792_v6 = vsel %vm1736_vm9, %v777_v5, 0  ;;  %v1243_v5 = vld [vmem:[%s1988_s3 + $0x10] sm:$0xff] }
  0xc9   : > { %475 = vrot.lane.b32.xlu1 %v457_v7, %s1480_s5  ;;  %v789_v7 = vsel %vm783_vm10, %v1575_v27, 0 }
  0xcc   : > { %412 = vrot.lane.b32.xlu0 %v389_v9, %s1481_s6 }
  0xcd   : > { %406 = vrot.lane.b32.xlu1 %v386_v10, %s1481_s6 }
  0xd0   : > { %400 = vrot.lane.b32.xlu0 %v383_v13, %s1481_s6  ;;  %v791_v13 = vsel %vm783_vm10, %v1578_v29, 0  ;;  %v785_v29 = vsel %vm783_vm10, %v1581_v31, 0 }
  0xd1   : > { %410 = vrot.lane.b32.xlu1 %v388_v15, %s1481_s6 }
  0xd4   : > { %404 = vrot.lane.b32.xlu0 %v385_v17, %s1481_s6 }
  0xd5   : > { %398 = vrot.lane.b32.xlu1 %v382_v19, %s1481_s6  ;;  %v786_v19 = vsel %vm1736_vm9, %v771_v14, 0  ;;  %v1242_v14 = vld [vmem:[%s1988_s3 + $0x8] sm:$0xff] }
  0xd8   : > { %682 = vrot.lane.b32.xlu0 %v661_v22, %s1482_s7  ;;  %v773_v22 = vld [vmem:[#allocation2 + $0x14] sm:$0xf] }
  0xd9   : > { %402 = vrot.lane.b32.xlu1 %v384_v23, %s1481_s6  ;;  %v788_v30 = vsel %vm1736_vm9, %v773_v22, 0 }
  0xdc   : > { %686 = vrot.lane.b32.xlu0 %v663_v25, %s1482_s7 }
  0xdd   : > { %680 = vrot.lane.b32.xlu1 %v660_v26, %s1482_s7 }
  0xe0   : > { %674 = vrot.lane.b32.xlu0 %v657_v32, %s1482_s7 }
  0xe1   : > { %684 = vrot.lane.b32.xlu1 %v662_v35, %s1482_s7  ;;  %v787_v35 = vsel %vm783_vm10, %v1584_v33, 0 }
  0xe4   : > { %678 = vrot.lane.b32.xlu0 %v659_v45, %s1482_s7 }
  0xe5   : > { %672 = vrot.lane.b32.xlu1 %v656_v47, %s1482_s7 }
  0xe8   : > { %610 = vrot.lane.b32.xlu0 %v589_v50, %s1483_s8 }
  0xe9   : > { %676 = vrot.lane.b32.xlu1 %v658_v51, %s1482_s7 }
  0xec   : > { %614 = vrot.lane.b32.xlu0 %v591_v53, %s1483_s8 }
  0xed   : > { %608 = vrot.lane.b32.xlu1 %v588_v54, %s1483_s8 }
  0xf0   : > { %602 = vrot.lane.b32.xlu0 %v585_v57, %s1483_s8 }
  0xf1   : > { %612 = vrot.lane.b32.xlu1 %v590_v59, %s1483_s8  ;;  %v1211_v59 = vld [vmem:[%s1987_s2 + $0x10] sm:$0xff] }
  0xf4   : > { %606 = vrot.lane.b32.xlu0 %v587_v61, %s1483_s8 }
  0xf5   : > { %600 = vrot.lane.b32.xlu1 %v584_v63, %s1483_s8 }
  0xf8   : > { %811 = vrot.lane.b32.xlu0 %v790_v3, %s1484_s9 }
  0xf9   : > { %604 = vrot.lane.b32.xlu1 %v586_v4, %s1483_s8  ;;  %v1212_v4 = vld [vmem:[%s1987_s2 + $0x18] sm:$0xff] }
  0xfc   : > { %815 = vrot.lane.b32.xlu0 %v792_v6, %s1484_s9 }
  0xfd   : > { %809 = vrot.lane.b32.xlu1 %v789_v7, %s1484_s9 }
  0xfe   : > { %v330_v8 = vpop.permute.xlu0 %329 }
  0xff   : > { %v340_v9 = vrot.slane %v330_v8, 4  ;;  %v328_v10 = vpop.permute.xlu1 %327 }
 0x100   : > { %v339_v12 = vrot.slane %v328_v10, 4  ;;  %534 = vrot.lane.b32.xlu0 %v515_v11, %s1479_s30 }
 0x101   : > { %813 = vrot.lane.b32.xlu1 %v791_v13, %s1484_s9 }
 0x102   : > { %v349_v15 = vsel %vm343_vm11, %v339_v12, %v340_v9  ;;  %v334_v27 = vpop.permute.xlu0 %333 }
 0x103   : > { %v1762_v16 = vsel %vm345_vm12, %v328_v10, %v349_v15  ;;  %v342_v17 = vrot.slane %v334_v27, 4  ;;  %v332_v18 = vpop.permute.xlu1 %331 }
 0x104   : > { %v341_v21 = vrot.slane %v332_v18, 4  ;;  %803 = vrot.lane.b32.xlu0 %v786_v19, %s1484_s9 }
 0x105   : > { %801 = vrot.lane.b32.xlu1 %v785_v29, %s1484_s9 }
 0x106   : > { %v351_v23 = vsel %vm343_vm11, %v341_v21, %v342_v17  ;;  %v322_v24 = vpop.permute.xlu0 %321  ;;  %v1244_v21 = vld [vmem:[%s1988_s3 + $0x18] sm:$0xff] }
 0x107   : > { %v1775_v25 = vsel %vm345_vm12, %v332_v18, %v351_v23  ;;  %v336_v26 = vrot.slane %v322_v24, 4  ;;  %v320_v28 = vpop.permute.xlu1 %319 }
 0x108   : > { %v1385_v32 = vcombine.low %v1762_v16, %v1775_v25  ;;  %v1386_v31 = vcombine.high %v1762_v16, %v1775_v25  ;;  %v335_v34 = vrot.slane %v320_v28, 4  ;;  %807 = vrot.lane.b32.xlu0 %v788_v30, %s1484_s9 }
 0x109   : > { %805 = vrot.lane.b32.xlu1 %v787_v35, %s1484_s9 }
 0x10a   : > { %v344_v44 = vsel %vm343_vm11, %v335_v34, %v336_v26  ;;  %v326_v45 = vpop.permute.xlu0 %325 }
 0x10b   : > { %v1789_v46 = vsel %vm345_vm12, %v320_v28, %v344_v44  ;;  %v338_v47 = vrot.slane %v326_v45, 4  ;;  %v324_v48 = vpop.permute.xlu1 %323 }
 0x10c   : > { %v337_v49 = vrot.slane %v324_v48, 4  ;;  %1220 = vperm.xlu0 %1453, %v1210_v55  }
 0x10d   : > { %1215 = vperm.xlu1 %1452, %v1209_v52  }
 0x10e   : > { %v347_v50 = vsel %vm343_vm11, %v337_v49, %v338_v47  ;;  %v740_v51 = vpop.permute.xlu0 %739 }
 0x10f   : > { %v1796_v33 = vsel %vm345_vm12, %v324_v48, %v347_v50  ;;  %v750_v53 = vrot.slane %v740_v51, 4  ;;  %v738_v54 = vpop.permute.xlu1 %737 }
 0x110   : > { %v1383_v56 = vcombine.low %v1789_v46, %v1796_v33  ;;  %v1384_v57 = vcombine.high %v1789_v46, %v1796_v33  ;;  %v749_v58 = vrot.slane %v738_v54, 4  ;;  %1247 = vperm.xlu0 %1453, %v1241_v60  }
 0x111   : > { %1225 = vperm.xlu1 %1452, %v1211_v59  }
 0x112   : > { %v758_v61 = vsel %vm343_vm11, %v749_v58, %v750_v53  ;;  %v744_v62 = vpop.permute.xlu0 %743 }
 0x113   : > { %v1813_v63 = vsel %vm754_vm13, %v738_v54, %v758_v61  ;;  %v752_v0 = vrot.slane %v744_v62, 4  ;;  %v742_v2 = vpop.permute.xlu1 %741 }
 0x114   : > { %v751_v3 = vrot.slane %v742_v2, 4  ;;  %1257 = vperm.xlu0 %1453, %v1243_v5  }
 0x115   : > { %1230 = vperm.xlu1 %1452, %v1212_v4  }
 0x116   : > { %v760_v6 = vsel %vm343_vm11, %v751_v3, %v752_v0  ;;  %v732_v7 = vpop.permute.xlu0 %731 }
 0x117   : > { %v1823_v8 = vsel %vm754_vm13, %v742_v2, %v760_v6  ;;  %v746_v9 = vrot.slane %v732_v7, 4  ;;  %v730_v10 = vpop.permute.xlu1 %729 }
 0x118   : > { %v1409_v11 = vcombine.low %v1813_v63, %v1823_v8  ;;  %v1410_v12 = vcombine.high %v1813_v63, %v1823_v8  ;;  %v745_v13 = vrot.slane %v730_v10, 4 }
 0x119   : > { %1252 = vperm.xlu1 %1452, %v1242_v14  }
 0x11a   : > { %v753_v15 = vsel %vm343_vm11, %v745_v13, %v746_v9  ;;  %v736_v27 = vpop.permute.xlu0 %735 }
 0x11b   : > { %v1834_v17 = vsel %vm754_vm13, %v730_v10, %v753_v15  ;;  %v748_v18 = vrot.slane %v736_v27, 4  ;;  %v734_v19 = vpop.permute.xlu1 %733 }
 0x11c   : > { %v747_v20 = vrot.slane %v734_v19, 4 }
 0x11d   : > { %1262 = vperm.xlu1 %1452, %v1244_v21  }
 0x11e   : > { %v756_v29 = vsel %vm343_vm11, %v747_v20, %v748_v18  ;;  %v539_v22 = vpop.permute.xlu0 %538 }
 0x11f   : > { %v1841_v23 = vsel %vm754_vm13, %v734_v19, %v756_v29  ;;  %v549_v24 = vrot.slane %v539_v22, 4  ;;  %v537_v26 = vpop.permute.xlu1 %536 }
 0x120   : > { %v1407_v28 = vcombine.low %v1834_v17, %v1841_v23  ;;  %v1408_v30 = vcombine.high %v1834_v17, %v1841_v23  ;;  %v548_v34 = vrot.slane %v537_v26, 4 }
 0x122   : > { %v557_v35 = vsel %vm343_vm11, %v548_v34, %v549_v24  ;;  %v543_v44 = vpop.permute.xlu0 %542 }
 0x123   : > { %v1849_v45 = vsel %vm553_vm14, %v537_v26, %v557_v35  ;;  %v551_v47 = vrot.slane %v543_v44, 4  ;;  %v541_v48 = vpop.permute.xlu1 %540 }
 0x124   : > { %v550_v49 = vrot.slane %v541_v48, 4 }
 0x126   : > { %v559_v50 = vsel %vm343_vm11, %v550_v49, %v551_v47  ;;  %v531_v51 = vpop.permute.xlu0 %530 }
 0x127   : > { %v1853_v52 = vsel %vm553_vm14, %v541_v48, %v559_v50  ;;  %v545_v53 = vrot.slane %v531_v51, 4  ;;  %v529_v54 = vpop.permute.xlu1 %528 }
 0x128   : > { %v1397_v55 = vcombine.low %v1849_v45, %v1853_v52  ;;  %v1398_v58 = vcombine.high %v1849_v45, %v1853_v52  ;;  %v544_v59 = vrot.slane %v529_v54, 4  ;;  %v1458_v45 = vld [vmem:[%s1986_s1 + $0x1c] ss:$12 sps:$4 sm:$0xff]   ;;  %v1460_v52 = vld [vmem:[%s1986_s1 + $0x18] ss:$12 sps:$4 sm:$0xff]  }
 0x12a   : > { %v552_v60 = vsel %vm343_vm11, %v544_v59, %v545_v53  ;;  %v482_v61 = vpop.permute.xlu0 %481 }
 0x12b   : > { %v1861_v62 = vsel %vm553_vm14, %v529_v54, %v552_v60  ;;  %v1863_v0 = vpop.permute.xlu1 %532  ;;  %v492_v5 = vrot.slane %v482_v61, 4 }
 0x12e   : > { %v486_v2 = vpop.permute.xlu0 %485 }
 0x12f   : > { %v480_v3 = vpop.permute.xlu1 %479  ;;  %v494_v9 = vrot.slane %v486_v2, 4 }
 0x130   : > { %v491_v4 = vrot.slane %v480_v3, 4 }
 0x132   : > { %v474_v6 = vpop.permute.xlu0 %473  ;;  %v500_v13 = vsel %vm343_vm11, %v491_v4, %v492_v5 }
 0x133   : > { %v484_v7 = vpop.permute.xlu1 %483  ;;  %v501_v18 = vsel %vm496_vm15, %v480_v3, %v500_v13  ;;  %v488_v22 = vrot.slane %v474_v6, 4 }
 0x134   : > { %v493_v10 = vrot.slane %v484_v7, 4 }
 0x136   : > { %v478_v14 = vpop.permute.xlu0 %477  ;;  %v502_v15 = vsel %vm343_vm11, %v493_v10, %v494_v9 }
 0x137   : > { %v472_v27 = vpop.permute.xlu1 %471  ;;  %v503_v19 = vsel %vm496_vm15, %v484_v7, %v502_v15  ;;  %v490_v34 = vrot.slane %v478_v14, 4 }
 0x138   : > { %v487_v20 = vrot.slane %v472_v27, 4  ;;  %v1394_v21 = vcombine.high %v501_v18, %v503_v19  ;;  %v1393_v29 = vcombine.low %v501_v18, %v503_v19 }
 0x13a   : > { %v409_v24 = vpop.permute.xlu0 %408  ;;  %1103 = vmatprep.subr.bf16.mxu0 %v1394_v21  ;;  %v495_v35 = vsel %vm343_vm11, %v487_v20, %v488_v22 }
 0x13b   : > { %1104 = vmatpush1.bf16.msra.mxu0 %v1393_v29  ;;  %v476_v26 = vpop.permute.xlu1 %475  ;;  %v497_v49 = vsel %vm496_vm15, %v472_v27, %v495_v35  ;;  %v419_v60 = vrot.slane %v409_v24, 4 }
 0x13c   : > { %v489_v44 = vrot.slane %v476_v26, 4 }
 0x13e   : > { %v498_v47 = vsel %vm343_vm11, %v489_v44, %v490_v34  ;;  %v413_v48 = vpop.permute.xlu0 %412 }
 0x13f   : > { %v499_v50 = vsel %vm496_vm15, %v476_v26, %v498_v47  ;;  %v407_v51 = vpop.permute.xlu1 %406  ;;  %v421_v3 = vrot.slane %v413_v48, 4 }
 0x140   : > { %v1391_v53 = vcombine.low %v497_v49, %v499_v50  ;;  %v1392_v54 = vcombine.high %v497_v49, %v499_v50  ;;  %v418_v59 = vrot.slane %v407_v51, 4 }
 0x142   : > { %v401_v61 = vpop.permute.xlu0 %400  ;;  %1105 = vmatprep.subr.bf16.mxu0 %v1392_v54  ;;  %v427_v4 = vsel %vm343_vm11, %v418_v59, %v419_v60 }
 0x143   : > { %1106 = vmatpush1.bf16.msra.mxu0 %v1391_v53  ;;  %v411_v2 = vpop.permute.xlu1 %410  ;;  %v428_v9 = vsel %vm423_vm0, %v407_v51, %v427_v4  ;;  %v415_v18 = vrot.slane %v401_v61, 4 }
 0x144   : > { %v420_v5 = vrot.slane %v411_v2, 4 }
 0x146   : > { %v429_v6 = vsel %vm343_vm11, %v420_v5, %v421_v3  ;;  %v405_v7 = vpop.permute.xlu0 %404 }
 0x147   : > { %v430_v10 = vsel %vm423_vm0, %v411_v2, %v429_v6  ;;  %v399_v13 = vpop.permute.xlu1 %398  ;;  %v417_v21 = vrot.slane %v405_v7, 4 }
 0x148   : > { %v1389_v14 = vcombine.low %v428_v9, %v430_v10  ;;  %v1390_v15 = vcombine.high %v428_v9, %v430_v10  ;;  %v414_v27 = vrot.slane %v399_v13, 4 }
 0x14a   : > { %v683_v19 = vpop.permute.xlu0 %682  ;;  %1107 = vmatprep.subr.bf16.mxu0 %v1390_v15  ;;  %v422_v29 = vsel %vm343_vm11, %v414_v27, %v415_v18 }
 0x14b   : > { %1108 = vmatpush1.bf16.msra.mxu0 %v1389_v14  ;;  %v403_v20 = vpop.permute.xlu1 %402  ;;  %v424_v34 = vsel %vm423_vm0, %v399_v13, %v422_v29 }
 0x14c   : > { %v416_v22 = vrot.slane %v403_v20, 4 }
 0x14e   : > { %v425_v24 = vsel %vm343_vm11, %v416_v22, %v417_v21  ;;  %v687_v26 = vpop.permute.xlu0 %686 }
 0x14f   : > { %v426_v35 = vsel %vm423_vm0, %v403_v20, %v425_v24  ;;  %v681_v44 = vpop.permute.xlu1 %680 }
 0x150   : > { %v1387_v47 = vcombine.low %v424_v34, %v426_v35  ;;  %v1388_v48 = vcombine.high %v424_v34, %v426_v35 }
 0x152   : > { %v675_v49 = vpop.permute.xlu0 %674  ;;  %1109 = vmatprep.subr.bf16.mxu0 %v1388_v48 }
 0x153   : > { %1110 = vmatpush1.bf16.msra.mxu0 %v1387_v47  ;;  %v685_v50 = vpop.permute.xlu1 %684  ;;  %v689_v39 = vrot.slane %v675_v49, 4 }
 0x154   : > { %1111 = vmatprep.subr.bf16.mxu0 %v1386_v31  ;;  %v694_v25 = vrot.slane %v685_v50, 4 }
 0x156   : > { %v679_v51 = vpop.permute.xlu0 %678 }
 0x157   : > { %1112 = vmatpush1.bf16.msra.mxu0 %v1385_v32  ;;  %v673_v53 = vpop.permute.xlu1 %672  ;;  %v695_v32 = vrot.slane %v687_v26, 4  ;;  %v691_v37 = vrot.slane %v679_v51, 4 }
 0x158   : > { %1113 = vmatprep.subr.bf16.mxu0 %v1384_v57  ;;  %v692_v57 = vrot.slane %v681_v44, 4 }
 0x15a   : > { %v611_v54 = vpop.permute.xlu0 %610 }
 0x15b   : > { %1114 = vmatpush1.bf16.msra.mxu0 %v1383_v56  ;;  %v677_v59 = vpop.permute.xlu1 %676  ;;  %v703_v56 = vsel %vm343_vm11, %v694_v25, %v695_v32 }
 0x15c   : > { %1115 = vmatprep.subr.bf16.mxu0 %v1382_v40  ;;  %v693_v40 = vrot.slane %v683_v19, 4  ;;  %v690_v60 = vrot.slane %v677_v59, 4  ;;  %v704_v61 = vsel %vm697_vm1, %v685_v50, %v703_v56 }
 0x15e   : > { %v615_v31 = vpop.permute.xlu0 %614  ;;  %v701_v36 = vsel %vm343_vm11, %v692_v57, %v693_v40 }
 0x15f   : > { %1116 = vmatpush1.bf16.msra.mxu0 %v1381_v41  ;;  %v609_v16 = vpop.permute.xlu1 %608  ;;  %v688_v41 = vrot.slane %v673_v53, 4  ;;  %v623_v5 = vrot.slane %v615_v31, 4 }
 0x160   : > { %1117 = vmatprep.subr.bf16.mxu0 %v1380_v42  ;;  %v620_v6 = vrot.slane %v609_v16, 4 }
 0x161   : > { %v696_v4 = vsel %vm343_vm11, %v688_v41, %v689_v39 }
 0x162   : > { %v603_v46 = vpop.permute.xlu0 %602  ;;  %v698_v13 = vsel %vm697_vm1, %v673_v53, %v696_v4  ;;  %v546_v53 = vrot.slane %v1863_v0, 4 }
 0x163   : > { %1118 = vmatpush1.bf16.msra.mxu0 %v1379_v43  ;;  %v613_v33 = vpop.permute.xlu1 %612  ;;  %v699_v43 = vsel %vm343_vm11, %v690_v60, %v691_v37  ;;  %v617_v23 = vrot.slane %v603_v46, 4 }
 0x164   : > { %1119 = vmatprep.subr.bf16.mxu0 %v1410_v12  ;;  %v622_v2 = vrot.slane %v613_v33, 4  ;;  %v702_v12 = vsel %vm697_vm1, %v681_v44, %v701_v36  ;;  %v700_v63 = vsel %vm697_vm1, %v677_v59, %v699_v43 }
 0x165   : > { %v1406_v3 = vcombine.high %v702_v12, %v704_v61  ;;  %v1404_v14 = vcombine.high %v698_v13, %v700_v63  ;;  %v1403_v29 = vcombine.low %v698_v13, %v700_v63 }
 0x166   : > { %v607_v42 = vpop.permute.xlu0 %606  ;;  %v631_v9 = vsel %vm343_vm11, %v622_v2, %v623_v5 }
 0x167   : > { %1120 = vmatpush2.bf16.msra.mxu0 %v1409_v11  ;;  %v601_v38 = vpop.permute.xlu1 %600  ;;  %v621_v11 = vrot.slane %v611_v54, 4  ;;  %v619_v27 = vrot.slane %v607_v42, 4  ;;  %v632_v20 = vsel %vm625_vm3, %v613_v33, %v631_v9 }
 0x168   : > { %1121 = vmatprep.subr.bf16.mxu0 %v1408_v30  ;;  %v1405_v30 = vcombine.low %v702_v12, %v704_v61  ;;  %v616_v18 = vrot.slane %v601_v38, 4 }
 0x169   : > { %v629_v15 = vsel %vm343_vm11, %v620_v6, %v621_v11 }
 0x16a   : > { %v812_v7 = vpop.permute.xlu0 %811  ;;  %v630_v22 = vsel %vm625_vm3, %v609_v16, %v629_v15  ;;  %v624_v26 = vsel %vm343_vm11, %v616_v18, %v617_v23 }
 0x16b   : > { %1122 = vmatpush2.bf16.msra.mxu0 %v1407_v28  ;;  %v605_v8 = vpop.permute.xlu1 %604  ;;  %v1402_v24 = vcombine.high %v630_v22, %v632_v20  ;;  %v822_v34 = vrot.slane %v812_v7, 4  ;;  %v1401_v54 = vcombine.low %v630_v22, %v632_v20  ;;  %v626_v59 = vsel %vm625_vm3, %v601_v38, %v624_v26  ;;  %v1457_v7 = vld [vmem:[%s1986_s1 + $0x8] ss:$12 sps:$4 sm:$0xff]  }
 0x16c   : > { %v618_v10 = vrot.slane %v605_v8, 4  ;;  %1123 = vmatprep.subr.bf16.mxu0 %v1406_v3 }
 0x16e   : > { %v816_v19 = vpop.permute.xlu0 %815  ;;  %v627_v28 = vsel %vm343_vm11, %v618_v10, %v619_v27 }
 0x16f   : > { %1124 = vmatpush2.bf16.msra.mxu0 %v1405_v30  ;;  %v810_v17 = vpop.permute.xlu1 %809  ;;  %v628_v44 = vsel %vm625_vm3, %v605_v8, %v627_v28  ;;  %v824_v49 = vrot.slane %v816_v19, 4 }
 0x170   : > { %v821_v21 = vrot.slane %v810_v17, 4  ;;  %1125 = vmatprep.subr.bf16.mxu0 %v1404_v14  ;;  %v1400_v31 = vcombine.high %v626_v59, %v628_v44  ;;  %v1399_v37 = vcombine.low %v626_v59, %v628_v44 }
 0x172   : > { %v535_v35 = vpop.permute.xlu0 %534  ;;  %v830_v51 = vsel %vm343_vm11, %v821_v21, %v822_v34 }
 0x173   : > { %v547_v47 = vrot.slane %v535_v35, 4  ;;  %1126 = vmatpush2.bf16.msra.mxu0 %v1403_v29  ;;  %v814_v48 = vpop.permute.xlu1 %813  ;;  %v831_v46 = vsel %vm826_vm4, %v810_v17, %v830_v51 }
 0x174   : > { %v823_v50 = vrot.slane %v814_v48, 4  ;;  %1127 = vmatprep.subr.bf16.mxu0 %v1402_v24 }
 0x175   : > { %v555_v32 = vsel %vm343_vm11, %v546_v53, %v547_v47 }
 0x176   : > { %v804_v16 = vpop.permute.xlu0 %803  ;;  %v832_v25 = vsel %vm343_vm11, %v823_v50, %v824_v49  ;;  %v556_v38 = vsel %vm553_vm14, %v1863_v0, %v555_v32 }
 0x177   : > { %1128 = vmatpush2.bf16.msra.mxu0 %v1401_v54  ;;  %v802_v57 = vpop.permute.xlu1 %801  ;;  %v833_v33 = vsel %vm826_vm4, %v814_v48, %v832_v25  ;;  %v818_v40 = vrot.slane %v804_v16, 4  ;;  %v1396_v12 = vcombine.high %v1861_v62, %v556_v38  ;;  %v1395_v6 = vcombine.low %v1861_v62, %v556_v38 }
 0x178   : > { %v817_v56 = vrot.slane %v802_v57, 4  ;;  %1129 = vmatprep.subr.bf16.mxu0 %v1400_v31  ;;  %v1414_v60 = vcombine.high %v831_v46, %v833_v33  ;;  %v1413_v36 = vcombine.low %v831_v46, %v833_v33 }
 0x17a   : > { %v808_v41 = vpop.permute.xlu0 %807  ;;  %1168 = vmatprep.subr.bf16.mxu1 %v1414_v60  ;;  %v825_v39 = vsel %vm343_vm11, %v817_v56, %v818_v40 }
 0x17b   : > { %v820_v42 = vrot.slane %v808_v41, 4  ;;  %1130 = vmatpush2.bf16.msra.mxu0 %v1399_v37  ;;  %1169 = vmatpush1.bf16.msra.mxu1 %v1413_v36  ;;  %v806_v61 = vpop.permute.xlu1 %805  ;;  %v827_v3 = vsel %vm826_vm4, %v802_v57, %v825_v39 }
 0x17c   : > { %v819_v43 = vrot.slane %v806_v61, 4  ;;  %1131 = vmatprep.subr.bf16.mxu0 %v1398_v58  ;;  %v1454_v58 = vld [vmem:[%s1986_s1] ss:$12 sps:$4 sm:$0xff]  }
 0x17e   : > { %v828_v2 = vsel %vm343_vm11, %v819_v43, %v820_v42 }
 0x17f   : > { %v829_v4 = vsel %vm826_vm4, %v806_v61, %v828_v2  ;;  %1132 = vmatpush2.bf16.msra.mxu0 %v1397_v55  ;;  %v1461_v55 = vld [vmem:[%s1986_s1 + $0x20] ss:$12 sps:$4 sm:$0xff]  }
 0x180   : > { %v1411_v0 = vcombine.low %v827_v3, %v829_v4  ;;  %v1412_v5 = vcombine.high %v827_v3, %v829_v4  ;;  %1133 = vmatprep.subr.bf16.mxu0 %v1396_v12 }
 0x182   : > { %1170 = vmatprep.subr.bf16.mxu1 %v1412_v5 }
 0x183   : > { %1134 = vmatpush2.bf16.msra.mxu0 %v1395_v6  ;;  %1171 = vmatpush1.bf16.msra.mxu1 %v1411_v0 }
 0x186   : > { %1136 = vmatmul.mubr.bf16.vlgmr.msra.gmra.mxu0 %v1454_v58  ;;  %1415 = vmatmul.mubr.msk.bf16.vlgmr.msra.gmra.mxu1 %vm652_vm2, %v1457_v7 }
 0x187   : > { %1145 = vmatprep.mubr.bf16.mxu0 %v1458_v45  ;;  %1198 = vmatprep.mubr.bf16.mxu1 %v1470_v1  ;;  %v1221_v8 = vpop.permute.xlu0 %1220 }
 0x188   : > { %v1216_v62 = vpop.permute.xlu1 %1215 }
 0x18b   : > { %v1248_v13 = vpop.permute.xlu0 %1247 }
 0x18c   : > { %v1226_v63 = vpop.permute.xlu1 %1225 }
 0x18e   : > { %1146 = vmatmul.mubr.bf16.gmra.mxu0 %v1460_v52  ;;  %1416 = vmatmul.mubr.msk.bf16.gmra.mxu1 %vm652_vm2, %v1461_v55 }
 0x18f   : > { %v1258_v33 = vpop.permute.xlu0 %1257 }
 0x190   : > { %v1231_v10 = vpop.permute.xlu1 %1230 }
 0x194   : > { %v1253_v29 = vpop.permute.xlu1 %1252 }
 0x198   : > { %v1263_v38 = vpop.permute.xlu1 %1262 }
 0x246   : > { %v1137_v11 = vpop.f32.mrf.mxu0  ;;  %v1190_v9 = vpop.f32.mrf.mxu1 }
 0x247   : > { %v1191_v30 = vadd.f32 %v1190_v9, %v1137_v11 }
 0x248   : > { %v1139_v1 = vpop.f32.mrf.mxu0  ;;  %v1192_v14 = vpop.f32.mrf.mxu1 }
 0x249   : > { %v1233_v15 = vmul.f32 %v1216_v62, %v1191_v30  ;;  %v1193_v27 = vadd.f32 %v1192_v14, %v1139_v1 }
 0x24a   : > { %v1141_v18 = vpop.f32.mrf.mxu0  ;;  %v1194_v19 = vpop.f32.mrf.mxu1 }
 0x24b   : > { %v1234_v20 = vmul.f32 %v1216_v62, %v1193_v27  ;;  %v1265_v17 = vadd.f32 %v1248_v13, %v1233_v15  ;;  %v1195_v23 = vadd.f32 %v1194_v19, %v1141_v18 }
 0x24c   : > { %v1143_v28 = vpop.f32.mrf.mxu0  ;;  %v1196_v21 = vpop.f32.mrf.mxu1 }
 0x24d   : > { %v1266_v22 = vadd.f32 %v1248_v13, %v1234_v20  ;;  %v1235_v24 = vmul.f32 %v1221_v8, %v1195_v23  ;;  %v1197_v26 = vadd.f32 %v1196_v21, %v1143_v28  ;;  %v1273_v34 = vmax.f32 %v1265_v17, 0.0 }
 0x24e   : > { %v1147_v35 = vpop.f32.mrf.mxu0  ;;  %v1200_v44 = vpop.f32.mrf.mxu1 }
 0x24f   : > { %v1274_v47 = vmax.f32 %v1266_v22, 0.0  ;;  %v1267_v48 = vadd.f32 %v1253_v29, %v1235_v24  ;;  %v1236_v49 = vmul.f32 %v1221_v8, %v1197_v26  ;;  %v1201_v50 = vadd.f32 %v1200_v44, %v1147_v35 }
 0x250   : > { %v1149_v51 = vpop.f32.mrf.mxu0  ;;  %v1202_v53 = vpop.f32.mrf.mxu1 }
 0x251   : > { %v1425_v54 = vpack.c.bf16 %v1274_v47, %v1273_v34  ;;  %v1268_v59 = vadd.f32 %v1253_v29, %v1236_v49  ;;  %v1237_v31 = vmul.f32 %v1226_v63, %v1201_v50  ;;  %v1203_v16 = vadd.f32 %v1202_v53, %v1149_v51 }
 0x252   : > { %v1151_v25 = vpop.f32.mrf.mxu0  ;;  %v1204_v32 = vpop.f32.mrf.mxu1  ;;  %v1275_v57 = vmax.f32 %v1267_v48, 0.0 }
 0x253   : > { %1305 = vst [vmem:[%s1976_s20] sm:$0xff] %v1425_v54  ;;  %v1276_v46 = vmax.f32 %v1268_v59, 0.0  ;;  %v1205_v40 = vadd.f32 %v1204_v32, %v1151_v25  ;;  %v1269_v56 = vadd.f32 %v1258_v33, %v1237_v31  ;;  %v1238_v60 = vmul.f32 %v1226_v63, %v1203_v16 }
 0x254   : > { %v1153_v36 = vpop.f32.mrf.mxu0  ;;  %v1206_v37 = vpop.f32.mrf.mxu1 }
 0x255   : > { %v1426_v41 = vpack.c.bf16 %v1276_v46, %v1275_v57  ;;  %v1239_v42 = vmul.f32 %v1231_v10, %v1205_v40  ;;  %v1207_v61 = vadd.f32 %v1206_v37, %v1153_v36  ;;  %v1270_v39 = vadd.f32 %v1258_v33, %v1238_v60 }
 0x256   : > { %v1277_v12 = vmax.f32 %v1269_v56, 0.0 }
 0x257   : > { %1306 = vst [vmem:[%s1976_s20 + $0x8] sm:$0xff] %v1426_v41  ;;  %v1271_v43 = vadd.f32 %v1263_v38, %v1239_v42  ;;  %v1240_v2 = vmul.f32 %v1231_v10, %v1207_v61  ;;  %v1278_v3 = vmax.f32 %v1270_v39, 0.0 }
 0x259   : > { %v1272_v4 = vadd.f32 %v1263_v38, %v1240_v2  ;;  %v1427_v0 = vpack.c.bf16 %v1278_v3, %v1277_v12  ;;  %v1279_v5 = vmax.f32 %v1271_v43, 0.0 }
 0x25b   : > { %v1280_v6 = vmax.f32 %v1272_v4, 0.0  ;;  %1307 = vst [vmem:[%s1976_s20 + $0x10] sm:$0xff] %v1427_v0 }
 0x25d   : > { %v1428_v58 = vpack.c.bf16 %v1280_v6, %v1279_v5 }
 0x25f   : > { %1308 = vst [vmem:[%s1976_s20 + $0x18] sm:$0xff] %v1428_v58 }
 0x260 PF: > { %s14_s15 = sadd.s32 1, %s1468_s15  }
 0x261   : > { %p11_p4 = scmp.ge.s32.totalorder %s14_s15, 4  }
 0x263   :  { %13 = sbr.rel (!%p11_p4) target bundleno = 1 (0x1), region = 66 }

// kernel: mfms_attention_block.13
= control target key start
LH: loop header
LB: loop body
LE: loop exit
PB: predicated region body
PF: predicated region fallthrough
CT: control target
= control target key end

     0   :  { %s326_s0 = inlined_call_operand.vmem [shape: bf16[64,256], index: 0, kind: input, shape index: {}]   ;;  %s327_s1 = inlined_call_operand.vmem [shape: f32[64,256], index: 1, kind: input, shape index: {}]   ;;  %s328_s2 = inlined_call_operand.vmem [shape: f32[64,256], index: 2, kind: input, shape index: {}]   ;;  %s329_s3 = inlined_call_operand.vmem [shape: f32[64,256], index: 3, kind: output, shape index: {}]  }
   0x1   :  { %v14_v0 = vld [vmem:[%s326_s0] sm:$0xff]  ;;  %v39_v4 = vld [vmem:[%s327_s1 + $0x8] sm:$0xff]  ;;  %v40_v7 = vld [vmem:[%s327_s1 + $0x10] sm:$0xff] }
   0x2   :  { %v38_v1 = vld [vmem:[%s327_s1] sm:$0xff]  ;;  %v22_v2 = vunpack.c.l.bf16 %v14_v0  ;;  %v23_v3 = vunpack.c.h.bf16 %v14_v0  ;;  %v15_v5 = vld [vmem:[%s326_s0 + $0x8] sm:$0xff]  ;;  %v41_v9 = vld [vmem:[%s327_s1 + $0x18] sm:$0xff] }
   0x3   :  { %v24_v6 = vunpack.c.l.bf16 %v15_v5  ;;  %v25_v8 = vunpack.c.h.bf16 %v15_v5  ;;  %v16_v12 = vld [vmem:[%s326_s0 + $0x10] sm:$0xff]  ;;  %v42_v13 = vld [vmem:[%s327_s1 + $0x20] sm:$0xff]  ;;  %v87_v15 = vld [vmem:[%s328_s2 + $0x8] sm:$0xff] }
   0x4   :  { %v54_v10 = vadd.f32 %v38_v1, %v22_v2  ;;  %v55_v11 = vadd.f32 %v39_v4, %v23_v3  ;;  %v86_v14 = vld [vmem:[%s328_s2] sm:$0xff]  ;;  %v26_v18 = vunpack.c.l.bf16 %v16_v12  ;;  %v27_v19 = vunpack.c.h.bf16 %v16_v12  ;;  %v43_v20 = vld [vmem:[%s327_s1 + $0x28] sm:$0xff]  ;;  %v88_v23 = vld [vmem:[%s328_s2 + $0x10] sm:$0xff] }
   0x5   :  { %v56_v16 = vadd.f32 %v40_v7, %v24_v6  ;;  %v57_v17 = vadd.f32 %v41_v9, %v25_v8  ;;  %v89_v24 = vld [vmem:[%s328_s2 + $0x18] sm:$0xff]  ;;  %v44_v30 = vld [vmem:[%s327_s1 + $0x30] sm:$0xff]  ;;  %v18_v32 = vld [vmem:[%s326_s0 + $0x20] sm:$0xff] }
   0x6   :  { %v70_v21 = vmul.f32 0.5, %v54_v10  ;;  %v71_v22 = vmul.f32 0.5, %v55_v11  ;;  %v17_v25 = vld [vmem:[%s326_s0 + $0x18] sm:$0xff]  ;;  %v58_v28 = vadd.f32 %v42_v13, %v26_v18  ;;  %v59_v29 = vadd.f32 %v43_v20, %v27_v19  ;;  %v90_v35 = vld [vmem:[%s328_s2 + $0x20] sm:$0xff]  ;;  %v91_v36 = vld [vmem:[%s328_s2 + $0x28] sm:$0xff] }
   0x7   :  { %v72_v26 = vmul.f32 0.5, %v56_v16  ;;  %v73_v27 = vmul.f32 0.5, %v57_v17  ;;  %v45_v31 = vld [vmem:[%s327_s1 + $0x38] sm:$0xff]  ;;  %v28_v37 = vunpack.c.l.bf16 %v17_v25  ;;  %v29_v38 = vunpack.c.h.bf16 %v17_v25  ;;  %v46_v43 = vld [vmem:[%s327_s1 + $0x40] sm:$0xff]  ;;  %v47_v44 = vld [vmem:[%s327_s1 + $0x48] sm:$0xff] }
   0x8   :  { %v102_v33 = vadd.f32 %v86_v14, %v70_v21  ;;  %v103_v34 = vadd.f32 %v87_v15, %v71_v22  ;;  %v74_v41 = vmul.f32 0.5, %v58_v28  ;;  %v75_v42 = vmul.f32 0.5, %v59_v29  ;;  %v19_v45 = vld [vmem:[%s326_s0 + $0x28] sm:$0xff]  ;;  %v48_v50 = vld [vmem:[%s327_s1 + $0x50] sm:$0xff]  ;;  %v49_v51 = vld [vmem:[%s327_s1 + $0x58] sm:$0xff] }
   0x9   :  { %v104_v39 = vadd.f32 %v88_v23, %v72_v26  ;;  %v105_v40 = vadd.f32 %v89_v24, %v73_v27  ;;  %v60_v46 = vadd.f32 %v44_v30, %v28_v37  ;;  %v61_v47 = vadd.f32 %v45_v31, %v29_v38  ;;  %v92_v54 = vld [vmem:[%s328_s2 + $0x30] sm:$0xff]  ;;  %v93_v55 = vld [vmem:[%s328_s2 + $0x38] sm:$0xff]  ;;  %v50_v63 = vld [vmem:[%s327_s1 + $0x60] sm:$0xff] }
   0xa   :  { %118 = vst [vmem:[%s329_s3] sm:$0xff] %v102_v33  ;;  %119 = vst [vmem:[%s329_s3 + $0x8] sm:$0xff] %v103_v34  ;;  %v30_v48 = vunpack.c.l.bf16 %v18_v32  ;;  %v31_v49 = vunpack.c.h.bf16 %v18_v32  ;;  %v106_v52 = vadd.f32 %v90_v35, %v74_v41  ;;  %v107_v53 = vadd.f32 %v91_v36, %v75_v42  ;;  %v20_v58 = vld [vmem:[%s326_s0 + $0x30] sm:$0xff]  ;;  %v51_v0 = vld [vmem:[%s327_s1 + $0x68] sm:$0xff] }
   0xb   :  { %120 = vst [vmem:[%s329_s3 + $0x10] sm:$0xff] %v104_v39  ;;  %121 = vst [vmem:[%s329_s3 + $0x18] sm:$0xff] %v105_v40  ;;  %v32_v56 = vunpack.c.l.bf16 %v19_v45  ;;  %v33_v57 = vunpack.c.h.bf16 %v19_v45  ;;  %v76_v59 = vmul.f32 0.5, %v60_v46  ;;  %v77_v60 = vmul.f32 0.5, %v61_v47  ;;  %v94_v1 = vld [vmem:[%s328_s2 + $0x40] sm:$0xff]  ;;  %v95_v2 = vld [vmem:[%s328_s2 + $0x48] sm:$0xff] }
   0xc   :  { %v62_v61 = vadd.f32 %v46_v43, %v30_v48  ;;  %v63_v62 = vadd.f32 %v47_v44, %v31_v49  ;;  %122 = vst [vmem:[%s329_s3 + $0x20] sm:$0xff] %v106_v52  ;;  %123 = vst [vmem:[%s329_s3 + $0x28] sm:$0xff] %v107_v53  ;;  %v34_v5 = vunpack.c.l.bf16 %v20_v58  ;;  %v35_v6 = vunpack.c.h.bf16 %v20_v58  ;;  %v21_v7 = vld [vmem:[%s326_s0 + $0x38] sm:$0xff]  ;;  %v96_v12 = vld [vmem:[%s328_s2 + $0x50] sm:$0xff] }
   0xd   :  { %v64_v3 = vadd.f32 %v48_v50, %v32_v56  ;;  %v65_v4 = vadd.f32 %v49_v51, %v33_v57  ;;  %v108_v8 = vadd.f32 %v92_v54, %v76_v59  ;;  %v109_v9 = vadd.f32 %v93_v55, %v77_v60  ;;  %v97_v13 = vld [vmem:[%s328_s2 + $0x58] sm:$0xff]  ;;  %v52_v18 = vld [vmem:[%s327_s1 + $0x70] sm:$0xff]  ;;  %v98_v22 = vld [vmem:[%s328_s2 + $0x60] sm:$0xff] }
   0xe   :  { %v78_v10 = vmul.f32 0.5, %v62_v61  ;;  %v79_v11 = vmul.f32 0.5, %v63_v62  ;;  %v66_v16 = vadd.f32 %v50_v63, %v34_v5  ;;  %v67_v17 = vadd.f32 %v51_v0, %v35_v6  ;;  %v53_v19 = vld [vmem:[%s327_s1 + $0x78] sm:$0xff]  ;;  %v99_v23 = vld [vmem:[%s328_s2 + $0x68] sm:$0xff]  ;;  %v100_v34 = vld [vmem:[%s328_s2 + $0x70] sm:$0xff] }
   0xf   :  { %v80_v14 = vmul.f32 0.5, %v64_v3  ;;  %v81_v15 = vmul.f32 0.5, %v65_v4  ;;  %124 = vst [vmem:[%s329_s3 + $0x30] sm:$0xff] %v108_v8  ;;  %125 = vst [vmem:[%s329_s3 + $0x38] sm:$0xff] %v109_v9  ;;  %v36_v24 = vunpack.c.l.bf16 %v21_v7  ;;  %v37_v25 = vunpack.c.h.bf16 %v21_v7  ;;  %v101_v35 = vld [vmem:[%s328_s2 + $0x78] sm:$0xff] }
  0x10   :  { %v110_v20 = vadd.f32 %v94_v1, %v78_v10  ;;  %v111_v21 = vadd.f32 %v95_v2, %v79_v11  ;;  %v82_v28 = vmul.f32 0.5, %v66_v16  ;;  %v83_v29 = vmul.f32 0.5, %v67_v17 }
  0x11   :  { %v112_v26 = vadd.f32 %v96_v12, %v80_v14  ;;  %v113_v27 = vadd.f32 %v97_v13, %v81_v15  ;;  %v68_v30 = vadd.f32 %v52_v18, %v36_v24  ;;  %v69_v31 = vadd.f32 %v53_v19, %v37_v25 }
  0x12   :  { %126 = vst [vmem:[%s329_s3 + $0x40] sm:$0xff] %v110_v20  ;;  %127 = vst [vmem:[%s329_s3 + $0x48] sm:$0xff] %v111_v21  ;;  %v114_v32 = vadd.f32 %v98_v22, %v82_v28  ;;  %v115_v33 = vadd.f32 %v99_v23, %v83_v29 }
  0x13   :  { %128 = vst [vmem:[%s329_s3 + $0x50] sm:$0xff] %v112_v26  ;;  %129 = vst [vmem:[%s329_s3 + $0x58] sm:$0xff] %v113_v27  ;;  %v84_v36 = vmul.f32 0.5, %v68_v30  ;;  %v85_v37 = vmul.f32 0.5, %v69_v31 }
  0x14   :  { %130 = vst [vmem:[%s329_s3 + $0x60] sm:$0xff] %v114_v32  ;;  %131 = vst [vmem:[%s329_s3 + $0x68] sm:$0xff] %v115_v33 }
  0x15   :  { %v116_v38 = vadd.f32 %v100_v34, %v84_v36  ;;  %v117_v39 = vadd.f32 %v101_v35, %v85_v37 }
  0x17   :  { %132 = vst [vmem:[%s329_s3 + $0x70] sm:$0xff] %v116_v38  ;;  %133 = vst [vmem:[%s329_s3 + $0x78] sm:$0xff] %v117_v39 }

</bundles_post_ra>
